<compile_context>
chip_gen: v5e
topology: v5e:2x2
jax: 0.10.0
libtpu: 0.0.40
codegen_flags: <defaults>
</compile_context>

<pallas_src>
import numpy as np
import jax
import jax.numpy as jnp
from jax import lax
from jax.experimental import pallas as pl
from jax.experimental.pallas import tpu as pltpu

# ------------------------- small, module-consistent sizes -------------------------
BATCH = 8                # fills the f32 sublanes (review: biggest throughput lever)
EP_LEN = 2
SEQ_LEN = 4
INPUT_SIZE = 20          # encoder vocab
EMB_DIM = 8              # encoder embedding dim
ACTION_ENC = 5           # action vocab
TARGET_ENC = 10          # target vocab
INSTR_CUTOFF = 6
HIDDEN = 32
ACTION_EMB = 6           # fixed in Decoder.__init__
TARGET_EMB = 18          # fixed in Decoder.__init__
DEC_STEPS = INSTR_CUTOFF + 2        # Decoder.instr_cutoff = instr_cutoff + 2
ENC_STEPS = EP_LEN * SEQ_LEN
NUM_CLS = ACTION_ENC + TARGET_ENC   # fused action|target head width (15)
C_PAD = 128                         # lane-dense padded head / output width


# ----------------------------- fused in-kernel LSTM cell --------------------------
def _fused_lstm_cell(pre, c, H):
    """pre: [B, 4H] gate pre-activations, packed gate order (i, f, o, g)."""
    sig = jax.nn.sigmoid(pre[:, : 3 * H])      # one contiguous sigmoid (EUP)
    i_g = sig[:, :H]
    f_g = sig[:, H:2 * H]
    o_g = sig[:, 2 * H:3 * H]
    g_g = jnp.tanh(pre[:, 3 * H:])
    c_new = f_g * c + i_g * g_g
    h_new = o_g * jnp.tanh(c_new)
    return h_new, c_new


# ----------------------------- single fused encoder+decoder kernel ----------------
def encdec_kernel(tok_ref, enc_wx_ref, enc_wh_ref, enc_b_ref,
                  dec_we_ref, dec_wh_ref, dec_b_ref, head_w_ref, head_b_ref,
                  out_ref):
    # tok_ref:    [B, T_enc] int32 tokens (batch-major, straight from the caller)
    # enc_wx_ref: [V, 4H]     embedding folded into encoder input->gate weights
    # enc_wh_ref: [H, 4H]     encoder recurrent gate weights
    # enc_b_ref:  [1, 4H]     encoder bias (b_ih + b_hh)
    # dec_we_ref: [C_PAD, 4H] rows 0..A-1 = action-emb-folded gates,
    #                         rows A..A+Tg-1 = target-emb-folded gates, rest 0
    # dec_wh_ref: [H, 4H]     decoder recurrent gate weights
    # dec_b_ref:  [1, 4H]
    # head_w_ref: [H, C_PAD]  fused action|target heads, zero-padded to 128 lanes
    # head_b_ref: [1, C_PAD]
    # out_ref:    [T_dec, B, C_PAD]  time-major, lane-dense fused logits
    T_dec, B, Cp = out_ref.shape
    H = enc_wh_ref.shape[0]
    V = enc_wx_ref.shape[0]
    T_enc = tok_ref.shape[1]
    A = ACTION_ENC
    Tg = TARGET_ENC

    # -------- encoder --------------------------------------------------------------
    tok = tok_ref[...]                                                   # [B, T_enc]
    iota_v = lax.broadcasted_iota(jnp.int32, (B, V), 1)
    wx_e = enc_wx_ref[...]                                               # [V, 4H]
    wh_e = enc_wh_ref[...]                                               # [H, 4H]
    b_e = enc_b_ref[...]                                                 # [1, 4H]

    # Per-step input projections (one-hot @ folded-embedding-gates).  These are
    # independent of the recurrence, so the scheduler overlaps them with the
    # serial h @ Wh chain below.
    xw = [jnp.dot((tok[:, t:t + 1] == iota_v).astype(jnp.float32), wx_e,
                  preferred_element_type=jnp.float32) + b_e
          for t in range(T_enc)]

    h = jnp.zeros((B, H), jnp.float32)
    c = jnp.zeros((B, H), jnp.float32)
    for t in range(T_enc):          # fully unrolled: only h @ Wh on the critical path
        pre = xw[t] + jnp.dot(h, wh_e, preferred_element_type=jnp.float32)
        h, c = _fused_lstm_cell(pre, c, H)

    # -------- decoder: greedy feedback carried as indices / two-hot in registers ---
    dec_we = dec_we_ref[...]                                             # [C_PAD, 4H]
    dec_wh = dec_wh_ref[...]                                             # [H, 4H]
    dec_b = dec_b_ref[...]                                               # [1, 4H]
    w_hd = head_w_ref[...]                                               # [H, C_PAD]
    b_hd = head_b_ref[...]                                               # [1, C_PAD]

    # Loop-invariant masks / iota (hoisted, not rebuilt per step).
    iota_c = lax.broadcasted_iota(jnp.int32, (B, Cp), 1)
    act_mask = iota_c < A
    tgt_mask = (iota_c >= A) & (iota_c < A + Tg)
    neg_inf = jnp.float32(-jnp.inf)

    # step 0: actions[:, 1, 0] = 1 ; targets[:, 1, 0] = 1  ->  two-hot at lanes 1, A+1
    a_idx = jnp.full((B, 1), 1, jnp.int32)
    t_idx = jnp.full((B, 1), A + 1, jnp.int32)        # absolute lane (already offset by A)
    twohot = ((iota_c == a_idx) | (iota_c == t_idx)).astype(jnp.float32)  # [B, C_PAD]
    out_ref[0] = twohot                               # lane-dense full-width store

    for i in range(1, T_dec):       # fully unrolled greedy decode
        pre = (jnp.dot(twohot, dec_we, preferred_element_type=jnp.float32)
               + jnp.dot(h, dec_wh, preferred_element_type=jnp.float32)
               + dec_b)
        h, c = _fused_lstm_cell(pre, c, H)
        logits = jnp.dot(h, w_hd, preferred_element_type=jnp.float32) + b_hd  # [B, C_PAD]
        out_ref[i] = logits          # fire-and-forget, lane-dense, off the feedback path
        if i + 1 < T_dec:
            # First-occurrence argmax over the masked full-width logits (no lane slices).
            la = jnp.where(act_mask, logits, neg_inf)
            ma = jnp.max(la, axis=-1, keepdims=True)
            a_idx = jnp.min(jnp.where(la == ma, iota_c, Cp), axis=-1, keepdims=True)
            lt = jnp.where(tgt_mask, logits, neg_inf)
            mt = jnp.max(lt, axis=-1, keepdims=True)
            t_idx = jnp.min(jnp.where(lt == mt, iota_c, Cp), axis=-1, keepdims=True)
            twohot = ((iota_c == a_idx) | (iota_c == t_idx)).astype(jnp.float32)


# ------------------------------ one-time weight packing ----------------------------
def prepare_params(p):
    """Repack PyTorch-layout params once; per-call path passes these straight in."""
    H = HIDDEN

    def pack_ih(w):   # torch [4H, IN] gate order (i,f,g,o)  ->  [IN, 4H] order (i,f,o,g)
        wi, wf, wg, wo = w[:H], w[H:2 * H], w[2 * H:3 * H], w[3 * H:]
        return jnp.concatenate([wi, wf, wo, wg], axis=0).T

    def pack_b(b_ih, b_hh):
        b = b_ih + b_hh
        bi, bf, bg, bo = b[:H], b[H:2 * H], b[2 * H:3 * H], b[3 * H:]
        return jnp.concatenate([bi, bf, bo, bg]).reshape(1, 4 * H)

    dec_ih = pack_ih(p["dec_w_ih"])                                      # [24, 4H]
    # action/target embeddings folded into the decoder input->gate projection,
    # laid out on the two-hot lane index and zero-padded to 128 rows (lane-dense LHS).
    dec_we = jnp.concatenate(
        [p["act_emb"] @ dec_ih[:ACTION_EMB],                             # [A, 4H]
         p["tgt_emb"] @ dec_ih[ACTION_EMB:]], axis=0)                    # [Tg, 4H]
    dec_we_pad = jnp.zeros((C_PAD, 4 * H), jnp.float32).at[:NUM_CLS].set(dec_we)

    # fused action|target heads, zero-padded to 128 output lanes (lane-dense store).
    head_w = jnp.concatenate([p["act_fc_w"].T, p["tgt_fc_w"].T], axis=1)  # [H, 15]
    head_w_pad = jnp.zeros((H, C_PAD), jnp.float32).at[:, :NUM_CLS].set(head_w)
    head_b = jnp.concatenate([p["act_fc_b"], p["tgt_fc_b"]])              # [15]
    head_b_pad = jnp.zeros((1, C_PAD), jnp.float32).at[0, :NUM_CLS].set(head_b)

    return {
        # encoder embedding folded into the encoder input->gate projection
        "enc_wx": p["enc_emb"] @ pack_ih(p["enc_w_ih"]),                 # [V, 4H]
        "enc_wh": pack_ih(p["enc_w_hh"]),                                # [H, 4H]
        "enc_b": pack_b(p["enc_b_ih"], p["enc_b_hh"]),                   # [1, 4H]
        "dec_we": dec_we_pad,                                            # [128, 4H]
        "dec_wh": pack_ih(p["dec_w_hh"]),                                # [H, 4H]
        "dec_b": pack_b(p["dec_b_ih"], p["dec_b_hh"]),                   # [1, 4H]
        "head_w": head_w_pad,                                            # [H, 128]
        "head_b": head_b_pad,                                            # [1, 128]
    }


# ----------------------------------- forward wrapper --------------------------------
@jax.jit
def encoder_decoder_forward(inputs, labels, packed):
    # `labels` is unused: EncoderDecoder builds Decoder with teacher_forcing=False.
    del labels
    B = inputs.shape[0]
    tok = inputs.reshape(B, -1)                                          # [B, T_enc] int32

    vmem = pl.BlockSpec(memory_space=pltpu.MemorySpace.VMEM)
    out = pl.pallas_call(
        encdec_kernel,
        out_shape=jax.ShapeDtypeStruct((DEC_STEPS, B, C_PAD), jnp.float32),
        in_specs=[vmem] * 9,
        out_specs=vmem,
    )(tok, packed["enc_wx"], packed["enc_wh"], packed["enc_b"],
      packed["dec_we"], packed["dec_wh"], packed["dec_b"],
      packed["head_w"], packed["head_b"])

    out_bct = jnp.transpose(out, (1, 2, 0))                              # [B, C_PAD, T]
    actions = out_bct[:, :ACTION_ENC, :]                                 # [B, A, T]
    targets = out_bct[:, ACTION_ENC:NUM_CLS, :]                          # [B, Tg, T]
    return actions, targets


# ------------------------------ deterministic params -------------------------------
def init_params(key):
    ks = jax.random.split(key, 15)
    u = lambda k, shape, s=0.2: jax.random.uniform(k, shape, jnp.float32, -s, s)
    return {
        "enc_emb": jax.random.normal(ks[0], (INPUT_SIZE, EMB_DIM), jnp.float32),
        "enc_w_ih": u(ks[1], (4 * HIDDEN, EMB_DIM)),
        "enc_w_hh": u(ks[2], (4 * HIDDEN, HIDDEN)),
        "enc_b_ih": u(ks[3], (4 * HIDDEN,)),
        "enc_b_hh": u(ks[4], (4 * HIDDEN,)),
        "act_emb": jax.random.normal(ks[5], (ACTION_ENC, ACTION_EMB), jnp.float32),
        "tgt_emb": jax.random.normal(ks[6], (TARGET_ENC, TARGET_EMB), jnp.float32),
        "dec_w_ih": u(ks[7], (4 * HIDDEN, ACTION_EMB + TARGET_EMB)),
        "dec_w_hh": u(ks[8], (4 * HIDDEN, HIDDEN)),
        "dec_b_ih": u(ks[9], (4 * HIDDEN,)),
        "dec_b_hh": u(ks[10], (4 * HIDDEN,)),
        "act_fc_w": u(ks[11], (ACTION_ENC, HIDDEN)),
        "act_fc_b": u(ks[12], (ACTION_ENC,)),
        "tgt_fc_w": u(ks[13], (TARGET_ENC, HIDDEN)),
        "tgt_fc_b": u(ks[14], (TARGET_ENC,)),
    }


# --------------------------- pure NumPy reference (PyTorch semantics) ---------------------------
def _np_sigmoid(x):
    return 1.0 / (1.0 + np.exp(-x))


def _np_lstm_cell(x, h, c, w_ih, w_hh, b_ih, b_hh):
    H = h.shape[1]
    g = x @ w_ih.T + h @ w_hh.T + b_ih + b_hh
    i = _np_sigmoid(g[:, 0:H]); f = _np_sigmoid(g[:, H:2 * H])
    gg = np.tanh(g[:, 2 * H:3 * H]); o = _np_sigmoid(g[:, 3 * H:4 * H])
    c = f * c + i * gg
    h = o * np.tanh(c)
    return h, c


def reference_forward(inputs, labels, params):
    p = {k: np.asarray(v) for k, v in params.items()}
    B = inputs.shape[0]
    tok = np.asarray(inputs).reshape(B, -1)
    emb = p["enc_emb"][tok]
    h = np.zeros((B, HIDDEN), np.float32)
    c = np.zeros((B, HIDDEN), np.float32)
    for t in range(emb.shape[1]):
        h, c = _np_lstm_cell(emb[:, t], h, c, p["enc_w_ih"], p["enc_w_hh"],
                             p["enc_b_ih"], p["enc_b_hh"])
    actions = np.zeros((B, ACTION_ENC, DEC_STEPS), np.float32)
    targets = np.zeros((B, TARGET_ENC, DEC_STEPS), np.float32)
    actions[:, 1, 0] = 1
    targets[:, 1, 0] = 1
    for i in range(1, DEC_STEPS):
        a_idx = actions.argmax(1)[:, i - 1]
        t_idx = targets.argmax(1)[:, i - 1]
        x = np.concatenate([p["act_emb"][a_idx], p["tgt_emb"][t_idx]], axis=-1)
        h, c = _np_lstm_cell(x, h, c, p["dec_w_ih"], p["dec_w_hh"],
                             p["dec_b_ih"], p["dec_b_hh"])
        actions[:, :, i] = h @ p["act_fc_w"].T + p["act_fc_b"]
        targets[:, :, i] = h @ p["tgt_fc_w"].T + p["tgt_fc_b"]
    return actions, targets


# ----------------------------------------- main -----------------------------------------
if __name__ == "__main__":
    key = jax.random.PRNGKey(0)
    pkey, ikey, lkey = jax.random.split(key, 3)
    params = init_params(pkey)
    packed = prepare_params(params)           # one-time weight repacking (not per-call)
    inputs = jax.random.randint(ikey, (BATCH, EP_LEN, SEQ_LEN), 0, INPUT_SIZE, jnp.int32)
    labels = jax.random.randint(lkey, (BATCH, DEC_STEPS, 2), 0, ACTION_ENC, jnp.int32)

    actions, targets = encoder_decoder_forward(inputs, labels, packed)
    actions, targets = jax.block_until_ready((actions, targets))

    ref_a, ref_t = reference_forward(inputs, labels, params)
    np.testing.assert_allclose(np.asarray(actions), ref_a, rtol=2e-2, atol=2e-3)
    np.testing.assert_allclose(np.asarray(targets), ref_t, rtol=2e-2, atol=2e-3)

    print("KERNEL_OK")
</pallas_src>

<mosaic_0001>
module attributes {stable_mosaic.version = 11 : i64} {
  func.func @encdec_kernel(%arg0: memref<8x8xi32, #tpu.memory_space<vmem>>, %arg1: memref<20x128xf32, #tpu.memory_space<vmem>>, %arg2: memref<32x128xf32, #tpu.memory_space<vmem>>, %arg3: memref<1x128xf32, #tpu.memory_space<vmem>>, %arg4: memref<128x128xf32, #tpu.memory_space<vmem>>, %arg5: memref<32x128xf32, #tpu.memory_space<vmem>>, %arg6: memref<1x128xf32, #tpu.memory_space<vmem>>, %arg7: memref<32x128xf32, #tpu.memory_space<vmem>>, %arg8: memref<1x128xf32, #tpu.memory_space<vmem>>, %arg9: memref<8x8x128xf32, #tpu.memory_space<vmem>>) attributes {dimension_semantics = [], scalar_prefetch = 0 : i64, scratch_operands = 0 : i64, tpu.core_type = #tpu.core_type<tc>} {
    %c0 = arith.constant 0 : index
    %c0_0 = arith.constant 0 : index
    %0 = vector.load %arg0[%c0, %c0_0] : memref<8x8xi32, #tpu.memory_space<vmem>>, vector<8x8xi32>
    %1 = tpu.iota {dimensions = array<i32: 1>} : vector<8x20xi32>
    %c0_1 = arith.constant 0 : index
    %c0_2 = arith.constant 0 : index
    %2 = vector.load %arg1[%c0_1, %c0_2] : memref<20x128xf32, #tpu.memory_space<vmem>>, vector<20x128xf32>
    %c0_3 = arith.constant 0 : index
    %c0_4 = arith.constant 0 : index
    %3 = vector.load %arg2[%c0_3, %c0_4] : memref<32x128xf32, #tpu.memory_space<vmem>>, vector<32x128xf32>
    %c0_5 = arith.constant 0 : index
    %c0_6 = arith.constant 0 : index
    %4 = vector.load %arg3[%c0_5, %c0_6] : memref<1x128xf32, #tpu.memory_space<vmem>>, vector<1x128xf32>
    %5 = vector.extract_strided_slice %0 {offsets = [0, 0], sizes = [8, 1], strides = [1, 1]} : vector<8x8xi32> to vector<8x1xi32>
    %6 = vector.broadcast %5 : vector<8x1xi32> to vector<8x20xi32>
    %7 = arith.cmpi eq, %6, %1 : vector<8x20xi32>
    %8 = arith.extui %7 : vector<8x20xi1> to vector<8x20xi32>
    %9 = arith.sitofp %8 : vector<8x20xi32> to vector<8x20xf32>
    %cst = arith.constant dense<0.000000e+00> : vector<8x128xf32>
    %10 = tpu.matmul %9, %2, %cst {dimension_numbers = #tpu.dot_dimension_numbers<[1], [0], [0], [1], [0, 0, 1, 1], [], []>} : vector<8x20xf32>, vector<20x128xf32>, vector<8x128xf32> -> vector<8x128xf32>
    %11 = vector.broadcast %4 : vector<1x128xf32> to vector<8x128xf32>
    %12 = arith.addf %10, %11 : vector<8x128xf32>
    %13 = vector.extract_strided_slice %0 {offsets = [0, 1], sizes = [8, 1], strides = [1, 1]} : vector<8x8xi32> to vector<8x1xi32>
    %14 = vector.broadcast %13 : vector<8x1xi32> to vector<8x20xi32>
    %15 = arith.cmpi eq, %14, %1 : vector<8x20xi32>
    %16 = arith.extui %15 : vector<8x20xi1> to vector<8x20xi32>
    %17 = arith.sitofp %16 : vector<8x20xi32> to vector<8x20xf32>
    %cst_7 = arith.constant dense<0.000000e+00> : vector<8x128xf32>
    %18 = tpu.matmul %17, %2, %cst_7 {dimension_numbers = #tpu.dot_dimension_numbers<[1], [0], [0], [1], [0, 0, 1, 1], [], []>} : vector<8x20xf32>, vector<20x128xf32>, vector<8x128xf32> -> vector<8x128xf32>
    %19 = vector.broadcast %4 : vector<1x128xf32> to vector<8x128xf32>
    %20 = arith.addf %18, %19 : vector<8x128xf32>
    %21 = vector.extract_strided_slice %0 {offsets = [0, 2], sizes = [8, 1], strides = [1, 1]} : vector<8x8xi32> to vector<8x1xi32>
    %22 = vector.broadcast %21 : vector<8x1xi32> to vector<8x20xi32>
    %23 = arith.cmpi eq, %22, %1 : vector<8x20xi32>
    %24 = arith.extui %23 : vector<8x20xi1> to vector<8x20xi32>
    %25 = arith.sitofp %24 : vector<8x20xi32> to vector<8x20xf32>
    %cst_8 = arith.constant dense<0.000000e+00> : vector<8x128xf32>
    %26 = tpu.matmul %25, %2, %cst_8 {dimension_numbers = #tpu.dot_dimension_numbers<[1], [0], [0], [1], [0, 0, 1, 1], [], []>} : vector<8x20xf32>, vector<20x128xf32>, vector<8x128xf32> -> vector<8x128xf32>
    %27 = vector.broadcast %4 : vector<1x128xf32> to vector<8x128xf32>
    %28 = arith.addf %26, %27 : vector<8x128xf32>
    %29 = vector.extract_strided_slice %0 {offsets = [0, 3], sizes = [8, 1], strides = [1, 1]} : vector<8x8xi32> to vector<8x1xi32>
    %30 = vector.broadcast %29 : vector<8x1xi32> to vector<8x20xi32>
    %31 = arith.cmpi eq, %30, %1 : vector<8x20xi32>
    %32 = arith.extui %31 : vector<8x20xi1> to vector<8x20xi32>
    %33 = arith.sitofp %32 : vector<8x20xi32> to vector<8x20xf32>
    %cst_9 = arith.constant dense<0.000000e+00> : vector<8x128xf32>
    %34 = tpu.matmul %33, %2, %cst_9 {dimension_numbers = #tpu.dot_dimension_numbers<[1], [0], [0], [1], [0, 0, 1, 1], [], []>} : vector<8x20xf32>, vector<20x128xf32>, vector<8x128xf32> -> vector<8x128xf32>
    %35 = vector.broadcast %4 : vector<1x128xf32> to vector<8x128xf32>
    %36 = arith.addf %34, %35 : vector<8x128xf32>
    %37 = vector.extract_strided_slice %0 {offsets = [0, 4], sizes = [8, 1], strides = [1, 1]} : vector<8x8xi32> to vector<8x1xi32>
    %38 = vector.broadcast %37 : vector<8x1xi32> to vector<8x20xi32>
    %39 = arith.cmpi eq, %38, %1 : vector<8x20xi32>
    %40 = arith.extui %39 : vector<8x20xi1> to vector<8x20xi32>
    %41 = arith.sitofp %40 : vector<8x20xi32> to vector<8x20xf32>
    %cst_10 = arith.constant dense<0.000000e+00> : vector<8x128xf32>
    %42 = tpu.matmul %41, %2, %cst_10 {dimension_numbers = #tpu.dot_dimension_numbers<[1], [0], [0], [1], [0, 0, 1, 1], [], []>} : vector<8x20xf32>, vector<20x128xf32>, vector<8x128xf32> -> vector<8x128xf32>
    %43 = vector.broadcast %4 : vector<1x128xf32> to vector<8x128xf32>
    %44 = arith.addf %42, %43 : vector<8x128xf32>
    %45 = vector.extract_strided_slice %0 {offsets = [0, 5], sizes = [8, 1], strides = [1, 1]} : vector<8x8xi32> to vector<8x1xi32>
    %46 = vector.broadcast %45 : vector<8x1xi32> to vector<8x20xi32>
    %47 = arith.cmpi eq, %46, %1 : vector<8x20xi32>
    %48 = arith.extui %47 : vector<8x20xi1> to vector<8x20xi32>
    %49 = arith.sitofp %48 : vector<8x20xi32> to vector<8x20xf32>
    %cst_11 = arith.constant dense<0.000000e+00> : vector<8x128xf32>
    %50 = tpu.matmul %49, %2, %cst_11 {dimension_numbers = #tpu.dot_dimension_numbers<[1], [0], [0], [1], [0, 0, 1, 1], [], []>} : vector<8x20xf32>, vector<20x128xf32>, vector<8x128xf32> -> vector<8x128xf32>
    %51 = vector.broadcast %4 : vector<1x128xf32> to vector<8x128xf32>
    %52 = arith.addf %50, %51 : vector<8x128xf32>
    %53 = vector.extract_strided_slice %0 {offsets = [0, 6], sizes = [8, 1], strides = [1, 1]} : vector<8x8xi32> to vector<8x1xi32>
    %54 = vector.broadcast %53 : vector<8x1xi32> to vector<8x20xi32>
    %55 = arith.cmpi eq, %54, %1 : vector<8x20xi32>
    %56 = arith.extui %55 : vector<8x20xi1> to vector<8x20xi32>
    %57 = arith.sitofp %56 : vector<8x20xi32> to vector<8x20xf32>
    %cst_12 = arith.constant dense<0.000000e+00> : vector<8x128xf32>
    %58 = tpu.matmul %57, %2, %cst_12 {dimension_numbers = #tpu.dot_dimension_numbers<[1], [0], [0], [1], [0, 0, 1, 1], [], []>} : vector<8x20xf32>, vector<20x128xf32>, vector<8x128xf32> -> vector<8x128xf32>
    %59 = vector.broadcast %4 : vector<1x128xf32> to vector<8x128xf32>
    %60 = arith.addf %58, %59 : vector<8x128xf32>
    %61 = vector.extract_strided_slice %0 {offsets = [0, 7], sizes = [8, 1], strides = [1, 1]} : vector<8x8xi32> to vector<8x1xi32>
    %62 = vector.broadcast %61 : vector<8x1xi32> to vector<8x20xi32>
    %63 = arith.cmpi eq, %62, %1 : vector<8x20xi32>
    %64 = arith.extui %63 : vector<8x20xi1> to vector<8x20xi32>
    %65 = arith.sitofp %64 : vector<8x20xi32> to vector<8x20xf32>
    %cst_13 = arith.constant dense<0.000000e+00> : vector<8x128xf32>
    %66 = tpu.matmul %65, %2, %cst_13 {dimension_numbers = #tpu.dot_dimension_numbers<[1], [0], [0], [1], [0, 0, 1, 1], [], []>} : vector<8x20xf32>, vector<20x128xf32>, vector<8x128xf32> -> vector<8x128xf32>
    %67 = vector.broadcast %4 : vector<1x128xf32> to vector<8x128xf32>
    %68 = arith.addf %66, %67 : vector<8x128xf32>
    %cst_14 = arith.constant 0.000000e+00 : f32
    %69 = vector.broadcast %cst_14 : f32 to vector<8x32xf32>
    %cst_15 = arith.constant 0.000000e+00 : f32
    %70 = vector.broadcast %cst_15 : f32 to vector<8x32xf32>
    %cst_16 = arith.constant dense<0.000000e+00> : vector<8x128xf32>
    %71 = tpu.matmul %69, %3, %cst_16 {dimension_numbers = #tpu.dot_dimension_numbers<[1], [0], [0], [1], [0, 0, 1, 1], [], []>} : vector<8x32xf32>, vector<32x128xf32>, vector<8x128xf32> -> vector<8x128xf32>
    %72 = arith.addf %12, %71 : vector<8x128xf32>
    %73 = vector.extract_strided_slice %72 {offsets = [0, 0], sizes = [8, 96], strides = [1, 1]} : vector<8x128xf32> to vector<8x96xf32>
    %74 = arith.negf %73 : vector<8x96xf32>
    %75 = math.exp %74 : vector<8x96xf32>
    %cst_17 = arith.constant 1.000000e+00 : f32
    %76 = vector.broadcast %cst_17 : f32 to vector<8x96xf32>
    %77 = arith.addf %76, %75 : vector<8x96xf32>
    %78 = arith.divf %76, %77 : vector<8x96xf32>
    %79 = vector.extract_strided_slice %78 {offsets = [0, 0], sizes = [8, 32], strides = [1, 1]} : vector<8x96xf32> to vector<8x32xf32>
    %80 = vector.extract_strided_slice %78 {offsets = [0, 32], sizes = [8, 32], strides = [1, 1]} : vector<8x96xf32> to vector<8x32xf32>
    %81 = vector.extract_strided_slice %78 {offsets = [0, 64], sizes = [8, 32], strides = [1, 1]} : vector<8x96xf32> to vector<8x32xf32>
    %82 = vector.extract_strided_slice %72 {offsets = [0, 96], sizes = [8, 32], strides = [1, 1]} : vector<8x128xf32> to vector<8x32xf32>
    %83 = math.tanh %82 : vector<8x32xf32>
    %84 = arith.mulf %80, %70 : vector<8x32xf32>
    %85 = arith.mulf %79, %83 : vector<8x32xf32>
    %86 = arith.addf %84, %85 : vector<8x32xf32>
    %87 = math.tanh %86 : vector<8x32xf32>
    %88 = arith.mulf %81, %87 : vector<8x32xf32>
    %cst_18 = arith.constant dense<0.000000e+00> : vector<8x128xf32>
    %89 = tpu.matmul %88, %3, %cst_18 {dimension_numbers = #tpu.dot_dimension_numbers<[1], [0], [0], [1], [0, 0, 1, 1], [], []>} : vector<8x32xf32>, vector<32x128xf32>, vector<8x128xf32> -> vector<8x128xf32>
    %90 = arith.addf %20, %89 : vector<8x128xf32>
    %91 = vector.extract_strided_slice %90 {offsets = [0, 0], sizes = [8, 96], strides = [1, 1]} : vector<8x128xf32> to vector<8x96xf32>
    %92 = arith.negf %91 : vector<8x96xf32>
    %93 = math.exp %92 : vector<8x96xf32>
    %cst_19 = arith.constant 1.000000e+00 : f32
    %94 = vector.broadcast %cst_19 : f32 to vector<8x96xf32>
    %95 = arith.addf %94, %93 : vector<8x96xf32>
    %96 = arith.divf %94, %95 : vector<8x96xf32>
    %97 = vector.extract_strided_slice %96 {offsets = [0, 0], sizes = [8, 32], strides = [1, 1]} : vector<8x96xf32> to vector<8x32xf32>
    %98 = vector.extract_strided_slice %96 {offsets = [0, 32], sizes = [8, 32], strides = [1, 1]} : vector<8x96xf32> to vector<8x32xf32>
    %99 = vector.extract_strided_slice %96 {offsets = [0, 64], sizes = [8, 32], strides = [1, 1]} : vector<8x96xf32> to vector<8x32xf32>
    %100 = vector.extract_strided_slice %90 {offsets = [0, 96], sizes = [8, 32], strides = [1, 1]} : vector<8x128xf32> to vector<8x32xf32>
    %101 = math.tanh %100 : vector<8x32xf32>
    %102 = arith.mulf %98, %86 : vector<8x32xf32>
    %103 = arith.mulf %97, %101 : vector<8x32xf32>
    %104 = arith.addf %102, %103 : vector<8x32xf32>
    %105 = math.tanh %104 : vector<8x32xf32>
    %106 = arith.mulf %99, %105 : vector<8x32xf32>
    %cst_20 = arith.constant dense<0.000000e+00> : vector<8x128xf32>
    %107 = tpu.matmul %106, %3, %cst_20 {dimension_numbers = #tpu.dot_dimension_numbers<[1], [0], [0], [1], [0, 0, 1, 1], [], []>} : vector<8x32xf32>, vector<32x128xf32>, vector<8x128xf32> -> vector<8x128xf32>
    %108 = arith.addf %28, %107 : vector<8x128xf32>
    %109 = vector.extract_strided_slice %108 {offsets = [0, 0], sizes = [8, 96], strides = [1, 1]} : vector<8x128xf32> to vector<8x96xf32>
    %110 = arith.negf %109 : vector<8x96xf32>
    %111 = math.exp %110 : vector<8x96xf32>
    %cst_21 = arith.constant 1.000000e+00 : f32
    %112 = vector.broadcast %cst_21 : f32 to vector<8x96xf32>
    %113 = arith.addf %112, %111 : vector<8x96xf32>
    %114 = arith.divf %112, %113 : vector<8x96xf32>
    %115 = vector.extract_strided_slice %114 {offsets = [0, 0], sizes = [8, 32], strides = [1, 1]} : vector<8x96xf32> to vector<8x32xf32>
    %116 = vector.extract_strided_slice %114 {offsets = [0, 32], sizes = [8, 32], strides = [1, 1]} : vector<8x96xf32> to vector<8x32xf32>
    %117 = vector.extract_strided_slice %114 {offsets = [0, 64], sizes = [8, 32], strides = [1, 1]} : vector<8x96xf32> to vector<8x32xf32>
    %118 = vector.extract_strided_slice %108 {offsets = [0, 96], sizes = [8, 32], strides = [1, 1]} : vector<8x128xf32> to vector<8x32xf32>
    %119 = math.tanh %118 : vector<8x32xf32>
    %120 = arith.mulf %116, %104 : vector<8x32xf32>
    %121 = arith.mulf %115, %119 : vector<8x32xf32>
    %122 = arith.addf %120, %121 : vector<8x32xf32>
    %123 = math.tanh %122 : vector<8x32xf32>
    %124 = arith.mulf %117, %123 : vector<8x32xf32>
    %cst_22 = arith.constant dense<0.000000e+00> : vector<8x128xf32>
    %125 = tpu.matmul %124, %3, %cst_22 {dimension_numbers = #tpu.dot_dimension_numbers<[1], [0], [0], [1], [0, 0, 1, 1], [], []>} : vector<8x32xf32>, vector<32x128xf32>, vector<8x128xf32> -> vector<8x128xf32>
    %126 = arith.addf %36, %125 : vector<8x128xf32>
    %127 = vector.extract_strided_slice %126 {offsets = [0, 0], sizes = [8, 96], strides = [1, 1]} : vector<8x128xf32> to vector<8x96xf32>
    %128 = arith.negf %127 : vector<8x96xf32>
    %129 = math.exp %128 : vector<8x96xf32>
    %cst_23 = arith.constant 1.000000e+00 : f32
    %130 = vector.broadcast %cst_23 : f32 to vector<8x96xf32>
    %131 = arith.addf %130, %129 : vector<8x96xf32>
    %132 = arith.divf %130, %131 : vector<8x96xf32>
    %133 = vector.extract_strided_slice %132 {offsets = [0, 0], sizes = [8, 32], strides = [1, 1]} : vector<8x96xf32> to vector<8x32xf32>
    %134 = vector.extract_strided_slice %132 {offsets = [0, 32], sizes = [8, 32], strides = [1, 1]} : vector<8x96xf32> to vector<8x32xf32>
    %135 = vector.extract_strided_slice %132 {offsets = [0, 64], sizes = [8, 32], strides = [1, 1]} : vector<8x96xf32> to vector<8x32xf32>
    %136 = vector.extract_strided_slice %126 {offsets = [0, 96], sizes = [8, 32], strides = [1, 1]} : vector<8x128xf32> to vector<8x32xf32>
    %137 = math.tanh %136 : vector<8x32xf32>
    %138 = arith.mulf %134, %122 : vector<8x32xf32>
    %139 = arith.mulf %133, %137 : vector<8x32xf32>
    %140 = arith.addf %138, %139 : vector<8x32xf32>
    %141 = math.tanh %140 : vector<8x32xf32>
    %142 = arith.mulf %135, %141 : vector<8x32xf32>
    %cst_24 = arith.constant dense<0.000000e+00> : vector<8x128xf32>
    %143 = tpu.matmul %142, %3, %cst_24 {dimension_numbers = #tpu.dot_dimension_numbers<[1], [0], [0], [1], [0, 0, 1, 1], [], []>} : vector<8x32xf32>, vector<32x128xf32>, vector<8x128xf32> -> vector<8x128xf32>
    %144 = arith.addf %44, %143 : vector<8x128xf32>
    %145 = vector.extract_strided_slice %144 {offsets = [0, 0], sizes = [8, 96], strides = [1, 1]} : vector<8x128xf32> to vector<8x96xf32>
    %146 = arith.negf %145 : vector<8x96xf32>
    %147 = math.exp %146 : vector<8x96xf32>
    %cst_25 = arith.constant 1.000000e+00 : f32
    %148 = vector.broadcast %cst_25 : f32 to vector<8x96xf32>
    %149 = arith.addf %148, %147 : vector<8x96xf32>
    %150 = arith.divf %148, %149 : vector<8x96xf32>
    %151 = vector.extract_strided_slice %150 {offsets = [0, 0], sizes = [8, 32], strides = [1, 1]} : vector<8x96xf32> to vector<8x32xf32>
    %152 = vector.extract_strided_slice %150 {offsets = [0, 32], sizes = [8, 32], strides = [1, 1]} : vector<8x96xf32> to vector<8x32xf32>
    %153 = vector.extract_strided_slice %150 {offsets = [0, 64], sizes = [8, 32], strides = [1, 1]} : vector<8x96xf32> to vector<8x32xf32>
    %154 = vector.extract_strided_slice %144 {offsets = [0, 96], sizes = [8, 32], strides = [1, 1]} : vector<8x128xf32> to vector<8x32xf32>
    %155 = math.tanh %154 : vector<8x32xf32>
    %156 = arith.mulf %152, %140 : vector<8x32xf32>
    %157 = arith.mulf %151, %155 : vector<8x32xf32>
    %158 = arith.addf %156, %157 : vector<8x32xf32>
    %159 = math.tanh %158 : vector<8x32xf32>
    %160 = arith.mulf %153, %159 : vector<8x32xf32>
    %cst_26 = arith.constant dense<0.000000e+00> : vector<8x128xf32>
    %161 = tpu.matmul %160, %3, %cst_26 {dimension_numbers = #tpu.dot_dimension_numbers<[1], [0], [0], [1], [0, 0, 1, 1], [], []>} : vector<8x32xf32>, vector<32x128xf32>, vector<8x128xf32> -> vector<8x128xf32>
    %162 = arith.addf %52, %161 : vector<8x128xf32>
    %163 = vector.extract_strided_slice %162 {offsets = [0, 0], sizes = [8, 96], strides = [1, 1]} : vector<8x128xf32> to vector<8x96xf32>
    %164 = arith.negf %163 : vector<8x96xf32>
    %165 = math.exp %164 : vector<8x96xf32>
    %cst_27 = arith.constant 1.000000e+00 : f32
    %166 = vector.broadcast %cst_27 : f32 to vector<8x96xf32>
    %167 = arith.addf %166, %165 : vector<8x96xf32>
    %168 = arith.divf %166, %167 : vector<8x96xf32>
    %169 = vector.extract_strided_slice %168 {offsets = [0, 0], sizes = [8, 32], strides = [1, 1]} : vector<8x96xf32> to vector<8x32xf32>
    %170 = vector.extract_strided_slice %168 {offsets = [0, 32], sizes = [8, 32], strides = [1, 1]} : vector<8x96xf32> to vector<8x32xf32>
    %171 = vector.extract_strided_slice %168 {offsets = [0, 64], sizes = [8, 32], strides = [1, 1]} : vector<8x96xf32> to vector<8x32xf32>
    %172 = vector.extract_strided_slice %162 {offsets = [0, 96], sizes = [8, 32], strides = [1, 1]} : vector<8x128xf32> to vector<8x32xf32>
    %173 = math.tanh %172 : vector<8x32xf32>
    %174 = arith.mulf %170, %158 : vector<8x32xf32>
    %175 = arith.mulf %169, %173 : vector<8x32xf32>
    %176 = arith.addf %174, %175 : vector<8x32xf32>
    %177 = math.tanh %176 : vector<8x32xf32>
    %178 = arith.mulf %171, %177 : vector<8x32xf32>
    %cst_28 = arith.constant dense<0.000000e+00> : vector<8x128xf32>
    %179 = tpu.matmul %178, %3, %cst_28 {dimension_numbers = #tpu.dot_dimension_numbers<[1], [0], [0], [1], [0, 0, 1, 1], [], []>} : vector<8x32xf32>, vector<32x128xf32>, vector<8x128xf32> -> vector<8x128xf32>
    %180 = arith.addf %60, %179 : vector<8x128xf32>
    %181 = vector.extract_strided_slice %180 {offsets = [0, 0], sizes = [8, 96], strides = [1, 1]} : vector<8x128xf32> to vector<8x96xf32>
    %182 = arith.negf %181 : vector<8x96xf32>
    %183 = math.exp %182 : vector<8x96xf32>
    %cst_29 = arith.constant 1.000000e+00 : f32
    %184 = vector.broadcast %cst_29 : f32 to vector<8x96xf32>
    %185 = arith.addf %184, %183 : vector<8x96xf32>
    %186 = arith.divf %184, %185 : vector<8x96xf32>
    %187 = vector.extract_strided_slice %186 {offsets = [0, 0], sizes = [8, 32], strides = [1, 1]} : vector<8x96xf32> to vector<8x32xf32>
    %188 = vector.extract_strided_slice %186 {offsets = [0, 32], sizes = [8, 32], strides = [1, 1]} : vector<8x96xf32> to vector<8x32xf32>
    %189 = vector.extract_strided_slice %186 {offsets = [0, 64], sizes = [8, 32], strides = [1, 1]} : vector<8x96xf32> to vector<8x32xf32>
    %190 = vector.extract_strided_slice %180 {offsets = [0, 96], sizes = [8, 32], strides = [1, 1]} : vector<8x128xf32> to vector<8x32xf32>
    %191 = math.tanh %190 : vector<8x32xf32>
    %192 = arith.mulf %188, %176 : vector<8x32xf32>
    %193 = arith.mulf %187, %191 : vector<8x32xf32>
    %194 = arith.addf %192, %193 : vector<8x32xf32>
    %195 = math.tanh %194 : vector<8x32xf32>
    %196 = arith.mulf %189, %195 : vector<8x32xf32>
    %cst_30 = arith.constant dense<0.000000e+00> : vector<8x128xf32>
    %197 = tpu.matmul %196, %3, %cst_30 {dimension_numbers = #tpu.dot_dimension_numbers<[1], [0], [0], [1], [0, 0, 1, 1], [], []>} : vector<8x32xf32>, vector<32x128xf32>, vector<8x128xf32> -> vector<8x128xf32>
    %198 = arith.addf %68, %197 : vector<8x128xf32>
    %199 = vector.extract_strided_slice %198 {offsets = [0, 0], sizes = [8, 96], strides = [1, 1]} : vector<8x128xf32> to vector<8x96xf32>
    %200 = arith.negf %199 : vector<8x96xf32>
    %201 = math.exp %200 : vector<8x96xf32>
    %cst_31 = arith.constant 1.000000e+00 : f32
    %202 = vector.broadcast %cst_31 : f32 to vector<8x96xf32>
    %203 = arith.addf %202, %201 : vector<8x96xf32>
    %204 = arith.divf %202, %203 : vector<8x96xf32>
    %205 = vector.extract_strided_slice %204 {offsets = [0, 0], sizes = [8, 32], strides = [1, 1]} : vector<8x96xf32> to vector<8x32xf32>
    %206 = vector.extract_strided_slice %204 {offsets = [0, 32], sizes = [8, 32], strides = [1, 1]} : vector<8x96xf32> to vector<8x32xf32>
    %207 = vector.extract_strided_slice %204 {offsets = [0, 64], sizes = [8, 32], strides = [1, 1]} : vector<8x96xf32> to vector<8x32xf32>
    %208 = vector.extract_strided_slice %198 {offsets = [0, 96], sizes = [8, 32], strides = [1, 1]} : vector<8x128xf32> to vector<8x32xf32>
    %209 = math.tanh %208 : vector<8x32xf32>
    %210 = arith.mulf %206, %194 : vector<8x32xf32>
    %211 = arith.mulf %205, %209 : vector<8x32xf32>
    %212 = arith.addf %210, %211 : vector<8x32xf32>
    %213 = math.tanh %212 : vector<8x32xf32>
    %214 = arith.mulf %207, %213 : vector<8x32xf32>
    %c0_32 = arith.constant 0 : index
    %c0_33 = arith.constant 0 : index
    %215 = vector.load %arg4[%c0_32, %c0_33] : memref<128x128xf32, #tpu.memory_space<vmem>>, vector<128x128xf32>
    %c0_34 = arith.constant 0 : index
    %c0_35 = arith.constant 0 : index
    %216 = vector.load %arg5[%c0_34, %c0_35] : memref<32x128xf32, #tpu.memory_space<vmem>>, vector<32x128xf32>
    %c0_36 = arith.constant 0 : index
    %c0_37 = arith.constant 0 : index
    %217 = vector.load %arg6[%c0_36, %c0_37] : memref<1x128xf32, #tpu.memory_space<vmem>>, vector<1x128xf32>
    %c0_38 = arith.constant 0 : index
    %c0_39 = arith.constant 0 : index
    %218 = vector.load %arg7[%c0_38, %c0_39] : memref<32x128xf32, #tpu.memory_space<vmem>>, vector<32x128xf32>
    %c0_40 = arith.constant 0 : index
    %c0_41 = arith.constant 0 : index
    %219 = vector.load %arg8[%c0_40, %c0_41] : memref<1x128xf32, #tpu.memory_space<vmem>>, vector<1x128xf32>
    %220 = tpu.iota {dimensions = array<i32: 1>} : vector<8x128xi32>
    %c5_i32 = arith.constant 5 : i32
    %221 = vector.broadcast %c5_i32 : i32 to vector<8x128xi32>
    %222 = arith.cmpi slt, %220, %221 : vector<8x128xi32>
    %c5_i32_42 = arith.constant 5 : i32
    %223 = vector.broadcast %c5_i32_42 : i32 to vector<8x128xi32>
    %224 = arith.cmpi sge, %220, %223 : vector<8x128xi32>
    %c15_i32 = arith.constant 15 : i32
    %225 = vector.broadcast %c15_i32 : i32 to vector<8x128xi32>
    %226 = arith.cmpi slt, %220, %225 : vector<8x128xi32>
    %227 = arith.andi %224, %226 : vector<8x128xi1>
    %c1_i32 = arith.constant 1 : i32
    %228 = vector.broadcast %c1_i32 : i32 to vector<8x1xi32>
    %c6_i32 = arith.constant 6 : i32
    %229 = vector.broadcast %c6_i32 : i32 to vector<8x1xi32>
    %230 = vector.broadcast %228 : vector<8x1xi32> to vector<8x128xi32>
    %231 = arith.cmpi eq, %220, %230 : vector<8x128xi32>
    %232 = vector.broadcast %229 : vector<8x1xi32> to vector<8x128xi32>
    %233 = arith.cmpi eq, %220, %232 : vector<8x128xi32>
    %234 = arith.ori %231, %233 : vector<8x128xi1>
    %235 = arith.extui %234 : vector<8x128xi1> to vector<8x128xi32>
    %236 = arith.sitofp %235 : vector<8x128xi32> to vector<8x128xf32>
    %c0_43 = arith.constant 0 : index
    %c0_44 = arith.constant 0 : index
    %c0_45 = arith.constant 0 : index
    %237 = vector.load %arg9[%c0_43, %c0_44, %c0_45] : memref<8x8x128xf32, #tpu.memory_space<vmem>>, vector<1x8x128xf32>
    %238 = vector.shape_cast %237 : vector<1x8x128xf32> to vector<8x128xf32>
    %239 = vector.shape_cast %236 : vector<8x128xf32> to vector<1x8x128xf32>
    tpu.vector_store %arg9[%c0_43, %c0_44, %c0_45], %239 {strides = array<i32>} : memref<8x8x128xf32, #tpu.memory_space<vmem>>, vector<1x8x128xf32>,
    %cst_46 = arith.constant dense<0.000000e+00> : vector<8x128xf32>
    %240 = tpu.matmul %236, %215, %cst_46 {dimension_numbers = #tpu.dot_dimension_numbers<[1], [0], [0], [1], [0, 0, 1, 1], [], []>} : vector<8x128xf32>, vector<128x128xf32>, vector<8x128xf32> -> vector<8x128xf32>
    %cst_47 = arith.constant dense<0.000000e+00> : vector<8x128xf32>
    %241 = tpu.matmul %214, %216, %cst_47 {dimension_numbers = #tpu.dot_dimension_numbers<[1], [0], [0], [1], [0, 0, 1, 1], [], []>} : vector<8x32xf32>, vector<32x128xf32>, vector<8x128xf32> -> vector<8x128xf32>
    %242 = arith.addf %240, %241 : vector<8x128xf32>
    %243 = vector.broadcast %217 : vector<1x128xf32> to vector<8x128xf32>
    %244 = arith.addf %242, %243 : vector<8x128xf32>
    %245 = vector.extract_strided_slice %244 {offsets = [0, 0], sizes = [8, 96], strides = [1, 1]} : vector<8x128xf32> to vector<8x96xf32>
    %246 = arith.negf %245 : vector<8x96xf32>
    %247 = math.exp %246 : vector<8x96xf32>
    %cst_48 = arith.constant 1.000000e+00 : f32
    %248 = vector.broadcast %cst_48 : f32 to vector<8x96xf32>
    %249 = arith.addf %248, %247 : vector<8x96xf32>
    %250 = arith.divf %248, %249 : vector<8x96xf32>
    %251 = vector.extract_strided_slice %250 {offsets = [0, 0], sizes = [8, 32], strides = [1, 1]} : vector<8x96xf32> to vector<8x32xf32>
    %252 = vector.extract_strided_slice %250 {offsets = [0, 32], sizes = [8, 32], strides = [1, 1]} : vector<8x96xf32> to vector<8x32xf32>
    %253 = vector.extract_strided_slice %250 {offsets = [0, 64], sizes = [8, 32], strides = [1, 1]} : vector<8x96xf32> to vector<8x32xf32>
    %254 = vector.extract_strided_slice %244 {offsets = [0, 96], sizes = [8, 32], strides = [1, 1]} : vector<8x128xf32> to vector<8x32xf32>
    %255 = math.tanh %254 : vector<8x32xf32>
    %256 = arith.mulf %252, %212 : vector<8x32xf32>
    %257 = arith.mulf %251, %255 : vector<8x32xf32>
    %258 = arith.addf %256, %257 : vector<8x32xf32>
    %259 = math.tanh %258 : vector<8x32xf32>
    %260 = arith.mulf %253, %259 : vector<8x32xf32>
    %cst_49 = arith.constant dense<0.000000e+00> : vector<8x128xf32>
    %261 = tpu.matmul %260, %218, %cst_49 {dimension_numbers = #tpu.dot_dimension_numbers<[1], [0], [0], [1], [0, 0, 1, 1], [], []>} : vector<8x32xf32>, vector<32x128xf32>, vector<8x128xf32> -> vector<8x128xf32>
    %262 = vector.broadcast %219 : vector<1x128xf32> to vector<8x128xf32>
    %263 = arith.addf %261, %262 : vector<8x128xf32>
    %c1 = arith.constant 1 : index
    %c0_50 = arith.constant 0 : index
    %c0_51 = arith.constant 0 : index
    %264 = vector.load %arg9[%c1, %c0_50, %c0_51] : memref<8x8x128xf32, #tpu.memory_space<vmem>>, vector<1x8x128xf32>
    %265 = vector.shape_cast %264 : vector<1x8x128xf32> to vector<8x128xf32>
    %266 = vector.shape_cast %263 : vector<8x128xf32> to vector<1x8x128xf32>
    tpu.vector_store %arg9[%c1, %c0_50, %c0_51], %266 {strides = array<i32>} : memref<8x8x128xf32, #tpu.memory_space<vmem>>, vector<1x8x128xf32>,
    %cst_52 = arith.constant 0xFF800000 : f32
    %267 = vector.broadcast %cst_52 : f32 to vector<8x128xf32>
    %268 = arith.select %222, %263, %267 : vector<8x128xi1>, vector<8x128xf32>
    %cst_53 = arith.constant dense<0xFF800000> : vector<8xf32>
    %269 = vector.multi_reduction <maximumf>, %268, %cst_53 [1] : vector<8x128xf32> to vector<8xf32>
    %270 = vector.shape_cast %269 : vector<8xf32> to vector<8x1xf32>
    %271 = vector.broadcast %270 : vector<8x1xf32> to vector<8x128xf32>
    %272 = arith.cmpf oeq, %268, %271 : vector<8x128xf32>
    %c128_i32 = arith.constant 128 : i32
    %273 = vector.broadcast %c128_i32 : i32 to vector<8x128xi32>
    %274 = arith.select %272, %220, %273 : vector<8x128xi1>, vector<8x128xi32>
    %cst_54 = arith.constant dense<2147483647> : vector<8xi32>
    %275 = vector.multi_reduction <minsi>, %274, %cst_54 [1] : vector<8x128xi32> to vector<8xi32>
    %276 = vector.shape_cast %275 : vector<8xi32> to vector<8x1xi32>
    %cst_55 = arith.constant 0xFF800000 : f32
    %277 = vector.broadcast %cst_55 : f32 to vector<8x128xf32>
    %278 = arith.select %227, %263, %277 : vector<8x128xi1>, vector<8x128xf32>
    %cst_56 = arith.constant dense<0xFF800000> : vector<8xf32>
    %279 = vector.multi_reduction <maximumf>, %278, %cst_56 [1] : vector<8x128xf32> to vector<8xf32>
    %280 = vector.shape_cast %279 : vector<8xf32> to vector<8x1xf32>
    %281 = vector.broadcast %280 : vector<8x1xf32> to vector<8x128xf32>
    %282 = arith.cmpf oeq, %278, %281 : vector<8x128xf32>
    %c128_i32_57 = arith.constant 128 : i32
    %283 = vector.broadcast %c128_i32_57 : i32 to vector<8x128xi32>
    %284 = arith.select %282, %220, %283 : vector<8x128xi1>, vector<8x128xi32>
    %cst_58 = arith.constant dense<2147483647> : vector<8xi32>
    %285 = vector.multi_reduction <minsi>, %284, %cst_58 [1] : vector<8x128xi32> to vector<8xi32>
    %286 = vector.shape_cast %285 : vector<8xi32> to vector<8x1xi32>
    %287 = vector.broadcast %276 : vector<8x1xi32> to vector<8x128xi32>
    %288 = arith.cmpi eq, %220, %287 : vector<8x128xi32>
    %289 = vector.broadcast %286 : vector<8x1xi32> to vector<8x128xi32>
    %290 = arith.cmpi eq, %220, %289 : vector<8x128xi32>
    %291 = arith.ori %288, %290 : vector<8x128xi1>
    %292 = arith.extui %291 : vector<8x128xi1> to vector<8x128xi32>
    %293 = arith.sitofp %292 : vector<8x128xi32> to vector<8x128xf32>
    %cst_59 = arith.constant dense<0.000000e+00> : vector<8x128xf32>
    %294 = tpu.matmul %293, %215, %cst_59 {dimension_numbers = #tpu.dot_dimension_numbers<[1], [0], [0], [1], [0, 0, 1, 1], [], []>} : vector<8x128xf32>, vector<128x128xf32>, vector<8x128xf32> -> vector<8x128xf32>
    %cst_60 = arith.constant dense<0.000000e+00> : vector<8x128xf32>
    %295 = tpu.matmul %260, %216, %cst_60 {dimension_numbers = #tpu.dot_dimension_numbers<[1], [0], [0], [1], [0, 0, 1, 1], [], []>} : vector<8x32xf32>, vector<32x128xf32>, vector<8x128xf32> -> vector<8x128xf32>
    %296 = arith.addf %294, %295 : vector<8x128xf32>
    %297 = vector.broadcast %217 : vector<1x128xf32> to vector<8x128xf32>
    %298 = arith.addf %296, %297 : vector<8x128xf32>
    %299 = vector.extract_strided_slice %298 {offsets = [0, 0], sizes = [8, 96], strides = [1, 1]} : vector<8x128xf32> to vector<8x96xf32>
    %300 = arith.negf %299 : vector<8x96xf32>
    %301 = math.exp %300 : vector<8x96xf32>
    %cst_61 = arith.constant 1.000000e+00 : f32
    %302 = vector.broadcast %cst_61 : f32 to vector<8x96xf32>
    %303 = arith.addf %302, %301 : vector<8x96xf32>
    %304 = arith.divf %302, %303 : vector<8x96xf32>
    %305 = vector.extract_strided_slice %304 {offsets = [0, 0], sizes = [8, 32], strides = [1, 1]} : vector<8x96xf32> to vector<8x32xf32>
    %306 = vector.extract_strided_slice %304 {offsets = [0, 32], sizes = [8, 32], strides = [1, 1]} : vector<8x96xf32> to vector<8x32xf32>
    %307 = vector.extract_strided_slice %304 {offsets = [0, 64], sizes = [8, 32], strides = [1, 1]} : vector<8x96xf32> to vector<8x32xf32>
    %308 = vector.extract_strided_slice %298 {offsets = [0, 96], sizes = [8, 32], strides = [1, 1]} : vector<8x128xf32> to vector<8x32xf32>
    %309 = math.tanh %308 : vector<8x32xf32>
    %310 = arith.mulf %306, %258 : vector<8x32xf32>
    %311 = arith.mulf %305, %309 : vector<8x32xf32>
    %312 = arith.addf %310, %311 : vector<8x32xf32>
    %313 = math.tanh %312 : vector<8x32xf32>
    %314 = arith.mulf %307, %313 : vector<8x32xf32>
    %cst_62 = arith.constant dense<0.000000e+00> : vector<8x128xf32>
    %315 = tpu.matmul %314, %218, %cst_62 {dimension_numbers = #tpu.dot_dimension_numbers<[1], [0], [0], [1], [0, 0, 1, 1], [], []>} : vector<8x32xf32>, vector<32x128xf32>, vector<8x128xf32> -> vector<8x128xf32>
    %316 = vector.broadcast %219 : vector<1x128xf32> to vector<8x128xf32>
    %317 = arith.addf %315, %316 : vector<8x128xf32>
    %c2 = arith.constant 2 : index
    %c0_63 = arith.constant 0 : index
    %c0_64 = arith.constant 0 : index
    %318 = vector.load %arg9[%c2, %c0_63, %c0_64] : memref<8x8x128xf32, #tpu.memory_space<vmem>>, vector<1x8x128xf32>
    %319 = vector.shape_cast %318 : vector<1x8x128xf32> to vector<8x128xf32>
    %320 = vector.shape_cast %317 : vector<8x128xf32> to vector<1x8x128xf32>
    tpu.vector_store %arg9[%c2, %c0_63, %c0_64], %320 {strides = array<i32>} : memref<8x8x128xf32, #tpu.memory_space<vmem>>, vector<1x8x128xf32>,
    %cst_65 = arith.constant 0xFF800000 : f32
    %321 = vector.broadcast %cst_65 : f32 to vector<8x128xf32>
    %322 = arith.select %222, %317, %321 : vector<8x128xi1>, vector<8x128xf32>
    %cst_66 = arith.constant dense<0xFF800000> : vector<8xf32>
    %323 = vector.multi_reduction <maximumf>, %322, %cst_66 [1] : vector<8x128xf32> to vector<8xf32>
    %324 = vector.shape_cast %323 : vector<8xf32> to vector<8x1xf32>
    %325 = vector.broadcast %324 : vector<8x1xf32> to vector<8x128xf32>
    %326 = arith.cmpf oeq, %322, %325 : vector<8x128xf32>
    %c128_i32_67 = arith.constant 128 : i32
    %327 = vector.broadcast %c128_i32_67 : i32 to vector<8x128xi32>
    %328 = arith.select %326, %220, %327 : vector<8x128xi1>, vector<8x128xi32>
    %cst_68 = arith.constant dense<2147483647> : vector<8xi32>
    %329 = vector.multi_reduction <minsi>, %328, %cst_68 [1] : vector<8x128xi32> to vector<8xi32>
    %330 = vector.shape_cast %329 : vector<8xi32> to vector<8x1xi32>
    %cst_69 = arith.constant 0xFF800000 : f32
    %331 = vector.broadcast %cst_69 : f32 to vector<8x128xf32>
    %332 = arith.select %227, %317, %331 : vector<8x128xi1>, vector<8x128xf32>
    %cst_70 = arith.constant dense<0xFF800000> : vector<8xf32>
    %333 = vector.multi_reduction <maximumf>, %332, %cst_70 [1] : vector<8x128xf32> to vector<8xf32>
    %334 = vector.shape_cast %333 : vector<8xf32> to vector<8x1xf32>
    %335 = vector.broadcast %334 : vector<8x1xf32> to vector<8x128xf32>
    %336 = arith.cmpf oeq, %332, %335 : vector<8x128xf32>
    %c128_i32_71 = arith.constant 128 : i32
    %337 = vector.broadcast %c128_i32_71 : i32 to vector<8x128xi32>
    %338 = arith.select %336, %220, %337 : vector<8x128xi1>, vector<8x128xi32>
    %cst_72 = arith.constant dense<2147483647> : vector<8xi32>
    %339 = vector.multi_reduction <minsi>, %338, %cst_72 [1] : vector<8x128xi32> to vector<8xi32>
    %340 = vector.shape_cast %339 : vector<8xi32> to vector<8x1xi32>
    %341 = vector.broadcast %330 : vector<8x1xi32> to vector<8x128xi32>
    %342 = arith.cmpi eq, %220, %341 : vector<8x128xi32>
    %343 = vector.broadcast %340 : vector<8x1xi32> to vector<8x128xi32>
    %344 = arith.cmpi eq, %220, %343 : vector<8x128xi32>
    %345 = arith.ori %342, %344 : vector<8x128xi1>
    %346 = arith.extui %345 : vector<8x128xi1> to vector<8x128xi32>
    %347 = arith.sitofp %346 : vector<8x128xi32> to vector<8x128xf32>
    %cst_73 = arith.constant dense<0.000000e+00> : vector<8x128xf32>
    %348 = tpu.matmul %347, %215, %cst_73 {dimension_numbers = #tpu.dot_dimension_numbers<[1], [0], [0], [1], [0, 0, 1, 1], [], []>} : vector<8x128xf32>, vector<128x128xf32>, vector<8x128xf32> -> vector<8x128xf32>
    %cst_74 = arith.constant dense<0.000000e+00> : vector<8x128xf32>
    %349 = tpu.matmul %314, %216, %cst_74 {dimension_numbers = #tpu.dot_dimension_numbers<[1], [0], [0], [1], [0, 0, 1, 1], [], []>} : vector<8x32xf32>, vector<32x128xf32>, vector<8x128xf32> -> vector<8x128xf32>
    %350 = arith.addf %348, %349 : vector<8x128xf32>
    %351 = vector.broadcast %217 : vector<1x128xf32> to vector<8x128xf32>
    %352 = arith.addf %350, %351 : vector<8x128xf32>
    %353 = vector.extract_strided_slice %352 {offsets = [0, 0], sizes = [8, 96], strides = [1, 1]} : vector<8x128xf32> to vector<8x96xf32>
    %354 = arith.negf %353 : vector<8x96xf32>
    %355 = math.exp %354 : vector<8x96xf32>
    %cst_75 = arith.constant 1.000000e+00 : f32
    %356 = vector.broadcast %cst_75 : f32 to vector<8x96xf32>
    %357 = arith.addf %356, %355 : vector<8x96xf32>
    %358 = arith.divf %356, %357 : vector<8x96xf32>
    %359 = vector.extract_strided_slice %358 {offsets = [0, 0], sizes = [8, 32], strides = [1, 1]} : vector<8x96xf32> to vector<8x32xf32>
    %360 = vector.extract_strided_slice %358 {offsets = [0, 32], sizes = [8, 32], strides = [1, 1]} : vector<8x96xf32> to vector<8x32xf32>
    %361 = vector.extract_strided_slice %358 {offsets = [0, 64], sizes = [8, 32], strides = [1, 1]} : vector<8x96xf32> to vector<8x32xf32>
    %362 = vector.extract_strided_slice %352 {offsets = [0, 96], sizes = [8, 32], strides = [1, 1]} : vector<8x128xf32> to vector<8x32xf32>
    %363 = math.tanh %362 : vector<8x32xf32>
    %364 = arith.mulf %360, %312 : vector<8x32xf32>
    %365 = arith.mulf %359, %363 : vector<8x32xf32>
    %366 = arith.addf %364, %365 : vector<8x32xf32>
    %367 = math.tanh %366 : vector<8x32xf32>
    %368 = arith.mulf %361, %367 : vector<8x32xf32>
    %cst_76 = arith.constant dense<0.000000e+00> : vector<8x128xf32>
    %369 = tpu.matmul %368, %218, %cst_76 {dimension_numbers = #tpu.dot_dimension_numbers<[1], [0], [0], [1], [0, 0, 1, 1], [], []>} : vector<8x32xf32>, vector<32x128xf32>, vector<8x128xf32> -> vector<8x128xf32>
    %370 = vector.broadcast %219 : vector<1x128xf32> to vector<8x128xf32>
    %371 = arith.addf %369, %370 : vector<8x128xf32>
    %c3 = arith.constant 3 : index
    %c0_77 = arith.constant 0 : index
    %c0_78 = arith.constant 0 : index
    %372 = vector.load %arg9[%c3, %c0_77, %c0_78] : memref<8x8x128xf32, #tpu.memory_space<vmem>>, vector<1x8x128xf32>
    %373 = vector.shape_cast %372 : vector<1x8x128xf32> to vector<8x128xf32>
    %374 = vector.shape_cast %371 : vector<8x128xf32> to vector<1x8x128xf32>
    tpu.vector_store %arg9[%c3, %c0_77, %c0_78], %374 {strides = array<i32>} : memref<8x8x128xf32, #tpu.memory_space<vmem>>, vector<1x8x128xf32>,
    %cst_79 = arith.constant 0xFF800000 : f32
    %375 = vector.broadcast %cst_79 : f32 to vector<8x128xf32>
    %376 = arith.select %222, %371, %375 : vector<8x128xi1>, vector<8x128xf32>
    %cst_80 = arith.constant dense<0xFF800000> : vector<8xf32>
    %377 = vector.multi_reduction <maximumf>, %376, %cst_80 [1] : vector<8x128xf32> to vector<8xf32>
    %378 = vector.shape_cast %377 : vector<8xf32> to vector<8x1xf32>
    %379 = vector.broadcast %378 : vector<8x1xf32> to vector<8x128xf32>
    %380 = arith.cmpf oeq, %376, %379 : vector<8x128xf32>
    %c128_i32_81 = arith.constant 128 : i32
    %381 = vector.broadcast %c128_i32_81 : i32 to vector<8x128xi32>
    %382 = arith.select %380, %220, %381 : vector<8x128xi1>, vector<8x128xi32>
    %cst_82 = arith.constant dense<2147483647> : vector<8xi32>
    %383 = vector.multi_reduction <minsi>, %382, %cst_82 [1] : vector<8x128xi32> to vector<8xi32>
    %384 = vector.shape_cast %383 : vector<8xi32> to vector<8x1xi32>
    %cst_83 = arith.constant 0xFF800000 : f32
    %385 = vector.broadcast %cst_83 : f32 to vector<8x128xf32>
    %386 = arith.select %227, %371, %385 : vector<8x128xi1>, vector<8x128xf32>
    %cst_84 = arith.constant dense<0xFF800000> : vector<8xf32>
    %387 = vector.multi_reduction <maximumf>, %386, %cst_84 [1] : vector<8x128xf32> to vector<8xf32>
    %388 = vector.shape_cast %387 : vector<8xf32> to vector<8x1xf32>
    %389 = vector.broadcast %388 : vector<8x1xf32> to vector<8x128xf32>
    %390 = arith.cmpf oeq, %386, %389 : vector<8x128xf32>
    %c128_i32_85 = arith.constant 128 : i32
    %391 = vector.broadcast %c128_i32_85 : i32 to vector<8x128xi32>
    %392 = arith.select %390, %220, %391 : vector<8x128xi1>, vector<8x128xi32>
    %cst_86 = arith.constant dense<2147483647> : vector<8xi32>
    %393 = vector.multi_reduction <minsi>, %392, %cst_86 [1] : vector<8x128xi32> to vector<8xi32>
    %394 = vector.shape_cast %393 : vector<8xi32> to vector<8x1xi32>
    %395 = vector.broadcast %384 : vector<8x1xi32> to vector<8x128xi32>
    %396 = arith.cmpi eq, %220, %395 : vector<8x128xi32>
    %397 = vector.broadcast %394 : vector<8x1xi32> to vector<8x128xi32>
    %398 = arith.cmpi eq, %220, %397 : vector<8x128xi32>
    %399 = arith.ori %396, %398 : vector<8x128xi1>
    %400 = arith.extui %399 : vector<8x128xi1> to vector<8x128xi32>
    %401 = arith.sitofp %400 : vector<8x128xi32> to vector<8x128xf32>
    %cst_87 = arith.constant dense<0.000000e+00> : vector<8x128xf32>
    %402 = tpu.matmul %401, %215, %cst_87 {dimension_numbers = #tpu.dot_dimension_numbers<[1], [0], [0], [1], [0, 0, 1, 1], [], []>} : vector<8x128xf32>, vector<128x128xf32>, vector<8x128xf32> -> vector<8x128xf32>
    %cst_88 = arith.constant dense<0.000000e+00> : vector<8x128xf32>
    %403 = tpu.matmul %368, %216, %cst_88 {dimension_numbers = #tpu.dot_dimension_numbers<[1], [0], [0], [1], [0, 0, 1, 1], [], []>} : vector<8x32xf32>, vector<32x128xf32>, vector<8x128xf32> -> vector<8x128xf32>
    %404 = arith.addf %402, %403 : vector<8x128xf32>
    %405 = vector.broadcast %217 : vector<1x128xf32> to vector<8x128xf32>
    %406 = arith.addf %404, %405 : vector<8x128xf32>
    %407 = vector.extract_strided_slice %406 {offsets = [0, 0], sizes = [8, 96], strides = [1, 1]} : vector<8x128xf32> to vector<8x96xf32>
    %408 = arith.negf %407 : vector<8x96xf32>
    %409 = math.exp %408 : vector<8x96xf32>
    %cst_89 = arith.constant 1.000000e+00 : f32
    %410 = vector.broadcast %cst_89 : f32 to vector<8x96xf32>
    %411 = arith.addf %410, %409 : vector<8x96xf32>
    %412 = arith.divf %410, %411 : vector<8x96xf32>
    %413 = vector.extract_strided_slice %412 {offsets = [0, 0], sizes = [8, 32], strides = [1, 1]} : vector<8x96xf32> to vector<8x32xf32>
    %414 = vector.extract_strided_slice %412 {offsets = [0, 32], sizes = [8, 32], strides = [1, 1]} : vector<8x96xf32> to vector<8x32xf32>
    %415 = vector.extract_strided_slice %412 {offsets = [0, 64], sizes = [8, 32], strides = [1, 1]} : vector<8x96xf32> to vector<8x32xf32>
    %416 = vector.extract_strided_slice %406 {offsets = [0, 96], sizes = [8, 32], strides = [1, 1]} : vector<8x128xf32> to vector<8x32xf32>
    %417 = math.tanh %416 : vector<8x32xf32>
    %418 = arith.mulf %414, %366 : vector<8x32xf32>
    %419 = arith.mulf %413, %417 : vector<8x32xf32>
    %420 = arith.addf %418, %419 : vector<8x32xf32>
    %421 = math.tanh %420 : vector<8x32xf32>
    %422 = arith.mulf %415, %421 : vector<8x32xf32>
    %cst_90 = arith.constant dense<0.000000e+00> : vector<8x128xf32>
    %423 = tpu.matmul %422, %218, %cst_90 {dimension_numbers = #tpu.dot_dimension_numbers<[1], [0], [0], [1], [0, 0, 1, 1], [], []>} : vector<8x32xf32>, vector<32x128xf32>, vector<8x128xf32> -> vector<8x128xf32>
    %424 = vector.broadcast %219 : vector<1x128xf32> to vector<8x128xf32>
    %425 = arith.addf %423, %424 : vector<8x128xf32>
    %c4 = arith.constant 4 : index
    %c0_91 = arith.constant 0 : index
    %c0_92 = arith.constant 0 : index
    %426 = vector.load %arg9[%c4, %c0_91, %c0_92] : memref<8x8x128xf32, #tpu.memory_space<vmem>>, vector<1x8x128xf32>
    %427 = vector.shape_cast %426 : vector<1x8x128xf32> to vector<8x128xf32>
    %428 = vector.shape_cast %425 : vector<8x128xf32> to vector<1x8x128xf32>
    tpu.vector_store %arg9[%c4, %c0_91, %c0_92], %428 {strides = array<i32>} : memref<8x8x128xf32, #tpu.memory_space<vmem>>, vector<1x8x128xf32>,
    %cst_93 = arith.constant 0xFF800000 : f32
    %429 = vector.broadcast %cst_93 : f32 to vector<8x128xf32>
    %430 = arith.select %222, %425, %429 : vector<8x128xi1>, vector<8x128xf32>
    %cst_94 = arith.constant dense<0xFF800000> : vector<8xf32>
    %431 = vector.multi_reduction <maximumf>, %430, %cst_94 [1] : vector<8x128xf32> to vector<8xf32>
    %432 = vector.shape_cast %431 : vector<8xf32> to vector<8x1xf32>
    %433 = vector.broadcast %432 : vector<8x1xf32> to vector<8x128xf32>
    %434 = arith.cmpf oeq, %430, %433 : vector<8x128xf32>
    %c128_i32_95 = arith.constant 128 : i32
    %435 = vector.broadcast %c128_i32_95 : i32 to vector<8x128xi32>
    %436 = arith.select %434, %220, %435 : vector<8x128xi1>, vector<8x128xi32>
    %cst_96 = arith.constant dense<2147483647> : vector<8xi32>
    %437 = vector.multi_reduction <minsi>, %436, %cst_96 [1] : vector<8x128xi32> to vector<8xi32>
    %438 = vector.shape_cast %437 : vector<8xi32> to vector<8x1xi32>
    %cst_97 = arith.constant 0xFF800000 : f32
    %439 = vector.broadcast %cst_97 : f32 to vector<8x128xf32>
    %440 = arith.select %227, %425, %439 : vector<8x128xi1>, vector<8x128xf32>
    %cst_98 = arith.constant dense<0xFF800000> : vector<8xf32>
    %441 = vector.multi_reduction <maximumf>, %440, %cst_98 [1] : vector<8x128xf32> to vector<8xf32>
    %442 = vector.shape_cast %441 : vector<8xf32> to vector<8x1xf32>
    %443 = vector.broadcast %442 : vector<8x1xf32> to vector<8x128xf32>
    %444 = arith.cmpf oeq, %440, %443 : vector<8x128xf32>
    %c128_i32_99 = arith.constant 128 : i32
    %445 = vector.broadcast %c128_i32_99 : i32 to vector<8x128xi32>
    %446 = arith.select %444, %220, %445 : vector<8x128xi1>, vector<8x128xi32>
    %cst_100 = arith.constant dense<2147483647> : vector<8xi32>
    %447 = vector.multi_reduction <minsi>, %446, %cst_100 [1] : vector<8x128xi32> to vector<8xi32>
    %448 = vector.shape_cast %447 : vector<8xi32> to vector<8x1xi32>
    %449 = vector.broadcast %438 : vector<8x1xi32> to vector<8x128xi32>
    %450 = arith.cmpi eq, %220, %449 : vector<8x128xi32>
    %451 = vector.broadcast %448 : vector<8x1xi32> to vector<8x128xi32>
    %452 = arith.cmpi eq, %220, %451 : vector<8x128xi32>
    %453 = arith.ori %450, %452 : vector<8x128xi1>
    %454 = arith.extui %453 : vector<8x128xi1> to vector<8x128xi32>
    %455 = arith.sitofp %454 : vector<8x128xi32> to vector<8x128xf32>
    %cst_101 = arith.constant dense<0.000000e+00> : vector<8x128xf32>
    %456 = tpu.matmul %455, %215, %cst_101 {dimension_numbers = #tpu.dot_dimension_numbers<[1], [0], [0], [1], [0, 0, 1, 1], [], []>} : vector<8x128xf32>, vector<128x128xf32>, vector<8x128xf32> -> vector<8x128xf32>
    %cst_102 = arith.constant dense<0.000000e+00> : vector<8x128xf32>
    %457 = tpu.matmul %422, %216, %cst_102 {dimension_numbers = #tpu.dot_dimension_numbers<[1], [0], [0], [1], [0, 0, 1, 1], [], []>} : vector<8x32xf32>, vector<32x128xf32>, vector<8x128xf32> -> vector<8x128xf32>
    %458 = arith.addf %456, %457 : vector<8x128xf32>
    %459 = vector.broadcast %217 : vector<1x128xf32> to vector<8x128xf32>
    %460 = arith.addf %458, %459 : vector<8x128xf32>
    %461 = vector.extract_strided_slice %460 {offsets = [0, 0], sizes = [8, 96], strides = [1, 1]} : vector<8x128xf32> to vector<8x96xf32>
    %462 = arith.negf %461 : vector<8x96xf32>
    %463 = math.exp %462 : vector<8x96xf32>
    %cst_103 = arith.constant 1.000000e+00 : f32
    %464 = vector.broadcast %cst_103 : f32 to vector<8x96xf32>
    %465 = arith.addf %464, %463 : vector<8x96xf32>
    %466 = arith.divf %464, %465 : vector<8x96xf32>
    %467 = vector.extract_strided_slice %466 {offsets = [0, 0], sizes = [8, 32], strides = [1, 1]} : vector<8x96xf32> to vector<8x32xf32>
    %468 = vector.extract_strided_slice %466 {offsets = [0, 32], sizes = [8, 32], strides = [1, 1]} : vector<8x96xf32> to vector<8x32xf32>
    %469 = vector.extract_strided_slice %466 {offsets = [0, 64], sizes = [8, 32], strides = [1, 1]} : vector<8x96xf32> to vector<8x32xf32>
    %470 = vector.extract_strided_slice %460 {offsets = [0, 96], sizes = [8, 32], strides = [1, 1]} : vector<8x128xf32> to vector<8x32xf32>
    %471 = math.tanh %470 : vector<8x32xf32>
    %472 = arith.mulf %468, %420 : vector<8x32xf32>
    %473 = arith.mulf %467, %471 : vector<8x32xf32>
    %474 = arith.addf %472, %473 : vector<8x32xf32>
    %475 = math.tanh %474 : vector<8x32xf32>
    %476 = arith.mulf %469, %475 : vector<8x32xf32>
    %cst_104 = arith.constant dense<0.000000e+00> : vector<8x128xf32>
    %477 = tpu.matmul %476, %218, %cst_104 {dimension_numbers = #tpu.dot_dimension_numbers<[1], [0], [0], [1], [0, 0, 1, 1], [], []>} : vector<8x32xf32>, vector<32x128xf32>, vector<8x128xf32> -> vector<8x128xf32>
    %478 = vector.broadcast %219 : vector<1x128xf32> to vector<8x128xf32>
    %479 = arith.addf %477, %478 : vector<8x128xf32>
    %c5 = arith.constant 5 : index
    %c0_105 = arith.constant 0 : index
    %c0_106 = arith.constant 0 : index
    %480 = vector.load %arg9[%c5, %c0_105, %c0_106] : memref<8x8x128xf32, #tpu.memory_space<vmem>>, vector<1x8x128xf32>
    %481 = vector.shape_cast %480 : vector<1x8x128xf32> to vector<8x128xf32>
    %482 = vector.shape_cast %479 : vector<8x128xf32> to vector<1x8x128xf32>
    tpu.vector_store %arg9[%c5, %c0_105, %c0_106], %482 {strides = array<i32>} : memref<8x8x128xf32, #tpu.memory_space<vmem>>, vector<1x8x128xf32>,
    %cst_107 = arith.constant 0xFF800000 : f32
    %483 = vector.broadcast %cst_107 : f32 to vector<8x128xf32>
    %484 = arith.select %222, %479, %483 : vector<8x128xi1>, vector<8x128xf32>
    %cst_108 = arith.constant dense<0xFF800000> : vector<8xf32>
    %485 = vector.multi_reduction <maximumf>, %484, %cst_108 [1] : vector<8x128xf32> to vector<8xf32>
    %486 = vector.shape_cast %485 : vector<8xf32> to vector<8x1xf32>
    %487 = vector.broadcast %486 : vector<8x1xf32> to vector<8x128xf32>
    %488 = arith.cmpf oeq, %484, %487 : vector<8x128xf32>
    %c128_i32_109 = arith.constant 128 : i32
    %489 = vector.broadcast %c128_i32_109 : i32 to vector<8x128xi32>
    %490 = arith.select %488, %220, %489 : vector<8x128xi1>, vector<8x128xi32>
    %cst_110 = arith.constant dense<2147483647> : vector<8xi32>
    %491 = vector.multi_reduction <minsi>, %490, %cst_110 [1] : vector<8x128xi32> to vector<8xi32>
    %492 = vector.shape_cast %491 : vector<8xi32> to vector<8x1xi32>
    %cst_111 = arith.constant 0xFF800000 : f32
    %493 = vector.broadcast %cst_111 : f32 to vector<8x128xf32>
    %494 = arith.select %227, %479, %493 : vector<8x128xi1>, vector<8x128xf32>
    %cst_112 = arith.constant dense<0xFF800000> : vector<8xf32>
    %495 = vector.multi_reduction <maximumf>, %494, %cst_112 [1] : vector<8x128xf32> to vector<8xf32>
    %496 = vector.shape_cast %495 : vector<8xf32> to vector<8x1xf32>
    %497 = vector.broadcast %496 : vector<8x1xf32> to vector<8x128xf32>
    %498 = arith.cmpf oeq, %494, %497 : vector<8x128xf32>
    %c128_i32_113 = arith.constant 128 : i32
    %499 = vector.broadcast %c128_i32_113 : i32 to vector<8x128xi32>
    %500 = arith.select %498, %220, %499 : vector<8x128xi1>, vector<8x128xi32>
    %cst_114 = arith.constant dense<2147483647> : vector<8xi32>
    %501 = vector.multi_reduction <minsi>, %500, %cst_114 [1] : vector<8x128xi32> to vector<8xi32>
    %502 = vector.shape_cast %501 : vector<8xi32> to vector<8x1xi32>
    %503 = vector.broadcast %492 : vector<8x1xi32> to vector<8x128xi32>
    %504 = arith.cmpi eq, %220, %503 : vector<8x128xi32>
    %505 = vector.broadcast %502 : vector<8x1xi32> to vector<8x128xi32>
    %506 = arith.cmpi eq, %220, %505 : vector<8x128xi32>
    %507 = arith.ori %504, %506 : vector<8x128xi1>
    %508 = arith.extui %507 : vector<8x128xi1> to vector<8x128xi32>
    %509 = arith.sitofp %508 : vector<8x128xi32> to vector<8x128xf32>
    %cst_115 = arith.constant dense<0.000000e+00> : vector<8x128xf32>
    %510 = tpu.matmul %509, %215, %cst_115 {dimension_numbers = #tpu.dot_dimension_numbers<[1], [0], [0], [1], [0, 0, 1, 1], [], []>} : vector<8x128xf32>, vector<128x128xf32>, vector<8x128xf32> -> vector<8x128xf32>
    %cst_116 = arith.constant dense<0.000000e+00> : vector<8x128xf32>
    %511 = tpu.matmul %476, %216, %cst_116 {dimension_numbers = #tpu.dot_dimension_numbers<[1], [0], [0], [1], [0, 0, 1, 1], [], []>} : vector<8x32xf32>, vector<32x128xf32>, vector<8x128xf32> -> vector<8x128xf32>
    %512 = arith.addf %510, %511 : vector<8x128xf32>
    %513 = vector.broadcast %217 : vector<1x128xf32> to vector<8x128xf32>
    %514 = arith.addf %512, %513 : vector<8x128xf32>
    %515 = vector.extract_strided_slice %514 {offsets = [0, 0], sizes = [8, 96], strides = [1, 1]} : vector<8x128xf32> to vector<8x96xf32>
    %516 = arith.negf %515 : vector<8x96xf32>
    %517 = math.exp %516 : vector<8x96xf32>
    %cst_117 = arith.constant 1.000000e+00 : f32
    %518 = vector.broadcast %cst_117 : f32 to vector<8x96xf32>
    %519 = arith.addf %518, %517 : vector<8x96xf32>
    %520 = arith.divf %518, %519 : vector<8x96xf32>
    %521 = vector.extract_strided_slice %520 {offsets = [0, 0], sizes = [8, 32], strides = [1, 1]} : vector<8x96xf32> to vector<8x32xf32>
    %522 = vector.extract_strided_slice %520 {offsets = [0, 32], sizes = [8, 32], strides = [1, 1]} : vector<8x96xf32> to vector<8x32xf32>
    %523 = vector.extract_strided_slice %520 {offsets = [0, 64], sizes = [8, 32], strides = [1, 1]} : vector<8x96xf32> to vector<8x32xf32>
    %524 = vector.extract_strided_slice %514 {offsets = [0, 96], sizes = [8, 32], strides = [1, 1]} : vector<8x128xf32> to vector<8x32xf32>
    %525 = math.tanh %524 : vector<8x32xf32>
    %526 = arith.mulf %522, %474 : vector<8x32xf32>
    %527 = arith.mulf %521, %525 : vector<8x32xf32>
    %528 = arith.addf %526, %527 : vector<8x32xf32>
    %529 = math.tanh %528 : vector<8x32xf32>
    %530 = arith.mulf %523, %529 : vector<8x32xf32>
    %cst_118 = arith.constant dense<0.000000e+00> : vector<8x128xf32>
    %531 = tpu.matmul %530, %218, %cst_118 {dimension_numbers = #tpu.dot_dimension_numbers<[1], [0], [0], [1], [0, 0, 1, 1], [], []>} : vector<8x32xf32>, vector<32x128xf32>, vector<8x128xf32> -> vector<8x128xf32>
    %532 = vector.broadcast %219 : vector<1x128xf32> to vector<8x128xf32>
    %533 = arith.addf %531, %532 : vector<8x128xf32>
    %c6 = arith.constant 6 : index
    %c0_119 = arith.constant 0 : index
    %c0_120 = arith.constant 0 : index
    %534 = vector.load %arg9[%c6, %c0_119, %c0_120] : memref<8x8x128xf32, #tpu.memory_space<vmem>>, vector<1x8x128xf32>
    %535 = vector.shape_cast %534 : vector<1x8x128xf32> to vector<8x128xf32>
    %536 = vector.shape_cast %533 : vector<8x128xf32> to vector<1x8x128xf32>
    tpu.vector_store %arg9[%c6, %c0_119, %c0_120], %536 {strides = array<i32>} : memref<8x8x128xf32, #tpu.memory_space<vmem>>, vector<1x8x128xf32>,
    %cst_121 = arith.constant 0xFF800000 : f32
    %537 = vector.broadcast %cst_121 : f32 to vector<8x128xf32>
    %538 = arith.select %222, %533, %537 : vector<8x128xi1>, vector<8x128xf32>
    %cst_122 = arith.constant dense<0xFF800000> : vector<8xf32>
    %539 = vector.multi_reduction <maximumf>, %538, %cst_122 [1] : vector<8x128xf32> to vector<8xf32>
    %540 = vector.shape_cast %539 : vector<8xf32> to vector<8x1xf32>
    %541 = vector.broadcast %540 : vector<8x1xf32> to vector<8x128xf32>
    %542 = arith.cmpf oeq, %538, %541 : vector<8x128xf32>
    %c128_i32_123 = arith.constant 128 : i32
    %543 = vector.broadcast %c128_i32_123 : i32 to vector<8x128xi32>
    %544 = arith.select %542, %220, %543 : vector<8x128xi1>, vector<8x128xi32>
    %cst_124 = arith.constant dense<2147483647> : vector<8xi32>
    %545 = vector.multi_reduction <minsi>, %544, %cst_124 [1] : vector<8x128xi32> to vector<8xi32>
    %546 = vector.shape_cast %545 : vector<8xi32> to vector<8x1xi32>
    %cst_125 = arith.constant 0xFF800000 : f32
    %547 = vector.broadcast %cst_125 : f32 to vector<8x128xf32>
    %548 = arith.select %227, %533, %547 : vector<8x128xi1>, vector<8x128xf32>
    %cst_126 = arith.constant dense<0xFF800000> : vector<8xf32>
    %549 = vector.multi_reduction <maximumf>, %548, %cst_126 [1] : vector<8x128xf32> to vector<8xf32>
    %550 = vector.shape_cast %549 : vector<8xf32> to vector<8x1xf32>
    %551 = vector.broadcast %550 : vector<8x1xf32> to vector<8x128xf32>
    %552 = arith.cmpf oeq, %548, %551 : vector<8x128xf32>
    %c128_i32_127 = arith.constant 128 : i32
    %553 = vector.broadcast %c128_i32_127 : i32 to vector<8x128xi32>
    %554 = arith.select %552, %220, %553 : vector<8x128xi1>, vector<8x128xi32>
    %cst_128 = arith.constant dense<2147483647> : vector<8xi32>
    %555 = vector.multi_reduction <minsi>, %554, %cst_128 [1] : vector<8x128xi32> to vector<8xi32>
    %556 = vector.shape_cast %555 : vector<8xi32> to vector<8x1xi32>
    %557 = vector.broadcast %546 : vector<8x1xi32> to vector<8x128xi32>
    %558 = arith.cmpi eq, %220, %557 : vector<8x128xi32>
    %559 = vector.broadcast %556 : vector<8x1xi32> to vector<8x128xi32>
    %560 = arith.cmpi eq, %220, %559 : vector<8x128xi32>
    %561 = arith.ori %558, %560 : vector<8x128xi1>
    %562 = arith.extui %561 : vector<8x128xi1> to vector<8x128xi32>
    %563 = arith.sitofp %562 : vector<8x128xi32> to vector<8x128xf32>
    %cst_129 = arith.constant dense<0.000000e+00> : vector<8x128xf32>
    %564 = tpu.matmul %563, %215, %cst_129 {dimension_numbers = #tpu.dot_dimension_numbers<[1], [0], [0], [1], [0, 0, 1, 1], [], []>} : vector<8x128xf32>, vector<128x128xf32>, vector<8x128xf32> -> vector<8x128xf32>
    %cst_130 = arith.constant dense<0.000000e+00> : vector<8x128xf32>
    %565 = tpu.matmul %530, %216, %cst_130 {dimension_numbers = #tpu.dot_dimension_numbers<[1], [0], [0], [1], [0, 0, 1, 1], [], []>} : vector<8x32xf32>, vector<32x128xf32>, vector<8x128xf32> -> vector<8x128xf32>
    %566 = arith.addf %564, %565 : vector<8x128xf32>
    %567 = vector.broadcast %217 : vector<1x128xf32> to vector<8x128xf32>
    %568 = arith.addf %566, %567 : vector<8x128xf32>
    %569 = vector.extract_strided_slice %568 {offsets = [0, 0], sizes = [8, 96], strides = [1, 1]} : vector<8x128xf32> to vector<8x96xf32>
    %570 = arith.negf %569 : vector<8x96xf32>
    %571 = math.exp %570 : vector<8x96xf32>
    %cst_131 = arith.constant 1.000000e+00 : f32
    %572 = vector.broadcast %cst_131 : f32 to vector<8x96xf32>
    %573 = arith.addf %572, %571 : vector<8x96xf32>
    %574 = arith.divf %572, %573 : vector<8x96xf32>
    %575 = vector.extract_strided_slice %574 {offsets = [0, 0], sizes = [8, 32], strides = [1, 1]} : vector<8x96xf32> to vector<8x32xf32>
    %576 = vector.extract_strided_slice %574 {offsets = [0, 32], sizes = [8, 32], strides = [1, 1]} : vector<8x96xf32> to vector<8x32xf32>
    %577 = vector.extract_strided_slice %574 {offsets = [0, 64], sizes = [8, 32], strides = [1, 1]} : vector<8x96xf32> to vector<8x32xf32>
    %578 = vector.extract_strided_slice %568 {offsets = [0, 96], sizes = [8, 32], strides = [1, 1]} : vector<8x128xf32> to vector<8x32xf32>
    %579 = math.tanh %578 : vector<8x32xf32>
    %580 = arith.mulf %576, %528 : vector<8x32xf32>
    %581 = arith.mulf %575, %579 : vector<8x32xf32>
    %582 = arith.addf %580, %581 : vector<8x32xf32>
    %583 = math.tanh %582 : vector<8x32xf32>
    %584 = arith.mulf %577, %583 : vector<8x32xf32>
    %cst_132 = arith.constant dense<0.000000e+00> : vector<8x128xf32>
    %585 = tpu.matmul %584, %218, %cst_132 {dimension_numbers = #tpu.dot_dimension_numbers<[1], [0], [0], [1], [0, 0, 1, 1], [], []>} : vector<8x32xf32>, vector<32x128xf32>, vector<8x128xf32> -> vector<8x128xf32>
    %586 = vector.broadcast %219 : vector<1x128xf32> to vector<8x128xf32>
    %587 = arith.addf %585, %586 : vector<8x128xf32>
    %c7 = arith.constant 7 : index
    %c0_133 = arith.constant 0 : index
    %c0_134 = arith.constant 0 : index
    %588 = vector.load %arg9[%c7, %c0_133, %c0_134] : memref<8x8x128xf32, #tpu.memory_space<vmem>>, vector<1x8x128xf32>
    %589 = vector.shape_cast %588 : vector<1x8x128xf32> to vector<8x128xf32>
    %590 = vector.shape_cast %587 : vector<8x128xf32> to vector<1x8x128xf32>
    tpu.vector_store %arg9[%c7, %c0_133, %c0_134], %590 {strides = array<i32>} : memref<8x8x128xf32, #tpu.memory_space<vmem>>, vector<1x8x128xf32>,
    return
  }
}

</mosaic_0001>

<bundles_post_ra>
// kernel: encoder_decoder_forward.1
= control target key start
LH: loop header
LB: loop body
LE: loop exit
PB: predicated region body
PF: predicated region fallthrough
CT: control target
= control target key end

     0   :  { %14 = vsyncpa [#allocation3], 0  ;;  %s2952_s0 = inlined_call_operand.vmem [shape: s32[8,8], index: 0, kind: input, shape index: {}]   ;;  %s2953_s1 = inlined_call_operand.hbm [shape: f32[20,128], index: 1, kind: input, shape index: {}]   ;;  %s2954_s2 = inlined_call_operand.hbm [shape: f32[32,128], index: 2, kind: input, shape index: {}]   ;;  %s2955_s3 = inlined_call_operand.vmem [shape: f32[1,128], index: 3, kind: input, shape index: {}]   ;;  %s2956_s4 = inlined_call_operand.hbm [shape: f32[128,128], index: 4, kind: input, shape index: {}]   ;;  %s2957_s5 = inlined_call_operand.hbm [shape: f32[32,128], index: 5, kind: input, shape index: {}]   ;;  %s2958_s6 = inlined_call_operand.vmem [shape: f32[1,128], index: 6, kind: input, shape index: {}]   ;;  %s2959_s7 = inlined_call_operand.hbm [shape: f32[32,128], index: 7, kind: input, shape index: {}]   ;;  %s2960_s8 = inlined_call_operand.vmem [shape: f32[1,128], index: 8, kind: input, shape index: {}]   ;;  %s2961_s9 = inlined_call_operand.vmem [shape: f32[8,8,128], index: 9, kind: output, shape index: {}]  }
   0x1   :  { %15 = vsyncpa [#allocation5], 0 }
   0x2   :  { %16 = vsyncpa [#allocation8], 0  ;;  %s36_s11 = sshll.u32 %s2954_s2, 4  ;;  %s2287_s12 = smov [#allocation4]   ;;  %s37_s11 = int_to_ptr.hbm [resolvable:$true] %s36_s11 }
   0x3   :  { %s38_s13 = sshll.u32 %s2287_s12, 4  ;;  %s64_s16 = sshll.u32 %s2957_s5, 4  ;;  %s39_s13 = int_to_ptr.vmem [resolvable:$true] %s38_s13  ;;  %s65_s16 = int_to_ptr.hbm [resolvable:$true] %s64_s16 }
   0x4   :  { %s2288_s17 = smov 128   ;;  %s2289_s18 = smov 8  }
   0x5   :  { %44 = dma.hbm_to_vmem [thread:$0]  %s37_s11, 512, %s39_s13, [#allocation5], %s2288_s17, %s2288_s17, %s2289_s18  }
   0x6   :  { %s2290_s19 = smov [#allocation7]   ;;  %s23_s23 = sshll.u32 %s2953_s1, 4  ;;  %s24_s23 = int_to_ptr.hbm [resolvable:$true] %s23_s23 }
   0x7   :  { %s66_s20 = sshll.u32 %s2290_s19, 4  ;;  %s51_s25 = sshll.u32 %s2956_s4, 4  ;;  %s67_s20 = int_to_ptr.vmem [resolvable:$true] %s66_s20  ;;  %s52_s25 = int_to_ptr.hbm [resolvable:$true] %s51_s25 }
   0x8   :  { %72 = dma.hbm_to_vmem [thread:$0]  %s65_s16, 512, %s67_s20, [#allocation8], %s2288_s17, %s2288_s17, %s2289_s18  }
   0x9   :  { %s2291_s26 = smov [#allocation2]   ;;  %s2292_s5 = smov [#allocation6]  }
   0xa   :  { %s25_s27 = sshll.u32 %s2291_s26, 4  ;;  %s53_s28 = sshll.u32 %s2292_s5, 4  ;;  %s26_s27 = int_to_ptr.vmem [resolvable:$true] %s25_s27  ;;  %s54_s28 = int_to_ptr.vmem [resolvable:$true] %s53_s28 }
   0xb   :  { %31 = dma.hbm_to_vmem [thread:$0]  %s24_s23, 384, %s26_s27, [#allocation3], %s2288_s17, %s2288_s17, %s2289_s18  }
   0xc   :  { %s79_s10 = sshll.u32 %s2959_s7, 4  ;;  %s2293_s1 = smov [#allocation9]   ;;  %s80_s10 = int_to_ptr.hbm [resolvable:$true] %s79_s10 }
   0xd   :  { %59 = dma.hbm_to_vmem [thread:$0]  %s52_s25, 2048, %s54_s28, [#allocation5], %s2288_s17, %s2288_s17, %s2289_s18  }
   0xe   :  { %s81_s11 = sshll.u32 %s2293_s1, 4  ;;  %s82_s11 = int_to_ptr.vmem [resolvable:$true] %s81_s11 }
   0xf   :  { %87 = dma.hbm_to_vmem [thread:$0]  %s80_s10, 512, %s82_s11, [#allocation8], %s2288_s17, %s2288_s17, %s2289_s18  }
  0x10   :  { %2281 = dma.done.wait [#allocation3], 384  }
  0x11   :  { %2282 = vsyncadd [#allocation3], 4294966912 }
  0x12   :  { %2283 = dma.done.wait [#allocation5], 2560  }
  0x13   :  { %2284 = vsyncadd [#allocation5], 4294964736 }
  0x14   :  { %2285 = dma.done.wait [#allocation8], 1024  }
  0x15   :  { %2286 = vsyncadd [#allocation8], 4294966272  ;;  %v2294_v0 = vmov 0   ;;  %vm134_vm0 = vcmask 1043456   ;;  %v2374_v1 = vld [vmem:[%s2952_s0] sm:$0xff]  ;;  %v2378_v3 = vld [vmem:[#allocation2 + $0x8] sm:$0xff]  ;;  %v111_v10 = vlaneseq }
  0x16   :  { %2011 = vset.pattern.permute.xlu0 %v2294_v0  ;;  %v2376_v2 = vld [vmem:[#allocation2 + $0x10] sm:$0xf]  ;;  %v2295_v4 = vmov 4   ;;  %v2394_v5 = vld [vmem:[#allocation2] sm:$0xff]  ;;  %v2415_v7 = vld [vmem:[#allocation4 + $0x10] sm:$0xff]  ;;  %vm130_vm1 = vcmask 162816  }
  0x17   :  { %122 = vperm.xlu0 %2011, %v2374_v1   ;;  %1912 = vmatpush.msk.msra.mxu0 %vm134_vm0, %v2376_v2  ;;  %v2412_v6 = vld [vmem:[#allocation4 + $0x18] sm:$0xff]  ;;  %v2418_v8 = vld [vmem:[#allocation4 + $0x8] sm:$0xff]  ;;  %v2421_v9 = vld [vmem:[#allocation4] sm:$0xff]  ;;  %v2424_v11 = vand.u32 127, %v111_v10  ;;  %v2296_v13 = vmov 0.0   ;;  %s2297_s13 = smov 32  }
  0x18   :  { %1915 = vmatpush.msk.msra.mxu1 %vm134_vm0, %v2376_v2  ;;  %1930 = vmatpush.msk.msra.mxu2 %vm134_vm0, %v2376_v2  ;;  %v2446_v19 = vld [vmem:[%s2955_s3] ss:$0 sm:$0xff]  ;;  %v2298_v39 = vmov 5   ;;  %v2299_v40 = vmov 1   ;;  %s2300_s3 = smov 64   ;;  %vm361_vm10 = vcmask 261120  }
  0x19   :  { %152 = vmatpush.msra.mxu0 %v2378_v3  ;;  %1918 = vmatpush.msk.msra.mxu3 %vm134_vm0, %v2376_v2 }
  0x1a   :  { %181 = vmatpush.msra.mxu1 %v2378_v3  ;;  %326 = vmatpush.msra.mxu2 %v2378_v3 }
  0x1b   :  { %210 = vmatpush.msra.mxu3 %v2378_v3  ;;  %153 = vmatpush.msra.mxu0 %v2394_v5 }
  0x1c   :  { %182 = vmatpush.msra.mxu1 %v2394_v5  ;;  %327 = vmatpush.msra.mxu2 %v2394_v5 }
  0x1d   :  { %1924 = vmatpush.msk.msrb.mxu0 %vm134_vm0, %v2376_v2  ;;  %211 = vmatpush.msra.mxu3 %v2394_v5 }
  0x1e   :  { %1927 = vmatpush.msk.msrb.mxu1 %vm134_vm0, %v2376_v2  ;;  %503 = vmatpush.msrb.mxu2 %v2412_v6 }
  0x1f   :  { %2012 = vset.pattern.permute.xlu0 %v2295_v4  ;;  %268 = vmatpush.msrb.mxu0 %v2378_v3 }
  0x20   :  { %246 = vperm.xlu0 %2012, %v2374_v1   ;;  %297 = vmatpush.msrb.mxu1 %v2378_v3 }
  0x21   :  { %1921 = vmatpush.msk.msrb.mxu3 %vm134_vm0, %v2376_v2  ;;  %269 = vmatpush.msrb.mxu0 %v2394_v5 }
  0x22   :  { %298 = vmatpush.msrb.mxu1 %v2394_v5  ;;  %504 = vmatpush.msrb.mxu2 %v2415_v7 }
  0x23   :  { %239 = vmatpush.msrb.mxu3 %v2378_v3  ;;  %2014 = vset.pattern.permute.xlu1 %v2298_v39 }
  0x24   :  { %505 = vmatpush.msrb.mxu2 %v2418_v8  ;;  %2013 = vset.pattern.permute.xlu2 %v2299_v40 }
  0x25   :  { %240 = vmatpush.msrb.mxu3 %v2394_v5 }
  0x26   :  { %506 = vmatpush.msrb.mxu2 %v2421_v9 }
  0x89   :  { %v123_v12 = vpop.permute.xlu0 %122 }
  0x8a   :  { %vm124_vm2 = vcmp.eq.s32.totalorder %v123_v12, %v2424_v11 }
  0x8b   :  { %v1911_v14 = vsel %vm124_vm2, 1.0, %v2296_v13 }
  0x8c   :  { %1913 = vmatmul.msk.f32.vlgmr.msra.gmra.mxu0 %vm130_vm1, %v1911_v14 }
  0x8d   :  { %377 = vmatpush.msra.mxu0 %v2412_v6 }
  0x8f   :  { %378 = vmatpush.msra.mxu0 %v2415_v7 }
  0x91   :  { %379 = vmatpush.msra.mxu0 %v2418_v8 }
  0x92   :  { %v247_v15 = vpop.permute.xlu0 %246 }
  0x93   :  { %vm248_vm3 = vcmp.eq.s32.totalorder %v247_v15, %v2424_v11  ;;  %380 = vmatpush.msra.mxu0 %v2421_v9 }
  0x94   :  { %v1923_v16 = vsel %vm248_vm3, 1.0, %v2296_v13 }
  0x95   :  { %1925 = vmatmul.msk.f32.vlgmr.msrb.gmra.mxu0 %vm130_vm1, %v1923_v16 }
  0x96   :  { %629 = vmatpush.msrb.mxu0 %v2412_v6 }
  0x98   :  { %630 = vmatpush.msrb.mxu0 %v2415_v7 }
  0x9a   :  { %631 = vmatpush.msrb.mxu0 %v2418_v8 }
  0x9c   :  { %632 = vmatpush.msrb.mxu0 %v2421_v9 }
  0x9d   :  { %381 = vmatmul.f32.vlgmr.msra.gmra.mxu0 %v2296_v13 }
 0x109   :  { %v155_v17 = vpop.f32.mrf.mxu0 }
 0x10a   :  { %v156_v20 = vadd.f32 %v2446_v19, %v155_v17 }
 0x112   :  { %v2441_v18 = vpop.f32.mrf.mxu0 }
 0x11a   :  { %v382_v21 = vpop.f32.mrf.mxu0 }
 0x11b   :  { %v385_v22 = vadd.f32 %v382_v21, %v156_v20  ;;  %v2301_v21 = vmov 6  }
 0x11c   :  { %2015 = vset.pattern.permute.xlu0 %v2301_v21 }
 0x11d   :  { %2023 = vtanh.f32 %v385_v22  ;;  %v1935_v24 = vmul.f32 -1.442695, %v385_v22  ;;  %v2302_v22 = vmov 2  }
 0x11f   :  { %2025 = vpow2.f32 %v1935_v24 }
 0x123   :  { %v2024_v23 = vpop.eup %2023 }
 0x124   :  { %408 = vrot.lane.b32.xlu1 %v2024_v23, %s2297_s13 }
 0x125   :  { %v2026_v25 = vpop.eup %2025 }
 0x126   :  { %v389_v26 = vadd.f32 1.0, %v2026_v25 }
 0x128   :  { %2027 = vrcp.f32 %v389_v26  ;;  %v401_v32 = vand.u32 2147483648, %v389_v26  ;;  %vm395_vm5 = vweird.f32 %v389_v26  ;;  %v399_v33 = vand.u32 2147483647, %v389_v26 }
 0x12a   :  { %v402_v35 = vor.u32 1.1754944e-38, %v401_v32  ;;  %vm400_vm7 = vcmp.eq.f32.partialorder %v399_v33, 8.507059e+37 }
 0x12e   :  { %v2028_v27 = vpop.eup %2027 }
 0x12f   :  { %v391_v28 = vmul.f32 %v2028_v27, %v389_v26  ;;  %vm396_vm4 = vweird.f32 %v2028_v27 }
 0x130   :  { %vm397_vm6 = vmor %vm395_vm5, %vm396_vm4 }
 0x131   :  { %v392_v29 = vsub.f32 1.0, %v391_v28 }
 0x133   :  { %v393_v30 = vmul.f32 %v2028_v27, %v392_v29 }
 0x135   :  { %v394_v31 = vadd.f32 %v2028_v27, %v393_v30 }
 0x137   :  { %v398_v34 = vsel %vm397_vm6, %v2028_v27, %v394_v31 }
 0x138   :  { %v403_v37 = vsel %vm400_vm7, %v402_v35, %v398_v34 }
 0x139   :  { %v406_v41 = vmul.f32 0.0, %v403_v37 }
 0x196   :  { %v409_v36 = vpop.permute.xlu1 %408 }
 0x197   :  { %v411_v38 = vmul.f32 %v409_v36, %v403_v37 }
 0x199   :  { %413 = vrot.lane.b32.xlu1 %v411_v38, %s2297_s13 }
 0x1a1   :  { %275 = vperm.xlu1 %2014, %v2374_v1  }
 0x1a9   :  { %2016 = vset.pattern.permute.xlu1 %v2302_v22 }
 0x20b   :  { %v414_v42 = vpop.permute.xlu1 %413 }
 0x20c   :  { %v2452_v43 = vadd.f32 %v414_v42, %v406_v41 }
 0x20e   :  { %2029 = vtanh.f32 %v2452_v43 }
 0x213   :  { %v276_v49 = vpop.permute.xlu1 %275 }
 0x214   :  { %v2030_v44 = vpop.eup %2029  ;;  %vm277_vm9 = vcmp.eq.s32.totalorder %v276_v49, %v2424_v11 }
 0x215   :  { %419 = vrot.lane.b32.xlu2 %v2030_v44, %s2297_s13  ;;  %v1926_v50 = vsel %vm277_vm9, 1.0, %v2296_v13 }
 0x21d   :  { %159 = vperm.xlu2 %2013, %v2374_v1  }
 0x26f   :  { %v420_v45 = vpop.permute.xlu2 %419 }
 0x270   :  { %v422_v46 = vmul.f32 %v420_v45, %v403_v37 }
 0x272   :  { %424 = vrot.lane.b32.xlu2 %v422_v46, %s2300_s3 }
 0x277   :  { %v160_v47 = vpop.permute.xlu2 %159 }
 0x278   :  { %vm161_vm8 = vcmp.eq.s32.totalorder %v160_v47, %v2424_v11 }
 0x279   :  { %v1914_v48 = vsel %vm161_vm8, 1.0, %v2296_v13 }
 0x27a   :  { %1916 = vmatmul.msk.f32.vlgmr.msra.gmra.mxu1 %vm130_vm1, %v1914_v48 }
 0x27b   :  { %440 = vmatpush.msra.mxu1 %v2412_v6 }
 0x27d   :  { %441 = vmatpush.msra.mxu1 %v2415_v7 }
 0x27f   :  { %442 = vmatpush.msra.mxu1 %v2418_v8 }
 0x281   :  { %443 = vmatpush.msra.mxu1 %v2421_v9 }
 0x282   :  { %1928 = vmatmul.msk.f32.vlgmr.msrb.gmra.mxu1 %vm130_vm1, %v1926_v50 }
 0x283   :  { %692 = vmatpush.msrb.mxu1 %v2412_v6 }
 0x285   :  { %693 = vmatpush.msrb.mxu1 %v2415_v7 }
 0x287   :  { %694 = vmatpush.msrb.mxu1 %v2418_v8 }
 0x289   :  { %695 = vmatpush.msrb.mxu1 %v2421_v9 }
 0x2cc   :  { %v425_v51 = vpop.permute.xlu2 %424 }
 0x2cd   :  { %1936 = vmatmul.msk.f32.vlgmr.msra.gmra.mxu1 %vm361_vm10, %v425_v51 }
 0x2f7   :  { %v184_v52 = vpop.f32.mrf.mxu1 }
 0x2f8   :  { %v185_v54 = vadd.f32 %v2446_v19, %v184_v52  ;;  %v2303_v52 = vmov 3  }
 0x2ff   :  { %v2473_v53 = vpop.f32.mrf.mxu1 }
 0x34a   :  { %v445_v55 = vpop.f32.mrf.mxu1 }
 0x34b   :  { %v448_v56 = vadd.f32 %v445_v55, %v185_v54 }
 0x34d   :  { %2031 = vtanh.f32 %v448_v56  ;;  %v1937_v58 = vmul.f32 -1.442695, %v448_v56 }
 0x34f   :  { %2033 = vpow2.f32 %v1937_v58 }
 0x353   :  { %v2032_v57 = vpop.eup %2031 }
 0x354   :  { %471 = vrot.lane.b32.xlu0 %v2032_v57, %s2297_s13 }
 0x355   :  { %v2034_v59 = vpop.eup %2033 }
 0x356   :  { %v452_v60 = vadd.f32 1.0, %v2034_v59  ;;  %v2304_v59 = vmov 7  }
 0x357   :  { %2018 = vset.pattern.permute.xlu2 %v2304_v59 }
 0x358   :  { %2035 = vrcp.f32 %v452_v60  ;;  %v464_v10 = vand.u32 2147483648, %v452_v60  ;;  %vm458_vm12 = vweird.f32 %v452_v60  ;;  %v462_v12 = vand.u32 2147483647, %v452_v60 }
 0x35a   :  { %v465_v15 = vor.u32 1.1754944e-38, %v464_v10  ;;  %vm463_vm14 = vcmp.eq.f32.partialorder %v462_v12, 8.507059e+37 }
 0x35c   :  { %304 = vperm.xlu0 %2015, %v2374_v1  }
 0x35e   :  { %v2036_v61 = vpop.eup %2035 }
 0x35f   :  { %v454_v62 = vmul.f32 %v2036_v61, %v452_v60  ;;  %vm459_vm11 = vweird.f32 %v2036_v61 }
 0x360   :  { %vm460_vm13 = vmor %vm458_vm12, %vm459_vm11 }
 0x361   :  { %v455_v63 = vsub.f32 1.0, %v454_v62 }
 0x363   :  { %v456_v0 = vmul.f32 %v2036_v61, %v455_v63 }
 0x364   :  { %2019 = vset.pattern.permute.xlu0 %v2304_v59 }
 0x365   :  { %v457_v4 = vadd.f32 %v2036_v61, %v456_v0 }
 0x367   :  { %v461_v14 = vsel %vm460_vm13, %v2036_v61, %v457_v4 }
 0x368   :  { %v466_v17 = vsel %vm463_vm14, %v465_v15, %v461_v14 }
 0x369   :  { %v469_v23 = vmul.f32 %v466_v17, %v2452_v43 }
 0x3c6   :  { %v472_v16 = vpop.permute.xlu0 %471 }
 0x3c7   :  { %v474_v20 = vmul.f32 %v472_v16, %v466_v17 }
 0x3c9   :  { %476 = vrot.lane.b32.xlu1 %v474_v20, %s2297_s13 }
 0x3ce   :  { %v305_v27 = vpop.permute.xlu0 %304 }
 0x3cf   :  { %vm306_vm15 = vcmp.eq.s32.totalorder %v305_v27, %v2424_v11 }
 0x3d0   :  { %v1929_v29 = vsel %vm306_vm15, 1.0, %v2296_v13 }
 0x3d1   :  { %188 = vperm.xlu1 %2016, %v2374_v1   ;;  %1931 = vmatmul.msk.f32.vlgmr.msra.gmra.mxu2 %vm130_vm1, %v1929_v29 }
 0x3d2   :  { %755 = vmatpush.msra.mxu2 %v2412_v6 }
 0x3d4   :  { %756 = vmatpush.msra.mxu2 %v2415_v7 }
 0x3d6   :  { %757 = vmatpush.msra.mxu2 %v2418_v8 }
 0x3d8   :  { %758 = vmatpush.msra.mxu2 %v2421_v9 }
 0x3d9   :  { %2017 = vset.pattern.permute.xlu1 %v2303_v52 }
 0x43b   :  { %v477_v24 = vpop.permute.xlu1 %476 }
 0x43c   :  { %v479_v25 = vadd.f32 %v477_v24, %v469_v23 }
 0x43e   :  { %2037 = vtanh.f32 %v479_v25 }
 0x443   :  { %v189_v28 = vpop.permute.xlu1 %188 }
 0x444   :  { %v2038_v26 = vpop.eup %2037  ;;  %vm190_vm2 = vcmp.eq.s32.totalorder %v189_v28, %v2424_v11 }
 0x445   :  { %482 = vrot.lane.b32.xlu2 %v2038_v26, %s2297_s13  ;;  %v1917_v30 = vsel %vm190_vm2, 1.0, %v2296_v13 }
 0x446   :  { %1919 = vmatmul.msk.f32.vlgmr.msra.gmra.mxu3 %vm130_vm1, %v1917_v30 }
 0x447   :  { %1933 = vmatpush.msk.msra.mxu3 %vm134_vm0, %v2376_v2 }
 0x449   :  { %355 = vmatpush.msra.mxu3 %v2378_v3 }
 0x44b   :  { %356 = vmatpush.msra.mxu3 %v2394_v5 }
 0x454   :  { %v2498_v2 = vpop.f32.mrf.mxu2 }
 0x49f   :  { %v483_v31 = vpop.permute.xlu2 %482 }
 0x4a0   :  { %v485_v32 = vmul.f32 %v483_v31, %v466_v17 }
 0x4a2   :  { %487 = vrot.lane.b32.xlu2 %v485_v32, %s2300_s3 }
 0x4c9   :  { %v213_v34 = vpop.f32.mrf.mxu3 }
 0x4ca   :  { %v214_v35 = vadd.f32 %v2446_v19, %v213_v34 }
 0x4fc   :  { %v488_v33 = vpop.permute.xlu2 %487 }
 0x4fd   :  { %1938 = vmatmul.msk.f32.vlgmr.msrb.gmra.mxu2 %vm361_vm10, %v488_v33 }
 0x580   :  { %v508_v3 = vpop.f32.mrf.mxu2 }
 0x581   :  { %v511_v36 = vadd.f32 %v508_v3, %v214_v35 }
 0x583   :  { %2039 = vtanh.f32 %v511_v36  ;;  %v1939_v5 = vmul.f32 -1.442695, %v511_v36  ;;  %v272_v36 = vadd.f32 %v2446_v19, %v2441_v18 }
 0x585   :  { %2041 = vpow2.f32 %v1939_v5 }
 0x589   :  { %v2040_v37 = vpop.eup %2039 }
 0x58a   :  { %534 = vrot.lane.b32.xlu1 %v2040_v37, %s2297_s13 }
 0x58b   :  { %v2042_v38 = vpop.eup %2041 }
 0x58c   :  { %v515_v39 = vadd.f32 1.0, %v2042_v38 }
 0x58e   :  { %2043 = vrcp.f32 %v515_v39  ;;  %v527_v45 = vand.u32 2147483648, %v515_v39  ;;  %vm521_vm3 = vweird.f32 %v515_v39  ;;  %v525_v46 = vand.u32 2147483647, %v515_v39 }
 0x590   :  { %v528_v48 = vor.u32 1.1754944e-38, %v527_v45  ;;  %vm526_vm5 = vcmp.eq.f32.partialorder %v525_v46, 8.507059e+37 }
 0x592   :  { %217 = vperm.xlu1 %2017, %v2374_v1  }
 0x594   :  { %v2044_v40 = vpop.eup %2043 }
 0x595   :  { %v517_v41 = vmul.f32 %v2044_v40, %v515_v39  ;;  %vm522_vm0 = vweird.f32 %v2044_v40 }
 0x596   :  { %vm523_vm4 = vmor %vm521_vm3, %vm522_vm0 }
 0x597   :  { %v518_v42 = vsub.f32 1.0, %v517_v41 }
 0x599   :  { %v519_v43 = vmul.f32 %v2044_v40, %v518_v42 }
 0x59b   :  { %v520_v44 = vadd.f32 %v2044_v40, %v519_v43 }
 0x59d   :  { %v524_v47 = vsel %vm523_vm4, %v2044_v40, %v520_v44 }
 0x59e   :  { %v529_v50 = vsel %vm526_vm5, %v528_v48, %v524_v47 }
 0x59f   :  { %v532_v54 = vmul.f32 %v529_v50, %v479_v25 }
 0x5fc   :  { %v535_v49 = vpop.permute.xlu1 %534 }
 0x5fd   :  { %v537_v51 = vmul.f32 %v535_v49, %v529_v50 }
 0x5ff   :  { %539 = vrot.lane.b32.xlu2 %v537_v51, %s2297_s13 }
 0x604   :  { %v218_v58 = vpop.permute.xlu1 %217 }
 0x605   :  { %vm219_vm6 = vcmp.eq.s32.totalorder %v218_v58, %v2424_v11 }
 0x606   :  { %v1920_v60 = vsel %vm219_vm6, 1.0, %v2296_v13 }
 0x607   :  { %333 = vperm.xlu2 %2018, %v2374_v1   ;;  %1922 = vmatmul.msk.f32.vlgmr.msrb.gmra.mxu3 %vm130_vm1, %v1920_v60 }
 0x608   :  { %566 = vmatpush.msrb.mxu3 %v2412_v6 }
 0x60a   :  { %567 = vmatpush.msrb.mxu3 %v2415_v7 }
 0x60c   :  { %568 = vmatpush.msrb.mxu3 %v2418_v8 }
 0x60e   :  { %569 = vmatpush.msrb.mxu3 %v2421_v9 }
 0x659   :  { %v540_v55 = vpop.permute.xlu2 %539 }
 0x65a   :  { %v542_v56 = vadd.f32 %v540_v55, %v532_v54 }
 0x65c   :  { %2045 = vtanh.f32 %v542_v56 }
 0x661   :  { %v334_v63 = vpop.permute.xlu2 %333 }
 0x662   :  { %v2046_v57 = vpop.eup %2045  ;;  %vm335_vm7 = vcmp.eq.s32.totalorder %v334_v63, %v2424_v11 }
 0x663   :  { %545 = vrot.lane.b32.xlu0 %v2046_v57, %s2297_s13  ;;  %v1932_v1 = vsel %vm335_vm7, 1.0, %v2296_v13 }
 0x664   :  { %1934 = vmatmul.msk.f32.vlgmr.msra.gmra.mxu3 %vm130_vm1, %v1932_v1 }
 0x665   :  { %818 = vmatpush.msra.mxu3 %v2412_v6 }
 0x667   :  { %819 = vmatpush.msra.mxu3 %v2415_v7 }
 0x669   :  { %820 = vmatpush.msra.mxu3 %v2418_v8 }
 0x66b   :  { %821 = vmatpush.msra.mxu3 %v2421_v9 }
 0x68a   :  { %v242_v4 = vpop.f32.mrf.mxu3 }
 0x68b   :  { %v243_v12 = vadd.f32 %v2446_v19, %v242_v4 }
 0x6d5   :  { %v546_v61 = vpop.permute.xlu0 %545 }
 0x6d6   :  { %v548_v62 = vmul.f32 %v546_v61, %v529_v50  ;;  %v301_v61 = vadd.f32 %v2446_v19, %v2473_v53 }
 0x6d8   :  { %550 = vrot.lane.b32.xlu0 %v548_v62, %s2300_s3 }
 0x6e7   :  { %v2522_v10 = vpop.f32.mrf.mxu3 }
 0x74a   :  { %v551_v0 = vpop.permute.xlu0 %550 }
 0x74b   :  { %1940 = vmatmul.msk.f32.vlgmr.msrb.gmra.mxu3 %vm361_vm10, %v551_v0 }
 0x7ce   :  { %v571_v14 = vpop.f32.mrf.mxu3 }
 0x7cf   :  { %v574_v15 = vadd.f32 %v571_v14, %v243_v12 }
 0x7d1   :  { %2047 = vtanh.f32 %v574_v15  ;;  %v1941_v6 = vmul.f32 -1.442695, %v574_v15 }
 0x7d3   :  { %2049 = vpow2.f32 %v1941_v6 }
 0x7d7   :  { %v2048_v16 = vpop.eup %2047 }
 0x7d8   :  { %597 = vrot.lane.b32.xlu1 %v2048_v16, %s2297_s13 }
 0x7d9   :  { %v2050_v7 = vpop.eup %2049 }
 0x7da   :  { %v578_v8 = vadd.f32 1.0, %v2050_v7 }
 0x7dc   :  { %2051 = vrcp.f32 %v578_v8  ;;  %v590_v23 = vand.u32 2147483648, %v578_v8  ;;  %vm584_vm8 = vweird.f32 %v578_v8  ;;  %v588_v24 = vand.u32 2147483647, %v578_v8 }
 0x7de   :  { %v591_v26 = vor.u32 1.1754944e-38, %v590_v23  ;;  %vm589_vm11 = vcmp.eq.f32.partialorder %v588_v24, 8.507059e+37 }
 0x7e2   :  { %v2052_v9 = vpop.eup %2051 }
 0x7e3   :  { %v580_v17 = vmul.f32 %v2052_v9, %v578_v8  ;;  %vm585_vm1 = vweird.f32 %v2052_v9 }
 0x7e4   :  { %vm586_vm9 = vmor %vm584_vm8, %vm585_vm1 }
 0x7e5   :  { %v581_v20 = vsub.f32 1.0, %v580_v17 }
 0x7e7   :  { %v582_v21 = vmul.f32 %v2052_v9, %v581_v20 }
 0x7e9   :  { %v583_v22 = vadd.f32 %v2052_v9, %v582_v21 }
 0x7eb   :  { %v587_v25 = vsel %vm586_vm9, %v2052_v9, %v583_v22 }
 0x7ec   :  { %v592_v28 = vsel %vm589_vm11, %v591_v26, %v587_v25 }
 0x7ed   :  { %v595_v30 = vmul.f32 %v592_v28, %v542_v56 }
 0x84a   :  { %v598_v27 = vpop.permute.xlu1 %597 }
 0x84b   :  { %v600_v29 = vmul.f32 %v598_v27, %v592_v28 }
 0x84d   :  { %602 = vrot.lane.b32.xlu2 %v600_v29, %s2297_s13 }
 0x8a7   :  { %v603_v31 = vpop.permute.xlu2 %602 }
 0x8a8   :  { %v605_v32 = vadd.f32 %v603_v31, %v595_v30  ;;  %v330_v30 = vadd.f32 %v2446_v19, %v2498_v2 }
 0x8aa   :  { %2053 = vtanh.f32 %v605_v32 }
 0x8b0   :  { %v2054_v33 = vpop.eup %2053 }
 0x8b1   :  { %608 = vrot.lane.b32.xlu0 %v2054_v33, %s2297_s13 }
 0x923   :  { %v609_v34 = vpop.permute.xlu0 %608 }
 0x924   :  { %v611_v35 = vmul.f32 %v609_v34, %v592_v28 }
 0x926   :  { %613 = vrot.lane.b32.xlu1 %v611_v35, %s2300_s3 }
 0x998   :  { %v614_v3 = vpop.permute.xlu1 %613 }
 0x999   :  { %1942 = vmatmul.msk.f32.vlgmr.msrb.gmra.mxu0 %vm361_vm10, %v614_v3 }
 0xa16   :  { %v634_v37 = vpop.f32.mrf.mxu0 }
 0xa17   :  { %v637_v5 = vadd.f32 %v634_v37, %v272_v36 }
 0xa19   :  { %2055 = vtanh.f32 %v637_v5  ;;  %v1943_v39 = vmul.f32 -1.442695, %v637_v5 }
 0xa1b   :  { %2057 = vpow2.f32 %v1943_v39 }
 0xa1f   :  { %v2056_v38 = vpop.eup %2055 }
 0xa20   :  { %660 = vrot.lane.b32.xlu2 %v2056_v38, %s2297_s13 }
 0xa21   :  { %v2058_v40 = vpop.eup %2057 }
 0xa22   :  { %v641_v41 = vadd.f32 1.0, %v2058_v40 }
 0xa24   :  { %2059 = vrcp.f32 %v641_v41  ;;  %v653_v47 = vand.u32 2147483648, %v641_v41  ;;  %vm647_vm13 = vweird.f32 %v641_v41  ;;  %v651_v18 = vand.u32 2147483647, %v641_v41 }
 0xa26   :  { %v654_v49 = vor.u32 1.1754944e-38, %v653_v47  ;;  %vm652_vm15 = vcmp.eq.f32.partialorder %v651_v18, 8.507059e+37 }
 0xa2a   :  { %v2060_v42 = vpop.eup %2059 }
 0xa2b   :  { %v643_v43 = vmul.f32 %v2060_v42, %v641_v41  ;;  %vm648_vm12 = vweird.f32 %v2060_v42 }
 0xa2c   :  { %vm649_vm14 = vmor %vm647_vm13, %vm648_vm12  ;;  %vm894_vm13 = vcmp.eq.s32.totalorder %v2424_v11, 1 }
 0xa2d   :  { %v644_v44 = vsub.f32 1.0, %v643_v43 }
 0xa2f   :  { %v645_v45 = vmul.f32 %v2060_v42, %v644_v44 }
 0xa31   :  { %v646_v46 = vadd.f32 %v2060_v42, %v645_v45 }
 0xa33   :  { %v650_v48 = vsel %vm649_vm14, %v2060_v42, %v646_v46  ;;  %vm895_vm14 = vcmp.eq.s32.totalorder %v2424_v11, 6 }
 0xa34   :  { %v655_v51 = vsel %vm652_vm15, %v654_v49, %v650_v48  ;;  %vm896_vm15 = vmor %vm894_vm13, %vm895_vm14 }
 0xa35   :  { %v658_v54 = vmul.f32 %v655_v51, %v605_v32 }
 0xa7a   :  { %v661_v50 = vpop.permute.xlu2 %660 }
 0xa7b   :  { %v663_v52 = vmul.f32 %v661_v50, %v655_v51 }
 0xa7d   :  { %665 = vrot.lane.b32.xlu0 %v663_v52, %s2297_s13  ;;  %v359_v52 = vadd.f32 %v2446_v19, %v2522_v10 }
 0xaef   :  { %v666_v55 = vpop.permute.xlu0 %665 }
 0xaf0   :  { %v668_v56 = vadd.f32 %v666_v55, %v658_v54 }
 0xaf2   :  { %2061 = vtanh.f32 %v668_v56 }
 0xaf8   :  { %v2062_v57 = vpop.eup %2061 }
 0xaf9   :  { %671 = vrot.lane.b32.xlu1 %v2062_v57, %s2297_s13 }
 0xb6b   :  { %v672_v58 = vpop.permute.xlu1 %671 }
 0xb6c   :  { %v674_v59 = vmul.f32 %v672_v58, %v655_v51 }
 0xb6e   :  { %676 = vrot.lane.b32.xlu2 %v674_v59, %s2300_s3 }
 0xbc8   :  { %v677_v60 = vpop.permute.xlu2 %676 }
 0xbc9   :  { %1944 = vmatmul.msk.f32.vlgmr.msrb.gmra.mxu1 %vm361_vm10, %v677_v60 }
 0xc46   :  { %v697_v62 = vpop.f32.mrf.mxu1 }
 0xc47   :  { %v700_v63 = vadd.f32 %v697_v62, %v301_v61 }
 0xc49   :  { %2063 = vtanh.f32 %v700_v63  ;;  %v1945_v0 = vmul.f32 -1.442695, %v700_v63 }
 0xc4b   :  { %2065 = vpow2.f32 %v1945_v0 }
 0xc4f   :  { %v2064_v1 = vpop.eup %2063 }
 0xc50   :  { %723 = vrot.lane.b32.xlu0 %v2064_v1, %s2297_s13 }
 0xc51   :  { %v2066_v4 = vpop.eup %2065 }
 0xc52   :  { %v704_v12 = vadd.f32 1.0, %v2066_v4 }
 0xc54   :  { %2067 = vrcp.f32 %v704_v12  ;;  %v716_v8 = vand.u32 2147483648, %v704_v12  ;;  %vm710_vm0 = vweird.f32 %v704_v12  ;;  %v714_v53 = vand.u32 2147483647, %v704_v12 }
 0xc56   :  { %v717_v17 = vor.u32 1.1754944e-38, %v716_v8  ;;  %vm715_vm4 = vcmp.eq.f32.partialorder %v714_v53, 8.507059e+37  ;;  %v2563_v53 = vld [vmem:[#allocation6 + $0x78] sm:$0xff] }
 0xc57   :  { %925 = vmatpush.msra.mxu1 %v2563_v53 }
 0xc5a   :  { %v2068_v14 = vpop.eup %2067 }
 0xc5b   :  { %v706_v15 = vmul.f32 %v2068_v14, %v704_v12  ;;  %vm711_vm2 = vweird.f32 %v2068_v14 }
 0xc5c   :  { %vm712_vm3 = vmor %vm710_vm0, %vm711_vm2 }
 0xc5d   :  { %v707_v16 = vsub.f32 1.0, %v706_v15 }
 0xc5f   :  { %v708_v6 = vmul.f32 %v2068_v14, %v707_v16 }
 0xc61   :  { %v709_v7 = vadd.f32 %v2068_v14, %v708_v6 }
 0xc63   :  { %v713_v9 = vsel %vm712_vm3, %v2068_v14, %v709_v7 }
 0xc64   :  { %v718_v21 = vsel %vm715_vm4, %v717_v17, %v713_v9  ;;  %v2565_v9 = vld [vmem:[#allocation6 + $0x70] sm:$0xff]  ;;  %v2568_v17 = vld [vmem:[#allocation6 + $0x68] sm:$0xff] }
 0xc65   :  { %v721_v23 = vmul.f32 %v718_v21, %v668_v56  ;;  %926 = vmatpush.msra.mxu1 %v2565_v9 }
 0xc67   :  { %927 = vmatpush.msra.mxu1 %v2568_v17 }
 0xcc2   :  { %v724_v20 = vpop.permute.xlu0 %723 }
 0xcc3   :  { %v726_v22 = vmul.f32 %v724_v20, %v718_v21  ;;  %v2571_v20 = vld [vmem:[#allocation6 + $0x60] sm:$0xff] }
 0xcc4   :  { %928 = vmatpush.msra.mxu1 %v2571_v20 }
 0xcc5   :  { %728 = vrot.lane.b32.xlu1 %v726_v22, %s2297_s13  ;;  %v2575_v22 = vld [vmem:[#allocation7 + $0x10] sm:$0xff] }
 0xd37   :  { %v729_v24 = vpop.permute.xlu1 %728 }
 0xd38   :  { %v731_v25 = vadd.f32 %v729_v24, %v721_v23  ;;  %v2579_v23 = vld [vmem:[#allocation6 + $0x58] sm:$0xff]  ;;  %v2581_v24 = vld [vmem:[#allocation7 + $0x8] sm:$0xff] }
 0xd39   :  { %929 = vmatpush.msra.mxu1 %v2579_v23 }
 0xd3a   :  { %2069 = vtanh.f32 %v731_v25 }
 0xd40   :  { %v2070_v26 = vpop.eup %2069 }
 0xd41   :  { %734 = vrot.lane.b32.xlu2 %v2070_v26, %s2297_s13  ;;  %v2588_v26 = vld [vmem:[#allocation7] sm:$0xff] }
 0xd9b   :  { %v735_v27 = vpop.permute.xlu2 %734 }
 0xd9c   :  { %v737_v28 = vmul.f32 %v735_v27, %v718_v21  ;;  %v2573_v21 = vld [vmem:[#allocation7 + $0x18] sm:$0xff]  ;;  %v2593_v27 = vld [vmem:[#allocation6 + $0x48] sm:$0xff] }
 0xd9d   :  { %917 = vmatpush.msra.mxu0 %v2573_v21  ;;  %1071 = vmatpush.msrb.mxu3 %v2573_v21 }
 0xd9e   :  { %739 = vrot.lane.b32.xlu0 %v737_v28, %s2300_s3  ;;  %v2598_v28 = vld [vmem:[#allocation6 + $0x40] sm:$0xff] }
 0xd9f   :  { %918 = vmatpush.msra.mxu0 %v2575_v22  ;;  %1072 = vmatpush.msrb.mxu3 %v2575_v22 }
 0xda1   :  { %919 = vmatpush.msra.mxu0 %v2581_v24  ;;  %1073 = vmatpush.msrb.mxu3 %v2581_v24 }
 0xda3   :  { %920 = vmatpush.msra.mxu0 %v2588_v26  ;;  %1074 = vmatpush.msrb.mxu3 %v2588_v26 }
 0xda5   :  { %1079 = vmatpush.msrb.mxu0 %v2563_v53 }
 0xda7   :  { %1080 = vmatpush.msrb.mxu0 %v2565_v9 }
 0xda9   :  { %1081 = vmatpush.msrb.mxu0 %v2568_v17 }
 0xdab   :  { %1082 = vmatpush.msrb.mxu0 %v2571_v20 }
 0xdad   :  { %1083 = vmatpush.msrb.mxu0 %v2579_v23 }
 0xe10   :  { %v740_v29 = vpop.permute.xlu0 %739 }
 0xe11   :  { %1946 = vmatmul.msk.f32.vlgmr.msra.gmra.mxu2 %vm361_vm10, %v740_v29  ;;  %v2604_v29 = vld [vmem:[#allocation6 + $0x38] sm:$0xff] }
 0xe94   :  { %v760_v31 = vpop.f32.mrf.mxu2 }
 0xe95   :  { %v763_v32 = vadd.f32 %v760_v31, %v330_v30  ;;  %v2609_v30 = vld [vmem:[#allocation6 + $0x30] sm:$0xff]  ;;  %v2614_v31 = vld [vmem:[#allocation6 + $0x28] sm:$0xff] }
 0xe97   :  { %2071 = vtanh.f32 %v763_v32  ;;  %v1947_v34 = vmul.f32 -1.442695, %v763_v32  ;;  %v2619_v32 = vld [vmem:[#allocation6 + $0x20] sm:$0xff] }
 0xe99   :  { %2073 = vpow2.f32 %v1947_v34  ;;  %v2627_v34 = vld [vmem:[#allocation6 + $0x10] sm:$0xff] }
 0xe9d   :  { %v2072_v33 = vpop.eup %2071 }
 0xe9e   :  { %786 = vrot.lane.b32.xlu1 %v2072_v33, %s2297_s13  ;;  %v2623_v33 = vld [vmem:[#allocation6 + $0x18] sm:$0xff] }
 0xe9f   :  { %v2074_v35 = vpop.eup %2073 }
 0xea0   :  { %v767_v3 = vadd.f32 1.0, %v2074_v35  ;;  %v2631_v35 = vld [vmem:[#allocation6 + $0x8] sm:$0xff] }
 0xea2   :  { %2075 = vrcp.f32 %v767_v3  ;;  %v779_v40 = vand.u32 2147483648, %v767_v3  ;;  %vm773_vm6 = vweird.f32 %v767_v3  ;;  %v777_v2 = vand.u32 2147483647, %v767_v3 }
 0xea4   :  { %v780_v42 = vor.u32 1.1754944e-38, %v779_v40  ;;  %vm778_vm1 = vcmp.eq.f32.partialorder %v777_v2, 8.507059e+37  ;;  %v2684_v40 = vld [vmem:[%s2958_s6] ss:$0 sm:$0xff] }
 0xea8   :  { %v2076_v36 = vpop.eup %2075 }
 0xea9   :  { %v769_v37 = vmul.f32 %v2076_v36, %v767_v3  ;;  %vm774_vm5 = vweird.f32 %v2076_v36  ;;  %v2635_v3 = vld [vmem:[#allocation6] sm:$0xff] }
 0xeaa   :  { %vm775_vm7 = vmor %vm773_vm6, %vm774_vm5  ;;  %vm891_vm5 = vcmp.ge.s32.totalorder %v2424_v11, 5  ;;  %vm892_vm6 = vcmp.lt.s32.totalorder %v2424_v11, 15 }
 0xeab   :  { %v770_v5 = vsub.f32 1.0, %v769_v37 }
 0xead   :  { %v771_v38 = vmul.f32 %v2076_v36, %v770_v5  ;;  %v1950_v5 = vsel %vm896_vm15, 1.0, %v2296_v13 }
 0xeae   :  { %899 = vst [vmem:[%s2961_s9] sm:$0xff] %v1950_v5 }
 0xeaf   :  { %v772_v39 = vadd.f32 %v2076_v36, %v771_v38  ;;  %v2305_v38 = vmov 1.0  }
 0xeb1   :  { %v776_v41 = vsel %vm775_vm7, %v2076_v36, %v772_v39  ;;  %vm2740_vm7 = vmand %vm891_vm5, %vm892_vm6 }
 0xeb2   :  { %v781_v44 = vsel %vm778_vm1, %v780_v42, %v776_v41  ;;  %vm890_vm1 = vcmp.lt.s32.totalorder %v2424_v11, 5 }
 0xeb3   :  { %v784_v46 = vmul.f32 %v781_v44, %v731_v25  ;;  %v2586_v25 = vld [vmem:[#allocation6 + $0x50] sm:$0xff] }
 0xeb4   :  { %930 = vmatpush.msra.mxu1 %v2586_v25  ;;  %1084 = vmatpush.msrb.mxu0 %v2586_v25 }
 0xeb6   :  { %931 = vmatpush.msra.mxu1 %v2593_v27  ;;  %1085 = vmatpush.msrb.mxu0 %v2593_v27 }
 0xeb8   :  { %932 = vmatpush.msra.mxu1 %v2598_v28  ;;  %1086 = vmatpush.msrb.mxu0 %v2598_v28 }
 0xeba   :  { %933 = vmatpush.msra.mxu1 %v2604_v29  ;;  %1087 = vmatpush.msrb.mxu0 %v2604_v29 }
 0xebc   :  { %934 = vmatpush.msra.mxu1 %v2609_v30  ;;  %1088 = vmatpush.msrb.mxu0 %v2609_v30 }
 0xebe   :  { %935 = vmatpush.msra.mxu1 %v2614_v31  ;;  %1089 = vmatpush.msrb.mxu0 %v2614_v31 }
 0xec0   :  { %936 = vmatpush.msra.mxu1 %v2619_v32  ;;  %1090 = vmatpush.msrb.mxu0 %v2619_v32 }
 0xec2   :  { %937 = vmatpush.msra.mxu1 %v2623_v33  ;;  %1091 = vmatpush.msrb.mxu0 %v2623_v33 }
 0xec4   :  { %938 = vmatpush.msra.mxu1 %v2627_v34  ;;  %1092 = vmatpush.msrb.mxu0 %v2627_v34 }
 0xec6   :  { %939 = vmatpush.msra.mxu1 %v2631_v35  ;;  %1093 = vmatpush.msrb.mxu0 %v2631_v35 }
 0xec8   :  { %940 = vmatpush.msra.mxu1 %v2635_v3  ;;  %1094 = vmatpush.msrb.mxu0 %v2635_v3 }
 0xec9   :  { %1952 = vmatmul.msk.f32.vlgmr.msra.gmra.mxu1 %vm896_vm15, %v2305_v38 }
 0xeca   :  { %1375 = vmatpush.msrb.mxu1 %v2563_v53 }
 0xecc   :  { %1376 = vmatpush.msrb.mxu1 %v2565_v9 }
 0xece   :  { %1377 = vmatpush.msrb.mxu1 %v2568_v17 }
 0xed0   :  { %1378 = vmatpush.msrb.mxu1 %v2571_v20 }
 0xed2   :  { %1379 = vmatpush.msrb.mxu1 %v2579_v23 }
 0xed4   :  { %1380 = vmatpush.msrb.mxu1 %v2586_v25 }
 0xed6   :  { %1381 = vmatpush.msrb.mxu1 %v2593_v27 }
 0xed8   :  { %1382 = vmatpush.msrb.mxu1 %v2598_v28 }
 0xeda   :  { %1383 = vmatpush.msrb.mxu1 %v2604_v29 }
 0xedc   :  { %1384 = vmatpush.msrb.mxu1 %v2609_v30 }
 0xede   :  { %1385 = vmatpush.msrb.mxu1 %v2614_v31 }
 0xee0   :  { %1386 = vmatpush.msrb.mxu1 %v2619_v32 }
 0xee2   :  { %1387 = vmatpush.msrb.mxu1 %v2623_v33 }
 0xee4   :  { %1388 = vmatpush.msrb.mxu1 %v2627_v34 }
 0xee6   :  { %1389 = vmatpush.msrb.mxu1 %v2631_v35 }
 0xee8   :  { %1390 = vmatpush.msrb.mxu1 %v2635_v3 }
 0xeea   :  { %1811 = vmatpush.msra.mxu1 %v2573_v21 }
 0xeec   :  { %1812 = vmatpush.msra.mxu1 %v2575_v22 }
 0xeee   :  { %1813 = vmatpush.msra.mxu1 %v2581_v24 }
 0xef0   :  { %1814 = vmatpush.msra.mxu1 %v2588_v26 }
 0xf10   :  { %v787_v43 = vpop.permute.xlu1 %786 }
 0xf11   :  { %v789_v45 = vmul.f32 %v787_v43, %v781_v44 }
 0xf13   :  { %791 = vrot.lane.b32.xlu2 %v789_v45, %s2297_s13 }
 0xf46   :  { %v942_v13 = vpop.f32.mrf.mxu1 }
 0xf6d   :  { %v792_v47 = vpop.permute.xlu2 %791 }
 0xf6e   :  { %v794_v18 = vadd.f32 %v792_v47, %v784_v46 }
 0xf70   :  { %2077 = vtanh.f32 %v794_v18 }
 0xf76   :  { %v2078_v48 = vpop.eup %2077 }
 0xf77   :  { %797 = vrot.lane.b32.xlu0 %v2078_v48, %s2297_s13 }
 0xfe9   :  { %v798_v49 = vpop.permute.xlu0 %797 }
 0xfea   :  { %v800_v50 = vmul.f32 %v798_v49, %v781_v44 }
 0xfec   :  { %802 = vrot.lane.b32.xlu1 %v800_v50, %s2300_s3 }
0x105e   :  { %v803_v51 = vpop.permute.xlu1 %802 }
0x105f   :  { %1948 = vmatmul.msk.f32.vlgmr.msra.gmra.mxu3 %vm361_vm10, %v803_v51 }
0x1060   :  { %1219 = vmatpush.msra.mxu3 %v2573_v21 }
0x1062   :  { %1220 = vmatpush.msra.mxu3 %v2575_v22 }
0x1064   :  { %1221 = vmatpush.msra.mxu3 %v2581_v24 }
0x1066   :  { %1222 = vmatpush.msra.mxu3 %v2588_v26 }
0x10e2   :  { %v823_v54 = vpop.f32.mrf.mxu3 }
0x10e3   :  { %v826_v55 = vadd.f32 %v823_v54, %v359_v52 }
0x10e5   :  { %2079 = vtanh.f32 %v826_v55  ;;  %v1949_v57 = vmul.f32 -1.442695, %v826_v55 }
0x10e7   :  { %2081 = vpow2.f32 %v1949_v57 }
0x10eb   :  { %v2080_v56 = vpop.eup %2079 }
0x10ec   :  { %849 = vrot.lane.b32.xlu2 %v2080_v56, %s2297_s13 }
0x10ed   :  { %v2082_v58 = vpop.eup %2081 }
0x10ee   :  { %v830_v59 = vadd.f32 1.0, %v2082_v58 }
0x10f0   :  { %2083 = vrcp.f32 %v830_v59  ;;  %v842_v0 = vand.u32 2147483648, %v830_v59  ;;  %vm836_vm9 = vweird.f32 %v830_v59  ;;  %v840_v19 = vand.u32 2147483647, %v830_v59 }
0x10f2   :  { %v843_v4 = vor.u32 1.1754944e-38, %v842_v0  ;;  %vm841_vm12 = vcmp.eq.f32.partialorder %v840_v19, 8.507059e+37  ;;  %v2699_v0 = vld [vmem:[#allocation9 + $0x8] sm:$0xff]  ;;  %v2702_v19 = vld [vmem:[#allocation9] sm:$0xff] }
0x10f6   :  { %v2084_v60 = vpop.eup %2083 }
0x10f7   :  { %v832_v61 = vmul.f32 %v2084_v60, %v830_v59  ;;  %vm837_vm8 = vweird.f32 %v2084_v60 }
0x10f8   :  { %vm838_vm11 = vmor %vm836_vm9, %vm837_vm8 }
0x10f9   :  { %v833_v62 = vsub.f32 1.0, %v832_v61 }
0x10fb   :  { %v834_v63 = vmul.f32 %v2084_v60, %v833_v62 }
0x10fd   :  { %v835_v1 = vadd.f32 %v2084_v60, %v834_v63  ;;  %v2694_v63 = vld [vmem:[#allocation9 + $0x18] sm:$0xff] }
0x10fe   :  { %1006 = vmatpush.msrb.mxu2 %v2694_v63 }
0x10ff   :  { %v839_v10 = vsel %vm838_vm11, %v2084_v60, %v835_v1  ;;  %v2696_v1 = vld [vmem:[#allocation9 + $0x10] sm:$0xff] }
0x1100   :  { %v2554_v14 = vsel %vm841_vm12, %v843_v4, %v839_v10  ;;  %1007 = vmatpush.msrb.mxu2 %v2696_v1 }
0x1101   :  { %v847_v16 = vmul.f32 %v2554_v14, %v794_v18 }
0x1102   :  { %1008 = vmatpush.msrb.mxu2 %v2699_v0 }
0x1104   :  { %1009 = vmatpush.msrb.mxu2 %v2702_v19 }
0x1106   :  { %1154 = vmatpush.msra.mxu2 %v2694_v63 }
0x1108   :  { %1155 = vmatpush.msra.mxu2 %v2696_v1 }
0x110a   :  { %1156 = vmatpush.msra.mxu2 %v2699_v0 }
0x110c   :  { %1157 = vmatpush.msra.mxu2 %v2702_v19 }
0x1146   :  { %v850_v12 = vpop.permute.xlu2 %849 }
0x1147   :  { %v852_v15 = vmul.f32 %v850_v12, %v2554_v14 }
0x1149   :  { %854 = vrot.lane.b32.xlu0 %v852_v15, %s2297_s13 }
0x11bb   :  { %v855_v6 = vpop.permute.xlu0 %854 }
0x11bc   :  { %v2559_v7 = vadd.f32 %v855_v6, %v847_v16 }
0x11be   :  { %2085 = vtanh.f32 %v2559_v7 }
0x11c4   :  { %v2086_v8 = vpop.eup %2085 }
0x11c5   :  { %860 = vrot.lane.b32.xlu1 %v2086_v8, %s2297_s13 }
0x1237   :  { %v861_v36 = vpop.permute.xlu1 %860 }
0x1238   :  { %v863_v37 = vmul.f32 %v861_v36, %v2554_v14  ;;  %v2736_v14 = vld [vmem:[%s2960_s8] ss:$0 sm:$0xff] }
0x123a   :  { %901 = vrot.lane.b32.xlu2 %v863_v37, %s2300_s3 }
0x1294   :  { %v902_v39 = vpop.permute.xlu2 %901 }
0x1295   :  { %1951 = vmatmul.msk.f32.vlgmr.msra.gmra.mxu0 %vm361_vm10, %v902_v39 }
0x1296   :  { %1515 = vmatpush.msra.mxu0 %v2573_v21 }
0x1298   :  { %1516 = vmatpush.msra.mxu0 %v2575_v22 }
0x129a   :  { %1517 = vmatpush.msra.mxu0 %v2581_v24 }
0x129c   :  { %1518 = vmatpush.msra.mxu0 %v2588_v26 }
0x1312   :  { %v922_v2 = vpop.f32.mrf.mxu0 }
0x1313   :  { %v943_v41 = vadd.f32 %v942_v13, %v922_v2 }
0x1315   :  { %v948_v42 = vadd.f32 %v2684_v40, %v943_v41 }
0x1317   :  { %2087 = vtanh.f32 %v948_v42  ;;  %v1953_v44 = vmul.f32 -1.442695, %v948_v42 }
0x1319   :  { %2089 = vpow2.f32 %v1953_v44 }
0x131d   :  { %v2088_v43 = vpop.eup %2087 }
0x131e   :  { %971 = vrot.lane.b32.xlu0 %v2088_v43, %s2297_s13 }
0x131f   :  { %v2090_v45 = vpop.eup %2089 }
0x1320   :  { %v952_v46 = vadd.f32 1.0, %v2090_v45 }
0x1322   :  { %2091 = vrcp.f32 %v952_v46  ;;  %v964_v51 = vand.u32 2147483648, %v952_v46  ;;  %vm958_vm0 = vweird.f32 %v952_v46  ;;  %v962_v52 = vand.u32 2147483647, %v952_v46 }
0x1324   :  { %v965_v55 = vor.u32 1.1754944e-38, %v964_v51  ;;  %vm963_vm4 = vcmp.eq.f32.partialorder %v962_v52, 8.507059e+37 }
0x1328   :  { %v2092_v47 = vpop.eup %2091 }
0x1329   :  { %v954_v18 = vmul.f32 %v2092_v47, %v952_v46  ;;  %vm959_vm2 = vweird.f32 %v2092_v47 }
0x132a   :  { %vm960_vm3 = vmor %vm958_vm0, %vm959_vm2 }
0x132b   :  { %v955_v48 = vsub.f32 1.0, %v954_v18 }
0x132d   :  { %v956_v49 = vmul.f32 %v2092_v47, %v955_v48 }
0x132f   :  { %v957_v50 = vadd.f32 %v2092_v47, %v956_v49 }
0x1331   :  { %v961_v54 = vsel %vm960_vm3, %v2092_v47, %v957_v50 }
0x1332   :  { %v966_v57 = vsel %vm963_vm4, %v965_v55, %v961_v54 }
0x1333   :  { %v969_v59 = vmul.f32 %v966_v57, %v2559_v7 }
0x1390   :  { %v972_v56 = vpop.permute.xlu0 %971 }
0x1391   :  { %v974_v58 = vmul.f32 %v972_v56, %v966_v57 }
0x1393   :  { %976 = vrot.lane.b32.xlu1 %v974_v58, %s2297_s13 }
0x1405   :  { %v977_v60 = vpop.permute.xlu1 %976 }
0x1406   :  { %v2690_v61 = vadd.f32 %v977_v60, %v969_v59 }
0x1408   :  { %2093 = vtanh.f32 %v2690_v61 }
0x140e   :  { %v2094_v62 = vpop.eup %2093 }
0x140f   :  { %982 = vrot.lane.b32.xlu2 %v2094_v62, %s2297_s13 }
0x1469   :  { %v983_v10 = vpop.permute.xlu2 %982 }
0x146a   :  { %v985_v4 = vmul.f32 %v983_v10, %v966_v57 }
0x146c   :  { %990 = vrot.lane.b32.xlu0 %v985_v4, %s2300_s3 }
0x14de   :  { %v991_v12 = vpop.permute.xlu0 %990 }
0x14df   :  { %1954 = vmatmul.msk.f32.vlgmr.msrb.gmra.mxu2 %vm361_vm10, %v991_v12  ;;  %1957 = vmatmul.msk.f32.vlgmr.msrb.gmra.mxu3 %vm361_vm10, %v991_v12 }
0x14e0   :  { %1227 = vmatpush.msrb.mxu2 %v2563_v53  ;;  %1302 = vmatpush.msrb.mxu3 %v2694_v63 }
0x14e2   :  { %1228 = vmatpush.msrb.mxu2 %v2565_v9  ;;  %1303 = vmatpush.msrb.mxu3 %v2696_v1 }
0x14e4   :  { %1229 = vmatpush.msrb.mxu2 %v2568_v17  ;;  %1304 = vmatpush.msrb.mxu3 %v2699_v0 }
0x14e6   :  { %1230 = vmatpush.msrb.mxu2 %v2571_v20  ;;  %1305 = vmatpush.msrb.mxu3 %v2702_v19 }
0x14e8   :  { %1231 = vmatpush.msrb.mxu2 %v2579_v23 }
0x14ea   :  { %1232 = vmatpush.msrb.mxu2 %v2586_v25 }
0x14ec   :  { %1233 = vmatpush.msrb.mxu2 %v2593_v27 }
0x14ee   :  { %1234 = vmatpush.msrb.mxu2 %v2598_v28 }
0x14f0   :  { %1235 = vmatpush.msrb.mxu2 %v2604_v29 }
0x14f2   :  { %1236 = vmatpush.msrb.mxu2 %v2609_v30 }
0x14f4   :  { %1237 = vmatpush.msrb.mxu2 %v2614_v31 }
0x14f6   :  { %1238 = vmatpush.msrb.mxu2 %v2619_v32 }
0x14f8   :  { %1239 = vmatpush.msrb.mxu2 %v2623_v33 }
0x14fa   :  { %1240 = vmatpush.msrb.mxu2 %v2627_v34 }
0x14fc   :  { %1241 = vmatpush.msrb.mxu2 %v2631_v35 }
0x14fe   :  { %1242 = vmatpush.msrb.mxu2 %v2635_v3 }
0x1562   :  { %v1011_v15 = vpop.f32.mrf.mxu2  ;;  %v1076_v62 = vpop.f32.mrf.mxu3 }
0x1563   :  { %v1012_v6 = vadd.f32 %v2736_v14, %v1011_v15 }
0x1565   :  { %1955 = vst [vmem:[%s2961_s9 + $0x8] sm:$0xff] %v1012_v6  ;;  %v1035_v7 = vsel %vm2740_vm7, %v1012_v6, -inf  ;;  %v1016_v8 = vsel %vm890_vm1, %v1012_v6, -inf }
0x1566   :  { %1036 = vmax.xlane.f32.xlu2 %v1035_v7  ;;  %1017 = vmax.xlane.f32.xlu1 %v1016_v8 }
0x15d9   :  { %v1037_v36 = vpop.xlane.xlu2 %1036  ;;  %v1018_v37 = vpop.xlane.xlu1 %1017 }
0x15da   :  { %vm1038_vm8 = vcmp.eq.f32.partialorder %v1035_v7, %v1037_v36  ;;  %vm1019_vm9 = vcmp.eq.f32.partialorder %v1016_v8, %v1018_v37 }
0x15db   :  { %v1039_v5 = vsel %vm1038_vm8, %v2424_v11, 128  ;;  %v1020_v39 = vsel %vm1019_vm9, %v2424_v11, 128 }
0x15dc   :  { %v1041_v13 = vshra.s32 %v1039_v5, 16  ;;  %v1022_v2 = vshra.s32 %v1020_v39, 16  ;;  %v1040_v43 = vand.u32 65535, %v1039_v5  ;;  %v1021_v44 = vand.u32 65535, %v1020_v39 }
0x15de   :  { %v1043_v41 = vcvt.s32.f32 %v1041_v13  ;;  %v1024_v42 = vcvt.s32.f32 %v1022_v2  ;;  %v1042_v47 = vcvt.s32.f32 %v1040_v43  ;;  %v1023_v18 = vcvt.s32.f32 %v1021_v44 }
0x15e0   :  { %1044 = vmin.xlane.f32.xlu2 %v1043_v41  ;;  %1025 = vmin.xlane.f32.xlu0 %v1024_v42 }
0x1653   :  { %v1045_v45 = vpop.xlane.xlu2 %1044  ;;  %v1026_v46 = vpop.xlane.xlu0 %1025 }
0x1654   :  { %vm1046_vm11 = vcmp.eq.f32.partialorder %v1043_v41, %v1045_v45  ;;  %vm1027_vm12 = vcmp.eq.f32.partialorder %v1024_v42, %v1026_v46  ;;  %v1051_v50 = vcvt.f32.s32 %v1045_v45  ;;  %v1032_v51 = vcvt.f32.s32 %v1026_v46 }
0x1655   :  { %v1047_v48 = vsel %vm1046_vm11, %v1042_v47, inf  ;;  %v1028_v49 = vsel %vm1027_vm12, %v1023_v18, inf }
0x1656   :  { %1048 = vmin.xlane.f32.xlu2 %v1047_v48  ;;  %1029 = vmin.xlane.f32.xlu1 %v1028_v49  ;;  %v1052_v55 = vshll.u32 %v1051_v50, 16  ;;  %v1033_v56 = vshll.u32 %v1032_v51, 16 }
0x16c9   :  { %v1049_v52 = vpop.xlane.xlu2 %1048  ;;  %v1030_v54 = vpop.xlane.xlu1 %1029 }
0x16ca   :  { %v1050_v57 = vcvt.f32.s32 %v1049_v52  ;;  %v1031_v58 = vcvt.f32.s32 %v1030_v54 }
0x16cc   :  { %v1053_v59 = vadd.s32 %v1052_v55, %v1050_v57  ;;  %v1034_v60 = vadd.s32 %v1033_v56, %v1031_v58 }
0x16ce   :  { %vm1055_vm13 = vcmp.eq.s32.totalorder %v2424_v11, %v1053_v59  ;;  %vm1054_vm14 = vcmp.eq.s32.totalorder %v2424_v11, %v1034_v60 }
0x16cf   :  { %vm1056_vm15 = vmor %vm1054_vm14, %vm1055_vm13 }
0x16d0   :  { %1958 = vmatmul.msk.f32.vlgmr.msrb.gmra.mxu0 %vm1056_vm15, %v2305_v38 }
0x16d1   :  { %1598 = vmatpush.msrb.mxu0 %v2694_v63 }
0x16d3   :  { %1599 = vmatpush.msrb.mxu0 %v2696_v1 }
0x16d5   :  { %1600 = vmatpush.msrb.mxu0 %v2699_v0 }
0x16d7   :  { %1601 = vmatpush.msrb.mxu0 %v2702_v19 }
0x174d   :  { %v1096_v10 = vpop.f32.mrf.mxu0 }
0x174e   :  { %v1097_v4 = vadd.f32 %v1096_v10, %v1076_v62 }
0x1750   :  { %v1099_v12 = vadd.f32 %v2684_v40, %v1097_v4 }
0x1752   :  { %2095 = vtanh.f32 %v1099_v12  ;;  %v1959_v6 = vmul.f32 -1.442695, %v1099_v12 }
0x1754   :  { %2097 = vpow2.f32 %v1959_v6 }
0x1758   :  { %v2096_v15 = vpop.eup %2095 }
0x1759   :  { %1122 = vrot.lane.b32.xlu0 %v2096_v15, %s2297_s13 }
0x175a   :  { %v2098_v7 = vpop.eup %2097 }
0x175b   :  { %v1103_v8 = vadd.f32 1.0, %v2098_v7 }
0x175d   :  { %2099 = vrcp.f32 %v1103_v8  ;;  %v1115_v2 = vand.u32 2147483648, %v1103_v8  ;;  %vm1109_vm0 = vweird.f32 %v1103_v8  ;;  %v1113_v41 = vand.u32 2147483647, %v1103_v8 }
0x175f   :  { %v1116_v43 = vor.u32 1.1754944e-38, %v1115_v2  ;;  %vm1114_vm4 = vcmp.eq.f32.partialorder %v1113_v41, 8.507059e+37 }
0x1763   :  { %v2100_v36 = vpop.eup %2099 }
0x1764   :  { %v1105_v37 = vmul.f32 %v2100_v36, %v1103_v8  ;;  %vm1110_vm2 = vweird.f32 %v2100_v36 }
0x1765   :  { %vm1111_vm3 = vmor %vm1109_vm0, %vm1110_vm2 }
0x1766   :  { %v1106_v5 = vsub.f32 1.0, %v1105_v37 }
0x1768   :  { %v1107_v39 = vmul.f32 %v2100_v36, %v1106_v5 }
0x176a   :  { %v1108_v13 = vadd.f32 %v2100_v36, %v1107_v39 }
0x176c   :  { %v1112_v42 = vsel %vm1111_vm3, %v2100_v36, %v1108_v13 }
0x176d   :  { %v1117_v45 = vsel %vm1114_vm4, %v1116_v43, %v1112_v42 }
0x176e   :  { %v1120_v47 = vmul.f32 %v1117_v45, %v2690_v61 }
0x17cb   :  { %v1123_v44 = vpop.permute.xlu0 %1122 }
0x17cc   :  { %v1125_v46 = vmul.f32 %v1123_v44, %v1117_v45 }
0x17ce   :  { %1127 = vrot.lane.b32.xlu1 %v1125_v46, %s2297_s13 }
0x1840   :  { %v1128_v18 = vpop.permute.xlu1 %1127 }
0x1841   :  { %v2766_v48 = vadd.f32 %v1128_v18, %v1120_v47 }
0x1843   :  { %2101 = vtanh.f32 %v2766_v48 }
0x1849   :  { %v2102_v49 = vpop.eup %2101 }
0x184a   :  { %1133 = vrot.lane.b32.xlu2 %v2102_v49, %s2297_s13 }
0x18a4   :  { %v1134_v50 = vpop.permute.xlu2 %1133 }
0x18a5   :  { %v1136_v51 = vmul.f32 %v1134_v50, %v1117_v45 }
0x18a7   :  { %1138 = vrot.lane.b32.xlu0 %v1136_v51, %s2300_s3 }
0x1919   :  { %v1139_v52 = vpop.permute.xlu0 %1138 }
0x191a   :  { %1960 = vmatmul.msk.f32.vlgmr.msra.gmra.mxu2 %vm361_vm10, %v1139_v52  ;;  %1963 = vmatmul.msk.f32.vlgmr.msra.gmra.mxu3 %vm361_vm10, %v1139_v52 }
0x191b   :  { %1367 = vmatpush.msra.mxu3 %v2573_v21  ;;  %1663 = vmatpush.msra.mxu2 %v2573_v21 }
0x191d   :  { %1368 = vmatpush.msra.mxu3 %v2575_v22  ;;  %1664 = vmatpush.msra.mxu2 %v2575_v22 }
0x191f   :  { %1369 = vmatpush.msra.mxu3 %v2581_v24  ;;  %1665 = vmatpush.msra.mxu2 %v2581_v24 }
0x1921   :  { %1370 = vmatpush.msra.mxu3 %v2588_v26  ;;  %1666 = vmatpush.msra.mxu2 %v2588_v26 }
0x199d   :  { %v1159_v61 = vpop.f32.mrf.mxu2  ;;  %v1224_v45 = vpop.f32.mrf.mxu3 }
0x199e   :  { %v1160_v54 = vadd.f32 %v2736_v14, %v1159_v61 }
0x19a0   :  { %1961 = vst [vmem:[%s2961_s9 + $0x10] sm:$0xff] %v1160_v54  ;;  %v1183_v21 = vsel %vm2740_vm7, %v1160_v54, -inf  ;;  %v1164_v22 = vsel %vm890_vm1, %v1160_v54, -inf }
0x19a1   :  { %1184 = vmax.xlane.f32.xlu0 %v1183_v21  ;;  %1165 = vmax.xlane.f32.xlu1 %v1164_v22 }
0x1a14   :  { %v1185_v24 = vpop.xlane.xlu0 %1184  ;;  %v1166_v55 = vpop.xlane.xlu1 %1165 }
0x1a15   :  { %vm1186_vm5 = vcmp.eq.f32.partialorder %v1183_v21, %v1185_v24  ;;  %vm1167_vm6 = vcmp.eq.f32.partialorder %v1164_v22, %v1166_v55 }
0x1a16   :  { %v1187_v26 = vsel %vm1186_vm5, %v2424_v11, 128  ;;  %v1168_v56 = vsel %vm1167_vm6, %v2424_v11, 128 }
0x1a17   :  { %v1189_v57 = vshra.s32 %v1187_v26, 16  ;;  %v1170_v58 = vshra.s32 %v1168_v56, 16  ;;  %v1188_v62 = vand.u32 65535, %v1187_v26  ;;  %v1169_v10 = vand.u32 65535, %v1168_v56 }
0x1a19   :  { %v1191_v59 = vcvt.s32.f32 %v1189_v57  ;;  %v1172_v60 = vcvt.s32.f32 %v1170_v58  ;;  %v1171_v15 = vcvt.s32.f32 %v1169_v10  ;;  %v1190_v6 = vcvt.s32.f32 %v1188_v62 }
0x1a1b   :  { %1192 = vmin.xlane.f32.xlu1 %v1191_v59  ;;  %1173 = vmin.xlane.f32.xlu2 %v1172_v60 }
0x1a8e   :  { %v1174_v4 = vpop.xlane.xlu2 %1173  ;;  %v1193_v12 = vpop.xlane.xlu1 %1192 }
0x1a8f   :  { %vm1175_vm8 = vcmp.eq.f32.partialorder %v1172_v60, %v1174_v4  ;;  %vm1194_vm9 = vcmp.eq.f32.partialorder %v1191_v59, %v1193_v12  ;;  %v1180_v36 = vcvt.f32.s32 %v1174_v4  ;;  %v1199_v37 = vcvt.f32.s32 %v1193_v12 }
0x1a90   :  { %v1176_v7 = vsel %vm1175_vm8, %v1171_v15, inf  ;;  %v1195_v8 = vsel %vm1194_vm9, %v1190_v6, inf }
0x1a91   :  { %1177 = vmin.xlane.f32.xlu0 %v1176_v7  ;;  %1196 = vmin.xlane.f32.xlu2 %v1195_v8  ;;  %v1181_v13 = vshll.u32 %v1180_v36, 16  ;;  %v1200_v2 = vshll.u32 %v1199_v37, 16 }
0x1b04   :  { %v1178_v5 = vpop.xlane.xlu0 %1177  ;;  %v1197_v39 = vpop.xlane.xlu2 %1196 }
0x1b05   :  { %v1179_v41 = vcvt.f32.s32 %v1178_v5  ;;  %v1198_v42 = vcvt.f32.s32 %v1197_v39 }
0x1b07   :  { %v1182_v43 = vadd.s32 %v1181_v13, %v1179_v41  ;;  %v1201_v44 = vadd.s32 %v1200_v2, %v1198_v42 }
0x1b09   :  { %vm1202_vm11 = vcmp.eq.s32.totalorder %v2424_v11, %v1182_v43  ;;  %vm1203_vm12 = vcmp.eq.s32.totalorder %v2424_v11, %v1201_v44 }
0x1b0a   :  { %vm1204_vm13 = vmor %vm1202_vm11, %vm1203_vm12 }
0x1b0b   :  { %1964 = vmatmul.msk.f32.vlgmr.msrb.gmra.mxu2 %vm1204_vm13, %v2305_v38 }
0x1b0c   :  { %1746 = vmatpush.msrb.mxu2 %v2694_v63 }
0x1b0e   :  { %1747 = vmatpush.msrb.mxu2 %v2696_v1 }
0x1b10   :  { %1748 = vmatpush.msrb.mxu2 %v2699_v0 }
0x1b12   :  { %1749 = vmatpush.msrb.mxu2 %v2702_v19 }
0x1b8e   :  { %v1244_v46 = vpop.f32.mrf.mxu2 }
0x1b8f   :  { %v1245_v47 = vadd.f32 %v1244_v46, %v1224_v45 }
0x1b91   :  { %v1247_v18 = vadd.f32 %v2684_v40, %v1245_v47 }
0x1b93   :  { %2103 = vtanh.f32 %v1247_v18  ;;  %v1965_v50 = vmul.f32 -1.442695, %v1247_v18 }
0x1b95   :  { %2105 = vpow2.f32 %v1965_v50 }
0x1b99   :  { %v2104_v49 = vpop.eup %2103 }
0x1b9a   :  { %1270 = vrot.lane.b32.xlu1 %v2104_v49, %s2297_s13 }
0x1b9b   :  { %v2106_v51 = vpop.eup %2105 }
0x1b9c   :  { %v1251_v52 = vadd.f32 1.0, %v2106_v51 }
0x1b9e   :  { %2107 = vrcp.f32 %v1251_v52  ;;  %v1263_v55 = vand.u32 2147483648, %v1251_v52  ;;  %vm1257_vm15 = vweird.f32 %v1251_v52  ;;  %v1261_v26 = vand.u32 2147483647, %v1251_v52 }
0x1ba0   :  { %v1264_v57 = vor.u32 1.1754944e-38, %v1263_v55  ;;  %vm1262_vm0 = vcmp.eq.f32.partialorder %v1261_v26, 8.507059e+37 }
0x1ba4   :  { %v2108_v61 = vpop.eup %2107 }
0x1ba5   :  { %v1253_v54 = vmul.f32 %v2108_v61, %v1251_v52  ;;  %vm1258_vm14 = vweird.f32 %v2108_v61 }
0x1ba6   :  { %vm1259_vm2 = vmor %vm1257_vm15, %vm1258_vm14 }
0x1ba7   :  { %v1254_v21 = vsub.f32 1.0, %v1253_v54 }
0x1ba9   :  { %v1255_v22 = vmul.f32 %v2108_v61, %v1254_v21 }
0x1bab   :  { %v1256_v24 = vadd.f32 %v2108_v61, %v1255_v22 }
0x1bad   :  { %v1260_v56 = vsel %vm1259_vm2, %v2108_v61, %v1256_v24 }
0x1bae   :  { %v1265_v59 = vsel %vm1262_vm0, %v1264_v57, %v1260_v56 }
0x1baf   :  { %v1268_v62 = vmul.f32 %v1265_v59, %v2766_v48 }
0x1c0c   :  { %v1271_v58 = vpop.permute.xlu1 %1270 }
0x1c0d   :  { %v1273_v60 = vmul.f32 %v1271_v58, %v1265_v59 }
0x1c0f   :  { %1275 = vrot.lane.b32.xlu0 %v1273_v60, %s2297_s13 }
0x1c81   :  { %v1276_v10 = vpop.permute.xlu0 %1275 }
0x1c82   :  { %v2802_v4 = vadd.f32 %v1276_v10, %v1268_v62 }
0x1c84   :  { %2109 = vtanh.f32 %v2802_v4 }
0x1c8a   :  { %v2110_v12 = vpop.eup %2109 }
0x1c8b   :  { %1281 = vrot.lane.b32.xlu2 %v2110_v12, %s2297_s13 }
0x1ce5   :  { %v1282_v15 = vpop.permute.xlu2 %1281 }
0x1ce6   :  { %v1284_v6 = vmul.f32 %v1282_v15, %v1265_v59 }
0x1ce8   :  { %1286 = vrot.lane.b32.xlu0 %v1284_v6, %s2300_s3 }
0x1d5a   :  { %v1287_v7 = vpop.permute.xlu0 %1286 }
0x1d5b   :  { %1966 = vmatmul.msk.f32.vlgmr.msrb.gmra.mxu3 %vm361_vm10, %v1287_v7 }
0x1d5c   :  { %1450 = vmatpush.msrb.mxu3 %v2694_v63 }
0x1d5e   :  { %1451 = vmatpush.msrb.mxu3 %v2696_v1 }
0x1d60   :  { %1452 = vmatpush.msrb.mxu3 %v2699_v0 }
0x1d62   :  { %1453 = vmatpush.msrb.mxu3 %v2702_v19 }
0x1d63   :  { %1969 = vmatmul.msk.f32.vlgmr.msra.gmra.mxu3 %vm361_vm10, %v1287_v7 }
0x1d64   :  { %1523 = vmatpush.msra.mxu3 %v2563_v53 }
0x1d66   :  { %1524 = vmatpush.msra.mxu3 %v2565_v9 }
0x1d68   :  { %1525 = vmatpush.msra.mxu3 %v2568_v17 }
0x1d6a   :  { %1526 = vmatpush.msra.mxu3 %v2571_v20 }
0x1d6c   :  { %1527 = vmatpush.msra.mxu3 %v2579_v23 }
0x1d6e   :  { %1528 = vmatpush.msra.mxu3 %v2586_v25 }
0x1d70   :  { %1529 = vmatpush.msra.mxu3 %v2593_v27 }
0x1d72   :  { %1530 = vmatpush.msra.mxu3 %v2598_v28 }
0x1d74   :  { %1531 = vmatpush.msra.mxu3 %v2604_v29 }
0x1d76   :  { %1532 = vmatpush.msra.mxu3 %v2609_v30 }
0x1d78   :  { %1533 = vmatpush.msra.mxu3 %v2614_v31 }
0x1d7a   :  { %1534 = vmatpush.msra.mxu3 %v2619_v32 }
0x1d7c   :  { %1535 = vmatpush.msra.mxu3 %v2623_v33 }
0x1d7e   :  { %1536 = vmatpush.msra.mxu3 %v2627_v34 }
0x1d80   :  { %1537 = vmatpush.msra.mxu3 %v2631_v35 }
0x1d82   :  { %1538 = vmatpush.msra.mxu3 %v2635_v3 }
0x1dde   :  { %v1307_v48 = vpop.f32.mrf.mxu3 }
0x1ddf   :  { %v1308_v8 = vadd.f32 %v2736_v14, %v1307_v48 }
0x1de1   :  { %1967 = vst [vmem:[%s2961_s9 + $0x18] sm:$0xff] %v1308_v8  ;;  %v1331_v36 = vsel %vm2740_vm7, %v1308_v8, -inf  ;;  %v1312_v37 = vsel %vm890_vm1, %v1308_v8, -inf }
0x1de2   :  { %1332 = vmax.xlane.f32.xlu2 %v1331_v36  ;;  %1313 = vmax.xlane.f32.xlu1 %v1312_v37 }
0x1de6   :  { %v1372_v59 = vpop.f32.mrf.mxu3 }
0x1e55   :  { %v1333_v5 = vpop.xlane.xlu2 %1332  ;;  %v1314_v39 = vpop.xlane.xlu1 %1313 }
0x1e56   :  { %vm1334_vm3 = vcmp.eq.f32.partialorder %v1331_v36, %v1333_v5  ;;  %vm1315_vm4 = vcmp.eq.f32.partialorder %v1312_v37, %v1314_v39 }
0x1e57   :  { %v1335_v13 = vsel %vm1334_vm3, %v2424_v11, 128  ;;  %v1316_v2 = vsel %vm1315_vm4, %v2424_v11, 128 }
0x1e58   :  { %v1337_v41 = vshra.s32 %v1335_v13, 16  ;;  %v1318_v42 = vshra.s32 %v1316_v2, 16  ;;  %v1336_v45 = vand.u32 65535, %v1335_v13  ;;  %v1317_v46 = vand.u32 65535, %v1316_v2 }
0x1e5a   :  { %v1339_v43 = vcvt.s32.f32 %v1337_v41  ;;  %v1320_v44 = vcvt.s32.f32 %v1318_v42  ;;  %v1319_v49 = vcvt.s32.f32 %v1317_v46  ;;  %v1338_v50 = vcvt.s32.f32 %v1336_v45 }
0x1e5c   :  { %1340 = vmin.xlane.f32.xlu1 %v1339_v43  ;;  %1321 = vmin.xlane.f32.xlu0 %v1320_v44 }
0x1ecf   :  { %v1322_v47 = vpop.xlane.xlu0 %1321  ;;  %v1341_v18 = vpop.xlane.xlu1 %1340 }
0x1ed0   :  { %vm1323_vm5 = vcmp.eq.f32.partialorder %v1320_v44, %v1322_v47  ;;  %vm1342_vm6 = vcmp.eq.f32.partialorder %v1339_v43, %v1341_v18  ;;  %v1328_v61 = vcvt.f32.s32 %v1322_v47  ;;  %v1347_v54 = vcvt.f32.s32 %v1341_v18 }
0x1ed1   :  { %v1324_v51 = vsel %vm1323_vm5, %v1319_v49, inf  ;;  %v1343_v52 = vsel %vm1342_vm6, %v1338_v50, inf }
0x1ed2   :  { %1325 = vmin.xlane.f32.xlu2 %v1324_v51  ;;  %1344 = vmin.xlane.f32.xlu0 %v1343_v52  ;;  %v1329_v24 = vshll.u32 %v1328_v61, 16  ;;  %v1348_v55 = vshll.u32 %v1347_v54, 16 }
0x1f45   :  { %v1326_v21 = vpop.xlane.xlu2 %1325  ;;  %v1345_v22 = vpop.xlane.xlu0 %1344 }
0x1f46   :  { %v1327_v26 = vcvt.f32.s32 %v1326_v21  ;;  %v1346_v56 = vcvt.f32.s32 %v1345_v22 }
0x1f48   :  { %v1330_v57 = vadd.s32 %v1329_v24, %v1327_v26  ;;  %v1349_v58 = vadd.s32 %v1348_v55, %v1346_v56 }
0x1f4a   :  { %vm1350_vm8 = vcmp.eq.s32.totalorder %v2424_v11, %v1330_v57  ;;  %vm1351_vm9 = vcmp.eq.s32.totalorder %v2424_v11, %v1349_v58 }
0x1f4b   :  { %vm1352_vm11 = vmor %vm1350_vm8, %vm1351_vm9 }
0x1f4c   :  { %1970 = vmatmul.msk.f32.vlgmr.msrb.gmra.mxu1 %vm1352_vm11, %v2305_v38 }
0x1f4d   :  { %1894 = vmatpush.msrb.mxu1 %v2694_v63 }
0x1f4f   :  { %1895 = vmatpush.msrb.mxu1 %v2696_v1 }
0x1f51   :  { %1896 = vmatpush.msrb.mxu1 %v2699_v0 }
0x1f53   :  { %1897 = vmatpush.msrb.mxu1 %v2702_v19 }
0x1fc9   :  { %v1392_v60 = vpop.f32.mrf.mxu1 }
0x1fca   :  { %v1393_v62 = vadd.f32 %v1392_v60, %v1372_v59 }
0x1fcc   :  { %v1395_v10 = vadd.f32 %v2684_v40, %v1393_v62 }
0x1fce   :  { %2111 = vtanh.f32 %v1395_v10  ;;  %v1971_v15 = vmul.f32 -1.442695, %v1395_v10 }
0x1fd0   :  { %2113 = vpow2.f32 %v1971_v15 }
0x1fd4   :  { %v2112_v12 = vpop.eup %2111 }
0x1fd5   :  { %1418 = vrot.lane.b32.xlu1 %v2112_v12, %s2297_s13 }
0x1fd6   :  { %v2114_v6 = vpop.eup %2113 }
0x1fd7   :  { %v1399_v7 = vadd.f32 1.0, %v2114_v6 }
0x1fd9   :  { %2115 = vrcp.f32 %v1399_v7  ;;  %v1411_v19 = vand.u32 2147483648, %v1399_v7  ;;  %vm1405_vm13 = vweird.f32 %v1399_v7  ;;  %v1409_v36 = vand.u32 2147483647, %v1399_v7 }
0x1fdb   :  { %v1412_v5 = vor.u32 1.1754944e-38, %v1411_v19  ;;  %vm1410_vm15 = vcmp.eq.f32.partialorder %v1409_v36, 8.507059e+37 }
0x1fdf   :  { %v2116_v63 = vpop.eup %2115 }
0x1fe0   :  { %v1401_v1 = vmul.f32 %v2116_v63, %v1399_v7  ;;  %vm1406_vm12 = vweird.f32 %v2116_v63 }
0x1fe1   :  { %vm1407_vm14 = vmor %vm1405_vm13, %vm1406_vm12 }
0x1fe2   :  { %v1402_v48 = vsub.f32 1.0, %v1401_v1 }
0x1fe4   :  { %v1403_v0 = vmul.f32 %v2116_v63, %v1402_v48 }
0x1fe6   :  { %v1404_v8 = vadd.f32 %v2116_v63, %v1403_v0 }
0x1fe8   :  { %v1408_v37 = vsel %vm1407_vm14, %v2116_v63, %v1404_v8 }
0x1fe9   :  { %v1413_v13 = vsel %vm1410_vm15, %v1412_v5, %v1408_v37 }
0x1fea   :  { %v1416_v41 = vmul.f32 %v1413_v13, %v2802_v4 }
0x2047   :  { %v1419_v39 = vpop.permute.xlu1 %1418 }
0x2048   :  { %v1421_v2 = vmul.f32 %v1419_v39, %v1413_v13 }
0x204a   :  { %1423 = vrot.lane.b32.xlu2 %v1421_v2, %s2297_s13 }
0x20a4   :  { %v1424_v42 = vpop.permute.xlu2 %1423 }
0x20a5   :  { %v2850_v43 = vadd.f32 %v1424_v42, %v1416_v41 }
0x20a7   :  { %2117 = vtanh.f32 %v2850_v43 }
0x20ad   :  { %v2118_v44 = vpop.eup %2117 }
0x20ae   :  { %1429 = vrot.lane.b32.xlu0 %v2118_v44, %s2297_s13 }
0x2120   :  { %v1430_v45 = vpop.permute.xlu0 %1429 }
0x2121   :  { %v1432_v46 = vmul.f32 %v1430_v45, %v1413_v13 }
0x2123   :  { %1434 = vrot.lane.b32.xlu1 %v1432_v46, %s2300_s3  ;;  %v2143_v46 = vld [vmem:[#allocation6 + $0x78] sm:$0xff] }
0x2195   :  { %v1435_v47 = vpop.permute.xlu1 %1434 }
0x2196   :  { %1972 = vmatmul.msk.f32.vlgmr.msrb.gmra.mxu3 %vm361_vm10, %v1435_v47  ;;  %1975 = vmatmul.msk.f32.vlgmr.msra.gmra.mxu0 %vm361_vm10, %v1435_v47  ;;  %v2145_v47 = vld [vmem:[#allocation6 + $0x68] sm:$0xff] }
0x2197   :  { %1671 = vmatpush.msra.mxu0 %v2563_v53 }
0x2199   :  { %1672 = vmatpush.msra.mxu0 %v2565_v9 }
0x219b   :  { %1673 = vmatpush.msra.mxu0 %v2568_v17 }
0x219d   :  { %1674 = vmatpush.msra.mxu0 %v2571_v20 }
0x219f   :  { %1675 = vmatpush.msra.mxu0 %v2579_v23 }
0x21a1   :  { %1676 = vmatpush.msra.mxu0 %v2586_v25 }
0x21a3   :  { %1677 = vmatpush.msra.mxu0 %v2593_v27 }
0x21a5   :  { %1678 = vmatpush.msra.mxu0 %v2598_v28 }
0x21a7   :  { %1679 = vmatpush.msra.mxu0 %v2604_v29 }
0x21a9   :  { %1680 = vmatpush.msra.mxu0 %v2609_v30 }
0x21ab   :  { %1681 = vmatpush.msra.mxu0 %v2614_v31 }
0x21ad   :  { %1682 = vmatpush.msra.mxu0 %v2619_v32 }
0x21af   :  { %1683 = vmatpush.msra.mxu0 %v2623_v33 }
0x21b1   :  { %1684 = vmatpush.msra.mxu0 %v2627_v34 }
0x21b3   :  { %1685 = vmatpush.msra.mxu0 %v2631_v35 }
0x21b5   :  { %1686 = vmatpush.msra.mxu0 %v2635_v3 }
0x2213   :  { %v1520_v57 = vpop.f32.mrf.mxu0 }
0x2219   :  { %v1455_v53 = vpop.f32.mrf.mxu3 }
0x221a   :  { %v1456_v9 = vadd.f32 %v2736_v14, %v1455_v53  ;;  %v2146_v53 = vld [vmem:[#allocation6 + $0x60] sm:$0xff] }
0x221c   :  { %1973 = vst [vmem:[%s2961_s9 + $0x20] sm:$0xff] %v1456_v9  ;;  %v1479_v17 = vsel %vm2740_vm7, %v1456_v9, -inf  ;;  %v1460_v20 = vsel %vm890_vm1, %v1456_v9, -inf  ;;  %v2147_v9 = vld [vmem:[#allocation6 + $0x58] sm:$0xff] }
0x221d   :  { %1480 = vmax.xlane.f32.xlu2 %v1479_v17  ;;  %1461 = vmax.xlane.f32.xlu0 %v1460_v20 }
0x2290   :  { %v1481_v23 = vpop.xlane.xlu2 %1480  ;;  %v1462_v25 = vpop.xlane.xlu0 %1461 }
0x2291   :  { %vm1482_vm2 = vcmp.eq.f32.partialorder %v1479_v17, %v1481_v23  ;;  %vm1463_vm0 = vcmp.eq.f32.partialorder %v1460_v20, %v1462_v25  ;;  %v2148_v17 = vld [vmem:[#allocation6 + $0x50] sm:$0xff]  ;;  %v2149_v20 = vld [vmem:[#allocation6 + $0x48] sm:$0xff]  ;;  %v2150_v23 = vld [vmem:[#allocation6 + $0x40] sm:$0xff] }
0x2292   :  { %v1483_v27 = vsel %vm1482_vm2, %v2424_v11, 128  ;;  %v1464_v28 = vsel %vm1463_vm0, %v2424_v11, 128  ;;  %v2151_v25 = vld [vmem:[#allocation6 + $0x38] sm:$0xff] }
0x2293   :  { %v1485_v29 = vshra.s32 %v1483_v27, 16  ;;  %v1466_v30 = vshra.s32 %v1464_v28, 16  ;;  %v1484_v33 = vand.u32 65535, %v1483_v27  ;;  %v1465_v34 = vand.u32 65535, %v1464_v28  ;;  %v2152_v27 = vld [vmem:[#allocation6 + $0x30] sm:$0xff]  ;;  %v2153_v28 = vld [vmem:[#allocation6 + $0x28] sm:$0xff] }
0x2295   :  { %v1487_v31 = vcvt.s32.f32 %v1485_v29  ;;  %v1468_v32 = vcvt.s32.f32 %v1466_v30  ;;  %v1467_v4 = vcvt.s32.f32 %v1465_v34  ;;  %v1486_v18 = vcvt.s32.f32 %v1484_v33  ;;  %v2154_v29 = vld [vmem:[#allocation6 + $0x20] sm:$0xff]  ;;  %v2155_v30 = vld [vmem:[#allocation6 + $0x18] sm:$0xff] }
0x2296   :  { %v2158_v33 = vld [vmem:[#allocation6] sm:$0xff] }
0x2297   :  { %1488 = vmin.xlane.f32.xlu0 %v1487_v31  ;;  %1469 = vmin.xlane.f32.xlu1 %v1468_v32 }
0x230a   :  { %v1470_v35 = vpop.xlane.xlu1 %1469  ;;  %v1489_v3 = vpop.xlane.xlu0 %1488 }
0x230b   :  { %vm1471_vm3 = vcmp.eq.f32.partialorder %v1468_v32, %v1470_v35  ;;  %vm1490_vm4 = vcmp.eq.f32.partialorder %v1487_v31, %v1489_v3  ;;  %v1476_v51 = vcvt.f32.s32 %v1470_v35  ;;  %v1495_v52 = vcvt.f32.s32 %v1489_v3  ;;  %v2156_v31 = vld [vmem:[#allocation6 + $0x10] sm:$0xff]  ;;  %v2157_v32 = vld [vmem:[#allocation6 + $0x8] sm:$0xff] }
0x230c   :  { %v1472_v49 = vsel %vm1471_vm3, %v1467_v4, inf  ;;  %v1491_v50 = vsel %vm1490_vm4, %v1486_v18, inf }
0x230d   :  { %1473 = vmin.xlane.f32.xlu2 %v1472_v49  ;;  %1492 = vmin.xlane.f32.xlu1 %v1491_v50  ;;  %v1477_v21 = vshll.u32 %v1476_v51, 16  ;;  %v1496_v22 = vshll.u32 %v1495_v52, 16 }
0x2380   :  { %v1474_v61 = vpop.xlane.xlu2 %1473  ;;  %v1493_v54 = vpop.xlane.xlu1 %1492 }
0x2381   :  { %v1475_v24 = vcvt.f32.s32 %v1474_v61  ;;  %v1494_v55 = vcvt.f32.s32 %v1493_v54 }
0x2383   :  { %v1478_v26 = vadd.s32 %v1477_v21, %v1475_v24  ;;  %v1497_v56 = vadd.s32 %v1496_v22, %v1494_v55 }
0x2385   :  { %vm1498_vm5 = vcmp.eq.s32.totalorder %v2424_v11, %v1478_v26  ;;  %vm1499_vm6 = vcmp.eq.s32.totalorder %v2424_v11, %v1497_v56 }
0x2386   :  { %vm1500_vm8 = vmor %vm1498_vm5, %vm1499_vm6 }
0x2387   :  { %1976 = vmatmul.msk.f32.vlgmr.msra.gmra.mxu3 %vm1500_vm8, %v2305_v38 }
0x240a   :  { %v1540_v58 = vpop.f32.mrf.mxu3 }
0x240b   :  { %v1541_v59 = vadd.f32 %v1540_v58, %v1520_v57 }
0x240d   :  { %v1543_v60 = vadd.f32 %v2684_v40, %v1541_v59 }
0x240f   :  { %2119 = vtanh.f32 %v1543_v60  ;;  %v1977_v10 = vmul.f32 -1.442695, %v1543_v60 }
0x2411   :  { %2121 = vpow2.f32 %v1977_v10 }
0x2415   :  { %v2120_v62 = vpop.eup %2119 }
0x2416   :  { %1566 = vrot.lane.b32.xlu0 %v2120_v62, %s2297_s13 }
0x2417   :  { %v2122_v12 = vpop.eup %2121 }
0x2418   :  { %v1547_v15 = vadd.f32 1.0, %v2122_v12 }
0x241a   :  { %2123 = vrcp.f32 %v1547_v15  ;;  %v1559_v0 = vand.u32 2147483648, %v1547_v15  ;;  %vm1553_vm11 = vweird.f32 %v1547_v15  ;;  %v1557_v8 = vand.u32 2147483647, %v1547_v15 }
0x241c   :  { %v1560_v19 = vor.u32 1.1754944e-38, %v1559_v0  ;;  %vm1558_vm13 = vcmp.eq.f32.partialorder %v1557_v8, 8.507059e+37 }
0x2420   :  { %v2124_v6 = vpop.eup %2123 }
0x2421   :  { %v1549_v7 = vmul.f32 %v2124_v6, %v1547_v15  ;;  %vm1554_vm9 = vweird.f32 %v2124_v6 }
0x2422   :  { %vm1555_vm12 = vmor %vm1553_vm11, %vm1554_vm9 }
0x2423   :  { %v1550_v63 = vsub.f32 1.0, %v1549_v7 }
0x2425   :  { %v1551_v1 = vmul.f32 %v2124_v6, %v1550_v63 }
0x2427   :  { %v1552_v48 = vadd.f32 %v2124_v6, %v1551_v1 }
0x2429   :  { %v1556_v40 = vsel %vm1555_vm12, %v2124_v6, %v1552_v48 }
0x242a   :  { %v1561_v37 = vsel %vm1558_vm13, %v1560_v19, %v1556_v40  ;;  %v2913_v19 = vld [vmem:[%s2958_s6] ss:$0 sm:$0xff] }
0x242b   :  { %v1564_v39 = vmul.f32 %v1561_v37, %v2850_v43  ;;  %v2144_v43 = vld [vmem:[#allocation6 + $0x70] sm:$0xff] }
0x2488   :  { %v1567_v36 = vpop.permute.xlu0 %1566 }
0x2489   :  { %v1569_v5 = vmul.f32 %v1567_v36, %v1561_v37 }
0x248b   :  { %1571 = vrot.lane.b32.xlu2 %v1569_v5, %s2297_s13 }
0x24e5   :  { %v1572_v13 = vpop.permute.xlu2 %1571 }
0x24e6   :  { %v2890_v2 = vadd.f32 %v1572_v13, %v1564_v39 }
0x24e8   :  { %2125 = vtanh.f32 %v2890_v2 }
0x24ee   :  { %v2126_v41 = vpop.eup %2125 }
0x24ef   :  { %1577 = vrot.lane.b32.xlu1 %v2126_v41, %s2297_s13 }
0x2561   :  { %v1578_v42 = vpop.permute.xlu1 %1577 }
0x2562   :  { %v1580_v44 = vmul.f32 %v1578_v42, %v1561_v37 }
0x2564   :  { %1582 = vrot.lane.b32.xlu0 %v1580_v44, %s2300_s3 }
0x25d6   :  { %v1583_v45 = vpop.permute.xlu0 %1582 }
0x25d7   :  { %1978 = vmatmul.msk.f32.vlgmr.msrb.gmra.mxu0 %vm361_vm10, %v1583_v45  ;;  %1981 = vmatmul.msk.f32.vlgmr.msra.gmra.mxu2 %vm361_vm10, %v1583_v45 }
0x25d8   :  { %1819 = vmatpush.msra.mxu2 %v2143_v46 }
0x25da   :  { %1820 = vmatpush.msra.mxu2 %v2144_v43 }
0x25dc   :  { %1821 = vmatpush.msra.mxu2 %v2145_v47 }
0x25de   :  { %1822 = vmatpush.msra.mxu2 %v2146_v53 }
0x25e0   :  { %1823 = vmatpush.msra.mxu2 %v2147_v9 }
0x25e2   :  { %1824 = vmatpush.msra.mxu2 %v2148_v17 }
0x25e4   :  { %1825 = vmatpush.msra.mxu2 %v2149_v20 }
0x25e6   :  { %1826 = vmatpush.msra.mxu2 %v2150_v23 }
0x25e8   :  { %1827 = vmatpush.msra.mxu2 %v2151_v25 }
0x25ea   :  { %1828 = vmatpush.msra.mxu2 %v2152_v27 }
0x25ec   :  { %1829 = vmatpush.msra.mxu2 %v2153_v28 }
0x25ee   :  { %1830 = vmatpush.msra.mxu2 %v2154_v29 }
0x25f0   :  { %1831 = vmatpush.msra.mxu2 %v2155_v30 }
0x25f2   :  { %1832 = vmatpush.msra.mxu2 %v2156_v31 }
0x25f4   :  { %1833 = vmatpush.msra.mxu2 %v2157_v32 }
0x25f6   :  { %1834 = vmatpush.msra.mxu2 %v2158_v33 }
0x2654   :  { %v1603_v34 = vpop.f32.mrf.mxu0 }
0x2655   :  { %v1604_v35 = vadd.f32 %v2736_v14, %v1603_v34 }
0x2657   :  { %1979 = vst [vmem:[%s2961_s9 + $0x28] sm:$0xff] %v1604_v35  ;;  %v1627_v3 = vsel %vm2740_vm7, %v1604_v35, -inf  ;;  %v1608_v4 = vsel %vm890_vm1, %v1604_v35, -inf }
0x2658   :  { %1628 = vmax.xlane.f32.xlu0 %v1627_v3  ;;  %1609 = vmax.xlane.f32.xlu2 %v1608_v4 }
0x265a   :  { %v1668_v0 = vpop.f32.mrf.mxu2 }
0x26cb   :  { %v1629_v18 = vpop.xlane.xlu0 %1628  ;;  %v1610_v49 = vpop.xlane.xlu2 %1609 }
0x26cc   :  { %vm1630_vm14 = vcmp.eq.f32.partialorder %v1627_v3, %v1629_v18  ;;  %vm1611_vm15 = vcmp.eq.f32.partialorder %v1608_v4, %v1610_v49 }
0x26cd   :  { %v1631_v50 = vsel %vm1630_vm14, %v2424_v11, 128  ;;  %v1612_v51 = vsel %vm1611_vm15, %v2424_v11, 128 }
0x26ce   :  { %v1633_v52 = vshra.s32 %v1631_v50, 16  ;;  %v1614_v61 = vshra.s32 %v1612_v51, 16  ;;  %v1632_v22 = vand.u32 65535, %v1631_v50  ;;  %v1613_v24 = vand.u32 65535, %v1612_v51 }
0x26d0   :  { %v1635_v54 = vcvt.s32.f32 %v1633_v52  ;;  %v1616_v21 = vcvt.s32.f32 %v1614_v61  ;;  %v1615_v56 = vcvt.s32.f32 %v1613_v24  ;;  %v1634_v57 = vcvt.s32.f32 %v1632_v22 }
0x26d2   :  { %1636 = vmin.xlane.f32.xlu2 %v1635_v54  ;;  %1617 = vmin.xlane.f32.xlu1 %v1616_v21 }
0x2745   :  { %v1618_v55 = vpop.xlane.xlu1 %1617  ;;  %v1637_v26 = vpop.xlane.xlu2 %1636 }
0x2746   :  { %vm1619_vm2 = vcmp.eq.f32.partialorder %v1616_v21, %v1618_v55  ;;  %vm1638_vm0 = vcmp.eq.f32.partialorder %v1635_v54, %v1637_v26  ;;  %v1624_v60 = vcvt.f32.s32 %v1618_v55  ;;  %v1643_v62 = vcvt.f32.s32 %v1637_v26 }
0x2747   :  { %v1620_v58 = vsel %vm1619_vm2, %v1615_v56, inf  ;;  %v1639_v59 = vsel %vm1638_vm0, %v1634_v57, inf }
0x2748   :  { %1621 = vmin.xlane.f32.xlu0 %v1620_v58  ;;  %1640 = vmin.xlane.f32.xlu2 %v1639_v59  ;;  %v1625_v15 = vshll.u32 %v1624_v60, 16  ;;  %v1644_v6 = vshll.u32 %v1643_v62, 16 }
0x27bb   :  { %v1622_v10 = vpop.xlane.xlu0 %1621  ;;  %v1641_v12 = vpop.xlane.xlu2 %1640 }
0x27bc   :  { %v1623_v7 = vcvt.f32.s32 %v1622_v10  ;;  %v1642_v63 = vcvt.f32.s32 %v1641_v12 }
0x27be   :  { %v1626_v1 = vadd.s32 %v1625_v15, %v1623_v7  ;;  %v1645_v48 = vadd.s32 %v1644_v6, %v1642_v63 }
0x27c0   :  { %vm1646_vm3 = vcmp.eq.s32.totalorder %v2424_v11, %v1626_v1  ;;  %vm1647_vm4 = vcmp.eq.s32.totalorder %v2424_v11, %v1645_v48 }
0x27c1   :  { %vm1648_vm5 = vmor %vm1646_vm3, %vm1647_vm4 }
0x27c2   :  { %1982 = vmatmul.msk.f32.vlgmr.msra.gmra.mxu0 %vm1648_vm5, %v2305_v38 }
0x283f   :  { %v1688_v8 = vpop.f32.mrf.mxu0 }
0x2840   :  { %v1689_v40 = vadd.f32 %v1688_v8, %v1668_v0 }
0x2842   :  { %v1691_v36 = vadd.f32 %v2913_v19, %v1689_v40 }
0x2844   :  { %2127 = vtanh.f32 %v1691_v36  ;;  %v1983_v5 = vmul.f32 -1.442695, %v1691_v36 }
0x2846   :  { %2129 = vpow2.f32 %v1983_v5 }
0x284a   :  { %v2128_v37 = vpop.eup %2127 }
0x284b   :  { %1714 = vrot.lane.b32.xlu1 %v2128_v37, %s2297_s13 }
0x284c   :  { %v2130_v39 = vpop.eup %2129 }
0x284d   :  { %v1695_v13 = vadd.f32 1.0, %v2130_v39 }
0x284f   :  { %2131 = vrcp.f32 %v1695_v13  ;;  %v1707_v43 = vand.u32 2147483648, %v1695_v13  ;;  %vm1701_vm8 = vweird.f32 %v1695_v13  ;;  %v1705_v47 = vand.u32 2147483647, %v1695_v13 }
0x2851   :  { %v1708_v9 = vor.u32 1.1754944e-38, %v1707_v43  ;;  %vm1706_vm11 = vcmp.eq.f32.partialorder %v1705_v47, 8.507059e+37 }
0x2855   :  { %v2132_v41 = vpop.eup %2131 }
0x2856   :  { %v1697_v42 = vmul.f32 %v2132_v41, %v1695_v13  ;;  %vm1702_vm6 = vweird.f32 %v2132_v41 }
0x2857   :  { %vm1703_vm9 = vmor %vm1701_vm8, %vm1702_vm6 }
0x2858   :  { %v1698_v44 = vsub.f32 1.0, %v1697_v42 }
0x285a   :  { %v1699_v45 = vmul.f32 %v2132_v41, %v1698_v44 }
0x285c   :  { %v1700_v46 = vadd.f32 %v2132_v41, %v1699_v45 }
0x285e   :  { %v1704_v53 = vsel %vm1703_vm9, %v2132_v41, %v1700_v46 }
0x285f   :  { %v1709_v20 = vsel %vm1706_vm11, %v1708_v9, %v1704_v53 }
0x2860   :  { %v1712_v25 = vmul.f32 %v1709_v20, %v2890_v2 }
0x28bd   :  { %v1715_v17 = vpop.permute.xlu1 %1714 }
0x28be   :  { %v1717_v23 = vmul.f32 %v1715_v17, %v1709_v20 }
0x28c0   :  { %1719 = vrot.lane.b32.xlu0 %v1717_v23, %s2297_s13 }
0x2932   :  { %v1720_v27 = vpop.permute.xlu0 %1719 }
0x2933   :  { %v2919_v28 = vadd.f32 %v1720_v27, %v1712_v25  ;;  %v2160_v27 = vld [vmem:[%s2960_s8] ss:$0 sm:$0xff] }
0x2935   :  { %2133 = vtanh.f32 %v2919_v28 }
0x293b   :  { %v2134_v29 = vpop.eup %2133 }
0x293c   :  { %1725 = vrot.lane.b32.xlu2 %v2134_v29, %s2297_s13 }
0x2996   :  { %v1726_v30 = vpop.permute.xlu2 %1725 }
0x2997   :  { %v1728_v31 = vmul.f32 %v1726_v30, %v1709_v20 }
0x2999   :  { %1730 = vrot.lane.b32.xlu0 %v1728_v31, %s2300_s3 }
0x2a0b   :  { %v1731_v32 = vpop.permute.xlu0 %1730 }
0x2a0c   :  { %1984 = vmatmul.msk.f32.vlgmr.msrb.gmra.mxu2 %vm361_vm10, %v1731_v32  ;;  %1987 = vmatmul.msk.f32.vlgmr.msra.gmra.mxu1 %vm361_vm10, %v1731_v32 }
0x2a89   :  { %v1816_v7 = vpop.f32.mrf.mxu1 }
0x2a8f   :  { %v1751_v33 = vpop.f32.mrf.mxu2 }
0x2a90   :  { %v1752_v2 = vadd.f32 %v2736_v14, %v1751_v33 }
0x2a92   :  { %1985 = vst [vmem:[%s2961_s9 + $0x30] sm:$0xff] %v1752_v2  ;;  %v1775_v34 = vsel %vm2740_vm7, %v1752_v2, -inf  ;;  %v1756_v35 = vsel %vm890_vm1, %v1752_v2, -inf }
0x2a93   :  { %1776 = vmax.xlane.f32.xlu2 %v1775_v34  ;;  %1757 = vmax.xlane.f32.xlu1 %v1756_v35 }
0x2b06   :  { %v1777_v3 = vpop.xlane.xlu2 %1776  ;;  %v1758_v4 = vpop.xlane.xlu1 %1757 }
0x2b07   :  { %vm1778_vm12 = vcmp.eq.f32.partialorder %v1775_v34, %v1777_v3  ;;  %vm1759_vm13 = vcmp.eq.f32.partialorder %v1756_v35, %v1758_v4 }
0x2b08   :  { %v1779_v18 = vsel %vm1778_vm12, %v2424_v11, 128  ;;  %v1760_v14 = vsel %vm1759_vm13, %v2424_v11, 128 }
0x2b09   :  { %v1781_v49 = vshra.s32 %v1779_v18, 16  ;;  %v1762_v50 = vshra.s32 %v1760_v14, 16  ;;  %v1780_v16 = vand.u32 65535, %v1779_v18  ;;  %v1761_v61 = vand.u32 65535, %v1760_v14 }
0x2b0b   :  { %v1783_v51 = vcvt.s32.f32 %v1781_v49  ;;  %v1764_v52 = vcvt.s32.f32 %v1762_v50  ;;  %v1763_v22 = vcvt.s32.f32 %v1761_v61  ;;  %v1782_v24 = vcvt.s32.f32 %v1780_v16 }
0x2b0d   :  { %1784 = vmin.xlane.f32.xlu1 %v1783_v51  ;;  %1765 = vmin.xlane.f32.xlu0 %v1764_v52 }
0x2b80   :  { %v1766_v54 = vpop.xlane.xlu0 %1765  ;;  %v1785_v21 = vpop.xlane.xlu1 %1784 }
0x2b81   :  { %vm1767_vm7 = vcmp.eq.f32.partialorder %v1764_v52, %v1766_v54  ;;  %vm1786_vm1 = vcmp.eq.f32.partialorder %v1783_v51, %v1785_v21  ;;  %v1772_v56 = vcvt.f32.s32 %v1766_v54  ;;  %v1791_v57 = vcvt.f32.s32 %v1785_v21 }
0x2b82   :  { %v1768_v55 = vsel %vm1767_vm7, %v1763_v22, inf  ;;  %v1787_v26 = vsel %vm1786_vm1, %v1782_v24, inf }
0x2b83   :  { %1769 = vmin.xlane.f32.xlu2 %v1768_v55  ;;  %1788 = vmin.xlane.f32.xlu0 %v1787_v26  ;;  %v1773_v60 = vshll.u32 %v1772_v56, 16  ;;  %v1792_v62 = vshll.u32 %v1791_v57, 16 }
0x2bf6   :  { %v1770_v58 = vpop.xlane.xlu2 %1769  ;;  %v1789_v59 = vpop.xlane.xlu0 %1788 }
0x2bf7   :  { %v1771_v10 = vcvt.f32.s32 %v1770_v58  ;;  %v1790_v12 = vcvt.f32.s32 %v1789_v59 }
0x2bf9   :  { %v1774_v15 = vadd.s32 %v1773_v60, %v1771_v10  ;;  %v1793_v6 = vadd.s32 %v1792_v62, %v1790_v12 }
0x2bfb   :  { %vm1794_vm14 = vcmp.eq.s32.totalorder %v2424_v11, %v1774_v15  ;;  %vm1795_vm15 = vcmp.eq.s32.totalorder %v2424_v11, %v1793_v6 }
0x2bfc   :  { %vm1796_vm2 = vmor %vm1794_vm14, %vm1795_vm15 }
0x2bfd   :  { %1988 = vmatmul.msk.f32.vlgmr.msra.gmra.mxu2 %vm1796_vm2, %v2305_v38 }
0x2c80   :  { %v1836_v63 = vpop.f32.mrf.mxu2 }
0x2c81   :  { %v1837_v1 = vadd.f32 %v1836_v63, %v1816_v7 }
0x2c83   :  { %v1839_v48 = vadd.f32 %v2913_v19, %v1837_v1 }
0x2c85   :  { %2135 = vtanh.f32 %v1839_v48  ;;  %v1989_v8 = vmul.f32 -1.442695, %v1839_v48 }
0x2c87   :  { %2137 = vpow2.f32 %v1989_v8 }
0x2c8b   :  { %v2136_v0 = vpop.eup %2135 }
0x2c8c   :  { %1862 = vrot.lane.b32.xlu1 %v2136_v0, %s2297_s13 }
0x2c8d   :  { %v2138_v40 = vpop.eup %2137 }
0x2c8e   :  { %v1843_v36 = vadd.f32 1.0, %v2138_v40 }
0x2c90   :  { %2139 = vrcp.f32 %v1843_v36  ;;  %v1855_v38 = vand.u32 2147483648, %v1843_v36  ;;  %vm1849_vm3 = vweird.f32 %v1843_v36  ;;  %v1853_v41 = vand.u32 2147483647, %v1843_v36 }
0x2c92   :  { %v1856_v42 = vor.u32 1.1754944e-38, %v1855_v38  ;;  %vm1854_vm5 = vcmp.eq.f32.partialorder %v1853_v41, 8.507059e+37 }
0x2c96   :  { %v2140_v37 = vpop.eup %2139 }
0x2c97   :  { %v1845_v5 = vmul.f32 %v2140_v37, %v1843_v36  ;;  %vm1850_vm0 = vweird.f32 %v2140_v37 }
0x2c98   :  { %vm1851_vm4 = vmor %vm1849_vm3, %vm1850_vm0 }
0x2c99   :  { %v1846_v11 = vsub.f32 1.0, %v1845_v5 }
0x2c9b   :  { %v1847_v39 = vmul.f32 %v2140_v37, %v1846_v11 }
0x2c9d   :  { %v1848_v13 = vadd.f32 %v2140_v37, %v1847_v39 }
0x2c9f   :  { %v1852_v19 = vsel %vm1851_vm4, %v2140_v37, %v1848_v13 }
0x2ca0   :  { %v1857_v45 = vsel %vm1854_vm5, %v1856_v42, %v1852_v19 }
0x2ca1   :  { %v1860_v43 = vmul.f32 %v1857_v45, %v2919_v28 }
0x2cfe   :  { %v1863_v44 = vpop.permute.xlu1 %1862 }
0x2cff   :  { %v1865_v46 = vmul.f32 %v1863_v44, %v1857_v45 }
0x2d01   :  { %1867 = vrot.lane.b32.xlu2 %v1865_v46, %s2297_s13 }
0x2d5b   :  { %v1868_v47 = vpop.permute.xlu2 %1867 }
0x2d5c   :  { %v1870_v53 = vadd.f32 %v1868_v47, %v1860_v43 }
0x2d5e   :  { %2141 = vtanh.f32 %v1870_v53 }
0x2d64   :  { %v2142_v9 = vpop.eup %2141 }
0x2d65   :  { %1873 = vrot.lane.b32.xlu0 %v2142_v9, %s2297_s13 }
0x2dd7   :  { %v1874_v17 = vpop.permute.xlu0 %1873 }
0x2dd8   :  { %v1876_v20 = vmul.f32 %v1874_v17, %v1857_v45 }
0x2dda   :  { %1878 = vrot.lane.b32.xlu1 %v1876_v20, %s2300_s3 }
0x2e4c   :  { %v1879_v23 = vpop.permute.xlu1 %1878 }
0x2e4d   :  { %1990 = vmatmul.msk.f32.vlgmr.msrb.gmra.mxu1 %vm361_vm10, %v1879_v23 }
0x2eca   :  { %v1899_v25 = vpop.f32.mrf.mxu1 }
0x2ecb   :  { %v1900_v29 = vadd.f32 %v2160_v27, %v1899_v25 }
0x2ecd   :  { %1991 = vst [vmem:[%s2961_s9 + $0x38] sm:$0xff] %v1900_v29 }
0x2ece   :  { %1908 = vsyncpa [#allocation3], 1 }
0x2ecf   :  { %1909 = vsyncpa [#allocation5], 1 }
0x2ed0   :  { %1910 = vsyncpa [#allocation8], 1 }

</bundles_post_ra>
